<compile_context>
chip_gen: v5e
topology: v5e:2x2
jax: 0.10.0
libtpu: 0.0.40
codegen_flags: <defaults>
</compile_context>

<pallas_src>
import functools

import numpy as np
import jax
import jax.numpy as jnp
from jax import lax
from jax.experimental import pallas as pl
from jax.experimental.pallas import tpu as pltpu


LANE_W = 256    # weight-slab lane width (holds fused 2*heads*hidden projection)
LANE_D = 128    # data-slab / output lane width
OUT_PAD = 128   # lane-dense output width


def _round_up(x, m):
    return (x + m - 1) // m * m


# ----------------------------------------------------------------------------
# in-kernel helpers (traced inline inside the single fused kernel)
# ----------------------------------------------------------------------------
def _elu(x):
    # expm1(t) = tanh(t/2) * (exp(t) + 1)  -- exact ELU tail, accurate near 0,
    # uses only EUP ops (tanh/exp); min() keeps the unselected branch finite.
    t = jnp.minimum(x, 0.0)
    em1 = jnp.tanh(0.5 * t) * (jnp.exp(t) + 1.0)
    return jnp.where(x > 0, x, em1)


def _gatv2_layer(h, w_lr, b_lr, att_bd, bias, counts_flat, sel, *,
                 N, heads, C, apply_elu):
    """Dense GATv2 layer (PyG semantics), all heads fused.

    h:           (N, F_in)
    w_lr:        (F_in, 2*heads*C)  fused [lin_l | lin_r] weights
    b_lr:        (1, 2*heads*C)     fused [lin_l | lin_r] biases
    att_bd:      (heads*C, heads)   block-diagonal attention vectors
    bias:        (1, heads*C)       (heads*C == C for the 1-head layer)
    counts_flat: (N*N, 1)           edge multiplicity j->i at row i*N+j
                                    (exactly one self loop per node)
    sel:         (heads, heads*C)   block one-hot head-expansion (None if heads==1)
    """
    f32 = jnp.float32
    HC = heads * C

    # fused source/target projection: one MXU push, 2*HC lanes wide
    proj = jnp.dot(h, w_lr, preferred_element_type=f32) + b_lr       # (N, 2*HC)
    xl = proj[:, :HC]        # lin_l(x): source features (also aggregated)
    xr = proj[:, HC:]        # lin_r(x): target features

    # attention logits, lane-dense over all heads: s[i,j] = leaky_relu(xr_i + xl_j)
    s = xr[:, None, :] + xl[None, :, :]                              # (N, N, HC)
    s = jnp.where(s > 0, s, 0.2 * s)
    # per-head reduce over C on the MXU: (N*N, HC) @ (HC, heads)
    e = jnp.dot(s.reshape(N * N, HC), att_bd,
                preferred_element_type=f32)                          # (N*N, H)

    # masked softmax over incoming edges j (duplicate edges weighted by counts)
    e = jnp.where(counts_flat > 0.0, e, f32(-1e30))
    e3 = e.reshape(N, N, heads)
    counts3 = counts_flat.reshape(N, N, 1)
    m = jnp.max(e3, axis=1, keepdims=True)                           # (N, 1, H)
    p = jnp.exp(e3 - m) * counts3                                    # (N, N, H)
    denom = jnp.sum(p, axis=1, keepdims=True)                        # (N, 1, H)
    alpha = p / denom        # exact divide (parity with torch softmax)

    # aggregation, all heads at once: expand alpha over each head's C lanes with
    # one MXU push, then one lane-dense weighted reduce over j.
    if heads == 1:
        alpha_exp = jnp.broadcast_to(alpha, (N, N, C))
    else:
        alpha_exp = jnp.dot(alpha.reshape(N * N, heads), sel,
                            preferred_element_type=f32).reshape(N, N, HC)
    out = jnp.sum(alpha_exp * xl[None, :, :], axis=1)                # (N, HC)

    # conv3 has heads=1 / concat=False, so the head-mean is the identity.
    out = out + bias
    if apply_elu:
        out = _elu(out)
    return out


# ----------------------------------------------------------------------------
# the single fused forward kernel (no grid; everything VMEM-resident)
# ----------------------------------------------------------------------------
def fused_forward_kernel(data_ref, idx_ref, wslab_ref, o_ref, *,
                         N, E, heads, hidden, woffs, doffs):
    f32 = jnp.float32

    def w(name):                       # static slab slice -> load from VMEM
        r, nr, nc = woffs[name]
        return wslab_ref[r:r + nr, 0:nc]

    def d(name):
        r, nr, nc = doffs[name]
        return data_ref[r:r + nr, 0:nc]

    # ---- dense edge-multiplicity vector, flat row index r = dst*N + src -------
    # (self-loop handling already done in the wrapper; padded edges are -1)
    src = idx_ref[0:1, :]                                   # (1, E) int32
    dst = idx_ref[1:2, :]                                   # (1, E) int32
    key = dst * N + src                                     # padded -> negative
    row = lax.broadcasted_iota(jnp.int32, (N * N, E), 0)
    hits = (row == key).astype(f32)                         # (N*N, E)
    # E-reduction on the MXU (one (N*N,E)x(E,8) push), take one lane
    counts_flat = jnp.dot(hits, jnp.ones((E, 8), f32),
                          preferred_element_type=f32)[:, 0:1]        # (N*N, 1)

    # ---- agent embedding: relu(x @ W + b); dropout = identity in eval ---------
    h = jnp.dot(d("x"), w("w_emb"), preferred_element_type=f32) + w("b_emb")
    h = jnp.maximum(h, 0.0)

    # ---- GATv2 stack (activations stay in VMEM) -------------------------------
    sel = w("sel")                                          # (heads, heads*hidden)
    h = _gatv2_layer(h, w("w1"), w("b1"), w("a1"), w("c1"), counts_flat, sel,
                     N=N, heads=heads, C=hidden, apply_elu=True)
    h = _gatv2_layer(h, w("w2"), w("b2"), w("a2"), w("c2"), counts_flat, sel,
                     N=N, heads=heads, C=hidden, apply_elu=True)
    h = _gatv2_layer(h, w("w3"), w("b3"), w("a3"), w("c3"), counts_flat, None,
                     N=N, heads=1, C=hidden, apply_elu=False)

    # ---- focal gather via one-hot matmul --------------------------------------
    focal_feat = jnp.dot(d("gather"), h, preferred_element_type=f32)  # (F_pad, hid)

    # ---- centerline linear on host-precomputed means; the valid column
    #      reproduces the torch "no centerlines -> zeros" fallback exactly ------
    clb = d("cl")                                            # (F_pad, 3)
    cl_feat = (jnp.dot(clb[:, 0:2], w("w_cl"), preferred_element_type=f32)
               + w("b_cl")) * clb[:, 2:3]

    # ---- fc head on [focal ; centerline]: split matmul, lane-dense store ------
    wfc = w("w_fc")                                          # (2*hidden, OUT_PAD)
    out = (jnp.dot(focal_feat, wfc[:hidden, :], preferred_element_type=f32)
           + jnp.dot(cl_feat, wfc[hidden:, :], preferred_element_type=f32)
           + w("b_fc"))
    o_ref[...] = out.astype(o_ref.dtype)


# ----------------------------------------------------------------------------
# weight-slab packing (done once at init)
# ----------------------------------------------------------------------------
def pack_weight_slab(params, *, hidden, heads, out_channels):
    entries = []

    def add(name, arr):
        entries.append((name, np.asarray(arr, np.float32)))

    add("w_emb", params["agent_embedding"][0])
    add("b_emb", params["agent_embedding"][1])
    for li, key in ((1, "conv1"), (2, "conv2"), (3, "conv3")):
        w_lr, b_lr, att_bd, bias = params[key]
        add(f"w{li}", w_lr); add(f"b{li}", b_lr)
        add(f"a{li}", att_bd); add(f"c{li}", bias)
    add("w_cl", params["centerline_processor"][0])
    add("b_cl", params["centerline_processor"][1])

    # fc weight/bias lane-padded so the kernel's output store is lane-dense
    w_fc, b_fc = params["fc"]
    w_fc = np.asarray(w_fc, np.float32); b_fc = np.asarray(b_fc, np.float32)
    w_fc_p = np.zeros((w_fc.shape[0], OUT_PAD), np.float32)
    w_fc_p[:, :out_channels] = w_fc
    b_fc_p = np.zeros((1, OUT_PAD), np.float32)
    b_fc_p[:, :out_channels] = b_fc
    add("w_fc", w_fc_p); add("b_fc", b_fc_p)

    # head-expansion selector (block one-hot), baked as a constant
    HC = heads * hidden
    sel = np.zeros((heads, HC), np.float32)
    for h in range(heads):
        sel[h, h * hidden:(h + 1) * hidden] = 1.0
    add("sel", sel)

    offs = {}
    blocks = []
    row = 0
    for name, arr in entries:
        r, c = arr.shape
        assert c <= LANE_W, (name, arr.shape)
        offs[name] = (row, r, c)
        rp = _round_up(r, 8)                 # keep every segment 8-row aligned
        blk = np.zeros((rp, LANE_W), np.float32)
        blk[:r, :c] = arr
        blocks.append(blk)
        row += rp
    return jnp.asarray(np.concatenate(blocks, axis=0)), offs


# ----------------------------------------------------------------------------
# wrapper: one pallas_call, 3 input DMAs + 1 output DMA, bucketed static shapes
# ----------------------------------------------------------------------------
def gatv2_forward(x, edge_index, focal_idx, centerlines, weight_slab, woffs, *,
                  hidden, heads, out_channels):
    N = int(x.shape[0])
    E = int(edge_index.shape[1])
    n_focal = int(focal_idx.shape[0])
    F_in = int(np.prod(x.shape[1:]))

    # shape bucketing: repeated calls with different graphs reuse one compile
    N_pad = _round_up(max(N, 8), 8)
    F_pad = _round_up(max(n_focal, 8), 8)
    E_pad = _round_up(max(E + N_pad, 128), 128)
    lane_d = _round_up(max(LANE_D, N_pad, F_in, 3), 128)

    x_flat = jnp.asarray(x, jnp.float32).reshape(N, F_in)

    # edges: PyG add_self_loops semantics (drop self loops, add exactly one per
    # node, incl. padded nodes so their softmax rows stay finite); pad with -1.
    src = jnp.asarray(edge_index[0], jnp.int32)
    dst = jnp.asarray(edge_index[1], jnp.int32)
    keep = src != dst
    src = jnp.where(keep, src, -1)
    dst = jnp.where(keep, dst, -1)
    loops = jnp.arange(N_pad, dtype=jnp.int32)
    src = jnp.concatenate([src, loops])
    dst = jnp.concatenate([dst, loops])
    pad = E_pad - int(src.shape[0])
    src = jnp.pad(src, (0, pad), constant_values=-1)
    dst = jnp.pad(dst, (0, pad), constant_values=-1)
    idx = jnp.stack([src, dst], axis=0)                        # (2, E_pad) int32

    # focal gather one-hot (padded rows are all-zero -> sliced off later)
    focal = jnp.asarray(focal_idx, jnp.int32)
    gather = (focal[:, None] == jnp.arange(N_pad, dtype=jnp.int32)[None, :]
              ).astype(jnp.float32)                            # (n_focal, N_pad)

    # centerlines: means + torch fallback paths handled on the host
    means = []
    for cl in centerlines:
        cl_np = None if cl is None else np.asarray(cl, np.float32)
        if cl_np is not None and cl_np.size > 0:
            means.append(cl_np.reshape(-1, 2).mean(axis=0))
    if not means:
        cl_mean = np.zeros((n_focal, 2), np.float32)
        cl_scale = np.zeros((n_focal, 1), np.float32)   # fc sees exact zeros
    else:
        cl_mean = np.stack(means, axis=0)
        if cl_mean.shape[0] != n_focal:                 # mismatch -> expand first
            cl_mean = np.broadcast_to(cl_mean[0:1], (n_focal, 2)).copy()
        cl_scale = np.ones((n_focal, 1), np.float32)
    cl_block = jnp.asarray(np.concatenate([cl_mean, cl_scale], axis=1))

    # single float data slab: [ x | focal one-hot | centerline block ]
    r_x, r_g, r_c = 0, N_pad, N_pad + F_pad
    dslab = jnp.zeros((N_pad + 2 * F_pad, lane_d), jnp.float32)
    dslab = dslab.at[r_x:r_x + N, :F_in].set(x_flat)
    dslab = dslab.at[r_g:r_g + n_focal, :N_pad].set(gather)
    dslab = dslab.at[r_c:r_c + n_focal, :3].set(cl_block)
    doffs = {"x": (r_x, N_pad, F_in),
             "gather": (r_g, F_pad, N_pad),
             "cl": (r_c, F_pad, 3)}

    kernel = functools.partial(fused_forward_kernel, N=N_pad, E=E_pad,
                               heads=heads, hidden=hidden,
                               woffs=woffs, doffs=doffs)
    vmem = pl.BlockSpec(memory_space=pltpu.MemorySpace.VMEM)
    out = pl.pallas_call(
        kernel,
        out_shape=jax.ShapeDtypeStruct((F_pad, OUT_PAD), jnp.float32),
        in_specs=[vmem, vmem, vmem],
        out_specs=vmem,
    )(dslab, idx, weight_slab)
    return out[:n_focal, :out_channels]


# ----------------------------------------------------------------------------
# deterministic synthetic parameters
# ----------------------------------------------------------------------------
def init_linear(key, fan_in, fan_out):
    kw, kb = jax.random.split(key)
    w = jax.random.normal(kw, (fan_in, fan_out), jnp.float32) * 0.1   # (in, out)
    b = jax.random.normal(kb, (1, fan_out), jnp.float32) * 0.1
    return w, b


def init_gatv2(key, fan_in, out_ch, heads):
    k1, k2, k3, k4 = jax.random.split(key, 4)
    wl, bl = init_linear(k1, fan_in, heads * out_ch)    # lin_l
    wr, br = init_linear(k2, fan_in, heads * out_ch)    # lin_r
    w_lr = jnp.concatenate([wl, wr], axis=1)            # fused projection
    b_lr = jnp.concatenate([bl, br], axis=1)
    att = np.asarray(jax.random.normal(k3, (heads, out_ch), jnp.float32) * 0.1)
    att_bd = np.zeros((heads * out_ch, heads), np.float32)   # block-diagonal a
    for h in range(heads):
        att_bd[h * out_ch:(h + 1) * out_ch, h] = att[h]
    bias = jax.random.normal(k4, (1, heads * out_ch), jnp.float32) * 0.1
    return w_lr, b_lr, jnp.asarray(att_bd), bias


# ----------------------------------------------------------------------------
if __name__ == "__main__":
    in_channels, hidden, out_channels = 4, 32, 8
    num_heads, seq_len = 4, 5
    N = 8                       # number of agents / graph nodes

    key = jax.random.PRNGKey(0)
    keys = jax.random.split(key, 10)

    params = {
        "agent_embedding": init_linear(keys[0], in_channels * seq_len, hidden),
        "conv1": init_gatv2(keys[1], hidden, hidden, num_heads),
        "conv2": init_gatv2(keys[2], hidden * num_heads, hidden, num_heads),
        "conv3": init_gatv2(keys[3], hidden * num_heads, hidden, 1),
        "centerline_processor": init_linear(keys[4], 2, hidden),
        "fc": init_linear(keys[5], 2 * hidden, out_channels),
    }
    weight_slab, woffs = pack_weight_slab(params, hidden=hidden, heads=num_heads,
                                          out_channels=out_channels)

    # data.x : (N, seq_len, in_channels)
    x = jax.random.normal(keys[6], (N, seq_len, in_channels), jnp.float32)

    # ring graph + a few chords (edge_index: [2, E], row0=src, row1=dst)
    src = jnp.array([0, 1, 2, 3, 4, 5, 6, 7, 0, 2, 4, 6], jnp.int32)
    dst = jnp.array([1, 2, 3, 4, 5, 6, 7, 0, 4, 6, 0, 2], jnp.int32)
    edge_index = jnp.stack([src, dst], axis=0)

    focal_idx = jnp.array([0, 3], jnp.int32)

    # two centerlines (variable #points, 2D coords), one per focal agent
    centerlines = [
        jax.random.normal(keys[7], (10, 2), jnp.float32),
        jax.random.normal(keys[8], (7, 2), jnp.float32),
    ]

    out = gatv2_forward(x, edge_index, focal_idx, centerlines, weight_slab, woffs,
                        hidden=hidden, heads=num_heads, out_channels=out_channels)
    out = jax.block_until_ready(out)

    assert out.shape == (int(focal_idx.shape[0]), out_channels), out.shape
    assert bool(jnp.all(jnp.isfinite(out)))
    print("KERNEL_OK")
</pallas_src>

<mosaic_0001>
module attributes {stable_mosaic.version = 11 : i64} {
  func.func @fused_forward_kernel(%arg0: memref<24x128xf32, #tpu.memory_space<vmem>>, %arg1: memref<2x128xi32, #tpu.memory_space<vmem>>, %arg2: memref<752x256xf32, #tpu.memory_space<vmem>>, %arg3: memref<8x128xf32, #tpu.memory_space<vmem>>) attributes {dimension_semantics = [], scalar_prefetch = 0 : i64, scratch_operands = 0 : i64, tpu.core_type = #tpu.core_type<tc>} {
    %c0 = arith.constant 0 : index
    %c0_0 = arith.constant 0 : index
    %0 = vector.load %arg1[%c0, %c0_0] : memref<2x128xi32, #tpu.memory_space<vmem>>, vector<1x128xi32>
    %c1 = arith.constant 1 : index
    %c0_1 = arith.constant 0 : index
    %1 = vector.load %arg1[%c1, %c0_1] : memref<2x128xi32, #tpu.memory_space<vmem>>, vector<1x128xi32>
    %c8_i32 = arith.constant 8 : i32
    %2 = vector.broadcast %c8_i32 : i32 to vector<1x128xi32>
    %3 = arith.muli %1, %2 : vector<1x128xi32>
    %4 = arith.addi %3, %0 : vector<1x128xi32>
    %5 = tpu.iota {dimensions = array<i32: 0>} : vector<64x128xi32>
    %6 = vector.broadcast %4 : vector<1x128xi32> to vector<64x128xi32>
    %7 = arith.cmpi eq, %5, %6 : vector<64x128xi32>
    %8 = arith.extui %7 : vector<64x128xi1> to vector<64x128xi32>
    %9 = arith.sitofp %8 : vector<64x128xi32> to vector<64x128xf32>
    %cst = arith.constant 1.000000e+00 : f32
    %10 = vector.broadcast %cst : f32 to vector<128x8xf32>
    %cst_2 = arith.constant dense<0.000000e+00> : vector<64x8xf32>
    %11 = tpu.matmul %9, %10, %cst_2 {dimension_numbers = #tpu.dot_dimension_numbers<[1], [0], [0], [1], [0, 0, 1, 1], [], []>} : vector<64x128xf32>, vector<128x8xf32>, vector<64x8xf32> -> vector<64x8xf32>
    %12 = vector.extract_strided_slice %11 {offsets = [0, 0], sizes = [64, 1], strides = [1, 1]} : vector<64x8xf32> to vector<64x1xf32>
    %c0_3 = arith.constant 0 : index
    %c0_4 = arith.constant 0 : index
    %13 = vector.load %arg0[%c0_3, %c0_4] : memref<24x128xf32, #tpu.memory_space<vmem>>, vector<8x20xf32>
    %c0_5 = arith.constant 0 : index
    %c0_6 = arith.constant 0 : index
    %14 = vector.load %arg2[%c0_5, %c0_6] : memref<752x256xf32, #tpu.memory_space<vmem>>, vector<20x32xf32>
    %cst_7 = arith.constant dense<0.000000e+00> : vector<8x32xf32>
    %15 = tpu.matmul %13, %14, %cst_7 {dimension_numbers = #tpu.dot_dimension_numbers<[1], [0], [0], [1], [0, 0, 1, 1], [], []>} : vector<8x20xf32>, vector<20x32xf32>, vector<8x32xf32> -> vector<8x32xf32>
    %c24 = arith.constant 24 : index
    %c0_8 = arith.constant 0 : index
    %16 = vector.load %arg2[%c24, %c0_8] : memref<752x256xf32, #tpu.memory_space<vmem>>, vector<1x32xf32>
    %17 = vector.broadcast %16 : vector<1x32xf32> to vector<8x32xf32>
    %18 = arith.addf %15, %17 : vector<8x32xf32>
    %cst_9 = arith.constant 0.000000e+00 : f32
    %19 = vector.broadcast %cst_9 : f32 to vector<8x32xf32>
    %20 = arith.maximumf %18, %19 : vector<8x32xf32>
    %c744 = arith.constant 744 : index
    %c0_10 = arith.constant 0 : index
    %21 = vector.load %arg2[%c744, %c0_10] : memref<752x256xf32, #tpu.memory_space<vmem>>, vector<4x128xf32>
    %c32 = arith.constant 32 : index
    %c0_11 = arith.constant 0 : index
    %22 = vector.load %arg2[%c32, %c0_11] : memref<752x256xf32, #tpu.memory_space<vmem>>, vector<32x256xf32>
    %c64 = arith.constant 64 : index
    %c0_12 = arith.constant 0 : index
    %23 = vector.load %arg2[%c64, %c0_12] : memref<752x256xf32, #tpu.memory_space<vmem>>, vector<1x256xf32>
    %c72 = arith.constant 72 : index
    %c0_13 = arith.constant 0 : index
    %24 = vector.load %arg2[%c72, %c0_13] : memref<752x256xf32, #tpu.memory_space<vmem>>, vector<128x4xf32>
    %c200 = arith.constant 200 : index
    %c0_14 = arith.constant 0 : index
    %25 = vector.load %arg2[%c200, %c0_14] : memref<752x256xf32, #tpu.memory_space<vmem>>, vector<1x128xf32>
    %cst_15 = arith.constant dense<0.000000e+00> : vector<8x256xf32>
    %26 = tpu.matmul %20, %22, %cst_15 {dimension_numbers = #tpu.dot_dimension_numbers<[1], [0], [0], [1], [0, 0, 1, 1], [], []>} : vector<8x32xf32>, vector<32x256xf32>, vector<8x256xf32> -> vector<8x256xf32>
    %27 = vector.broadcast %23 : vector<1x256xf32> to vector<8x256xf32>
    %28 = arith.addf %26, %27 : vector<8x256xf32>
    %29 = vector.extract_strided_slice %28 {offsets = [0, 0], sizes = [8, 128], strides = [1, 1]} : vector<8x256xf32> to vector<8x128xf32>
    %30 = vector.extract_strided_slice %28 {offsets = [0, 128], sizes = [8, 128], strides = [1, 1]} : vector<8x256xf32> to vector<8x128xf32>
    %31 = vector.shape_cast %30 : vector<8x128xf32> to vector<8x1x128xf32>
    %32 = vector.shape_cast %29 : vector<8x128xf32> to vector<1x8x128xf32>
    %33 = vector.broadcast %31 : vector<8x1x128xf32> to vector<8x8x128xf32>
    %34 = vector.broadcast %32 : vector<1x8x128xf32> to vector<8x8x128xf32>
    %35 = arith.addf %33, %34 : vector<8x8x128xf32>
    %cst_16 = arith.constant 0.000000e+00 : f32
    %36 = vector.broadcast %cst_16 : f32 to vector<8x8x128xf32>
    %37 = arith.cmpf ogt, %35, %36 : vector<8x8x128xf32>
    %cst_17 = arith.constant 2.000000e-01 : f32
    %38 = vector.broadcast %cst_17 : f32 to vector<8x8x128xf32>
    %39 = arith.mulf %38, %35 : vector<8x8x128xf32>
    %40 = arith.select %37, %35, %39 : vector<8x8x128xi1>, vector<8x8x128xf32>
    %41 = vector.shape_cast %40 : vector<8x8x128xf32> to vector<64x128xf32>
    %cst_18 = arith.constant dense<0.000000e+00> : vector<64x4xf32>
    %42 = tpu.matmul %41, %24, %cst_18 {dimension_numbers = #tpu.dot_dimension_numbers<[1], [0], [0], [1], [0, 0, 1, 1], [], []>} : vector<64x128xf32>, vector<128x4xf32>, vector<64x4xf32> -> vector<64x4xf32>
    %cst_19 = arith.constant 0.000000e+00 : f32
    %43 = vector.broadcast %cst_19 : f32 to vector<64x1xf32>
    %44 = arith.cmpf ogt, %12, %43 : vector<64x1xf32>
    %cst_20 = arith.constant -1.000000e+30 : f32
    %45 = vector.shape_cast %44 : vector<64x1xi1> to vector<64x1xi1>
    %46 = vector.broadcast %45 : vector<64x1xi1> to vector<64x4xi1>
    %47 = vector.broadcast %cst_20 : f32 to vector<64x4xf32>
    %48 = arith.select %46, %42, %47 : vector<64x4xi1>, vector<64x4xf32>
    %49 = vector.shape_cast %48 : vector<64x4xf32> to vector<8x8x4xf32>
    %50 = vector.shape_cast %12 : vector<64x1xf32> to vector<8x8x1xf32>
    %cst_21 = arith.constant dense<0xFF800000> : vector<8x4xf32>
    %51 = vector.multi_reduction <maximumf>, %49, %cst_21 [1] : vector<8x8x4xf32> to vector<8x4xf32>
    %52 = vector.shape_cast %51 : vector<8x4xf32> to vector<8x1x4xf32>
    %53 = vector.broadcast %52 : vector<8x1x4xf32> to vector<8x8x4xf32>
    %54 = arith.subf %49, %53 : vector<8x8x4xf32>
    %55 = math.exp %54 : vector<8x8x4xf32>
    %56 = vector.broadcast %50 : vector<8x8x1xf32> to vector<8x8x4xf32>
    %57 = arith.mulf %55, %56 : vector<8x8x4xf32>
    %cst_22 = arith.constant dense<0.000000e+00> : vector<8x4xf32>
    %58 = vector.multi_reduction <add>, %57, %cst_22 [1] : vector<8x8x4xf32> to vector<8x4xf32>
    %59 = vector.shape_cast %58 : vector<8x4xf32> to vector<8x1x4xf32>
    %60 = vector.broadcast %59 : vector<8x1x4xf32> to vector<8x8x4xf32>
    %61 = arith.divf %57, %60 : vector<8x8x4xf32>
    %62 = vector.shape_cast %61 : vector<8x8x4xf32> to vector<64x4xf32>
    %cst_23 = arith.constant dense<0.000000e+00> : vector<64x128xf32>
    %63 = tpu.matmul %62, %21, %cst_23 {dimension_numbers = #tpu.dot_dimension_numbers<[1], [0], [0], [1], [0, 0, 1, 1], [], []>} : vector<64x4xf32>, vector<4x128xf32>, vector<64x128xf32> -> vector<64x128xf32>
    %64 = vector.shape_cast %63 : vector<64x128xf32> to vector<8x8x128xf32>
    %65 = vector.shape_cast %29 : vector<8x128xf32> to vector<1x8x128xf32>
    %66 = vector.broadcast %65 : vector<1x8x128xf32> to vector<8x8x128xf32>
    %67 = arith.mulf %64, %66 : vector<8x8x128xf32>
    %cst_24 = arith.constant dense<0.000000e+00> : vector<8x128xf32>
    %68 = vector.multi_reduction <add>, %67, %cst_24 [1] : vector<8x8x128xf32> to vector<8x128xf32>
    %69 = vector.broadcast %25 : vector<1x128xf32> to vector<8x128xf32>
    %70 = arith.addf %68, %69 : vector<8x128xf32>
    %cst_25 = arith.constant 0.000000e+00 : f32
    %71 = vector.broadcast %cst_25 : f32 to vector<8x128xf32>
    %72 = arith.minimumf %70, %71 : vector<8x128xf32>
    %cst_26 = arith.constant 5.000000e-01 : f32
    %73 = vector.broadcast %cst_26 : f32 to vector<8x128xf32>
    %74 = arith.mulf %73, %72 : vector<8x128xf32>
    %75 = math.tanh %74 : vector<8x128xf32>
    %76 = math.exp %72 : vector<8x128xf32>
    %cst_27 = arith.constant 1.000000e+00 : f32
    %77 = vector.broadcast %cst_27 : f32 to vector<8x128xf32>
    %78 = arith.addf %76, %77 : vector<8x128xf32>
    %79 = arith.mulf %75, %78 : vector<8x128xf32>
    %cst_28 = arith.constant 0.000000e+00 : f32
    %80 = vector.broadcast %cst_28 : f32 to vector<8x128xf32>
    %81 = arith.cmpf ogt, %70, %80 : vector<8x128xf32>
    %82 = arith.select %81, %70, %79 : vector<8x128xi1>, vector<8x128xf32>
    %c208 = arith.constant 208 : index
    %c0_29 = arith.constant 0 : index
    %83 = vector.load %arg2[%c208, %c0_29] : memref<752x256xf32, #tpu.memory_space<vmem>>, vector<128x256xf32>
    %c336 = arith.constant 336 : index
    %c0_30 = arith.constant 0 : index
    %84 = vector.load %arg2[%c336, %c0_30] : memref<752x256xf32, #tpu.memory_space<vmem>>, vector<1x256xf32>
    %c344 = arith.constant 344 : index
    %c0_31 = arith.constant 0 : index
    %85 = vector.load %arg2[%c344, %c0_31] : memref<752x256xf32, #tpu.memory_space<vmem>>, vector<128x4xf32>
    %c472 = arith.constant 472 : index
    %c0_32 = arith.constant 0 : index
    %86 = vector.load %arg2[%c472, %c0_32] : memref<752x256xf32, #tpu.memory_space<vmem>>, vector<1x128xf32>
    %cst_33 = arith.constant dense<0.000000e+00> : vector<8x256xf32>
    %87 = tpu.matmul %82, %83, %cst_33 {dimension_numbers = #tpu.dot_dimension_numbers<[1], [0], [0], [1], [0, 0, 1, 1], [], []>} : vector<8x128xf32>, vector<128x256xf32>, vector<8x256xf32> -> vector<8x256xf32>
    %88 = vector.broadcast %84 : vector<1x256xf32> to vector<8x256xf32>
    %89 = arith.addf %87, %88 : vector<8x256xf32>
    %90 = vector.extract_strided_slice %89 {offsets = [0, 0], sizes = [8, 128], strides = [1, 1]} : vector<8x256xf32> to vector<8x128xf32>
    %91 = vector.extract_strided_slice %89 {offsets = [0, 128], sizes = [8, 128], strides = [1, 1]} : vector<8x256xf32> to vector<8x128xf32>
    %92 = vector.shape_cast %91 : vector<8x128xf32> to vector<8x1x128xf32>
    %93 = vector.shape_cast %90 : vector<8x128xf32> to vector<1x8x128xf32>
    %94 = vector.broadcast %92 : vector<8x1x128xf32> to vector<8x8x128xf32>
    %95 = vector.broadcast %93 : vector<1x8x128xf32> to vector<8x8x128xf32>
    %96 = arith.addf %94, %95 : vector<8x8x128xf32>
    %cst_34 = arith.constant 0.000000e+00 : f32
    %97 = vector.broadcast %cst_34 : f32 to vector<8x8x128xf32>
    %98 = arith.cmpf ogt, %96, %97 : vector<8x8x128xf32>
    %cst_35 = arith.constant 2.000000e-01 : f32
    %99 = vector.broadcast %cst_35 : f32 to vector<8x8x128xf32>
    %100 = arith.mulf %99, %96 : vector<8x8x128xf32>
    %101 = arith.select %98, %96, %100 : vector<8x8x128xi1>, vector<8x8x128xf32>
    %102 = vector.shape_cast %101 : vector<8x8x128xf32> to vector<64x128xf32>
    %cst_36 = arith.constant dense<0.000000e+00> : vector<64x4xf32>
    %103 = tpu.matmul %102, %85, %cst_36 {dimension_numbers = #tpu.dot_dimension_numbers<[1], [0], [0], [1], [0, 0, 1, 1], [], []>} : vector<64x128xf32>, vector<128x4xf32>, vector<64x4xf32> -> vector<64x4xf32>
    %cst_37 = arith.constant 0.000000e+00 : f32
    %104 = vector.broadcast %cst_37 : f32 to vector<64x1xf32>
    %105 = arith.cmpf ogt, %12, %104 : vector<64x1xf32>
    %cst_38 = arith.constant -1.000000e+30 : f32
    %106 = vector.shape_cast %105 : vector<64x1xi1> to vector<64x1xi1>
    %107 = vector.broadcast %106 : vector<64x1xi1> to vector<64x4xi1>
    %108 = vector.broadcast %cst_38 : f32 to vector<64x4xf32>
    %109 = arith.select %107, %103, %108 : vector<64x4xi1>, vector<64x4xf32>
    %110 = vector.shape_cast %109 : vector<64x4xf32> to vector<8x8x4xf32>
    %111 = vector.shape_cast %12 : vector<64x1xf32> to vector<8x8x1xf32>
    %cst_39 = arith.constant dense<0xFF800000> : vector<8x4xf32>
    %112 = vector.multi_reduction <maximumf>, %110, %cst_39 [1] : vector<8x8x4xf32> to vector<8x4xf32>
    %113 = vector.shape_cast %112 : vector<8x4xf32> to vector<8x1x4xf32>
    %114 = vector.broadcast %113 : vector<8x1x4xf32> to vector<8x8x4xf32>
    %115 = arith.subf %110, %114 : vector<8x8x4xf32>
    %116 = math.exp %115 : vector<8x8x4xf32>
    %117 = vector.broadcast %111 : vector<8x8x1xf32> to vector<8x8x4xf32>
    %118 = arith.mulf %116, %117 : vector<8x8x4xf32>
    %cst_40 = arith.constant dense<0.000000e+00> : vector<8x4xf32>
    %119 = vector.multi_reduction <add>, %118, %cst_40 [1] : vector<8x8x4xf32> to vector<8x4xf32>
    %120 = vector.shape_cast %119 : vector<8x4xf32> to vector<8x1x4xf32>
    %121 = vector.broadcast %120 : vector<8x1x4xf32> to vector<8x8x4xf32>
    %122 = arith.divf %118, %121 : vector<8x8x4xf32>
    %123 = vector.shape_cast %122 : vector<8x8x4xf32> to vector<64x4xf32>
    %cst_41 = arith.constant dense<0.000000e+00> : vector<64x128xf32>
    %124 = tpu.matmul %123, %21, %cst_41 {dimension_numbers = #tpu.dot_dimension_numbers<[1], [0], [0], [1], [0, 0, 1, 1], [], []>} : vector<64x4xf32>, vector<4x128xf32>, vector<64x128xf32> -> vector<64x128xf32>
    %125 = vector.shape_cast %124 : vector<64x128xf32> to vector<8x8x128xf32>
    %126 = vector.shape_cast %90 : vector<8x128xf32> to vector<1x8x128xf32>
    %127 = vector.broadcast %126 : vector<1x8x128xf32> to vector<8x8x128xf32>
    %128 = arith.mulf %125, %127 : vector<8x8x128xf32>
    %cst_42 = arith.constant dense<0.000000e+00> : vector<8x128xf32>
    %129 = vector.multi_reduction <add>, %128, %cst_42 [1] : vector<8x8x128xf32> to vector<8x128xf32>
    %130 = vector.broadcast %86 : vector<1x128xf32> to vector<8x128xf32>
    %131 = arith.addf %129, %130 : vector<8x128xf32>
    %cst_43 = arith.constant 0.000000e+00 : f32
    %132 = vector.broadcast %cst_43 : f32 to vector<8x128xf32>
    %133 = arith.minimumf %131, %132 : vector<8x128xf32>
    %cst_44 = arith.constant 5.000000e-01 : f32
    %134 = vector.broadcast %cst_44 : f32 to vector<8x128xf32>
    %135 = arith.mulf %134, %133 : vector<8x128xf32>
    %136 = math.tanh %135 : vector<8x128xf32>
    %137 = math.exp %133 : vector<8x128xf32>
    %cst_45 = arith.constant 1.000000e+00 : f32
    %138 = vector.broadcast %cst_45 : f32 to vector<8x128xf32>
    %139 = arith.addf %137, %138 : vector<8x128xf32>
    %140 = arith.mulf %136, %139 : vector<8x128xf32>
    %cst_46 = arith.constant 0.000000e+00 : f32
    %141 = vector.broadcast %cst_46 : f32 to vector<8x128xf32>
    %142 = arith.cmpf ogt, %131, %141 : vector<8x128xf32>
    %143 = arith.select %142, %131, %140 : vector<8x128xi1>, vector<8x128xf32>
    %c480 = arith.constant 480 : index
    %c0_47 = arith.constant 0 : index
    %144 = vector.load %arg2[%c480, %c0_47] : memref<752x256xf32, #tpu.memory_space<vmem>>, vector<128x64xf32>
    %c608 = arith.constant 608 : index
    %c0_48 = arith.constant 0 : index
    %145 = vector.load %arg2[%c608, %c0_48] : memref<752x256xf32, #tpu.memory_space<vmem>>, vector<1x64xf32>
    %c616 = arith.constant 616 : index
    %c0_49 = arith.constant 0 : index
    %146 = vector.load %arg2[%c616, %c0_49] : memref<752x256xf32, #tpu.memory_space<vmem>>, vector<32x1xf32>
    %c648 = arith.constant 648 : index
    %c0_50 = arith.constant 0 : index
    %147 = vector.load %arg2[%c648, %c0_50] : memref<752x256xf32, #tpu.memory_space<vmem>>, vector<1x32xf32>
    %cst_51 = arith.constant dense<0.000000e+00> : vector<8x64xf32>
    %148 = tpu.matmul %143, %144, %cst_51 {dimension_numbers = #tpu.dot_dimension_numbers<[1], [0], [0], [1], [0, 0, 1, 1], [], []>} : vector<8x128xf32>, vector<128x64xf32>, vector<8x64xf32> -> vector<8x64xf32>
    %149 = vector.broadcast %145 : vector<1x64xf32> to vector<8x64xf32>
    %150 = arith.addf %148, %149 : vector<8x64xf32>
    %151 = vector.extract_strided_slice %150 {offsets = [0, 0], sizes = [8, 32], strides = [1, 1]} : vector<8x64xf32> to vector<8x32xf32>
    %152 = vector.extract_strided_slice %150 {offsets = [0, 32], sizes = [8, 32], strides = [1, 1]} : vector<8x64xf32> to vector<8x32xf32>
    %153 = vector.shape_cast %152 : vector<8x32xf32> to vector<8x1x32xf32>
    %154 = vector.shape_cast %151 : vector<8x32xf32> to vector<1x8x32xf32>
    %155 = vector.broadcast %153 : vector<8x1x32xf32> to vector<8x8x32xf32>
    %156 = vector.broadcast %154 : vector<1x8x32xf32> to vector<8x8x32xf32>
    %157 = arith.addf %155, %156 : vector<8x8x32xf32>
    %cst_52 = arith.constant 0.000000e+00 : f32
    %158 = vector.broadcast %cst_52 : f32 to vector<8x8x32xf32>
    %159 = arith.cmpf ogt, %157, %158 : vector<8x8x32xf32>
    %cst_53 = arith.constant 2.000000e-01 : f32
    %160 = vector.broadcast %cst_53 : f32 to vector<8x8x32xf32>
    %161 = arith.mulf %160, %157 : vector<8x8x32xf32>
    %162 = arith.select %159, %157, %161 : vector<8x8x32xi1>, vector<8x8x32xf32>
    %163 = vector.shape_cast %162 : vector<8x8x32xf32> to vector<64x32xf32>
    %cst_54 = arith.constant dense<0.000000e+00> : vector<64x1xf32>
    %164 = tpu.matmul %163, %146, %cst_54 {dimension_numbers = #tpu.dot_dimension_numbers<[1], [0], [0], [1], [0, 0, 1, 1], [], []>} : vector<64x32xf32>, vector<32x1xf32>, vector<64x1xf32> -> vector<64x1xf32>
    %cst_55 = arith.constant 0.000000e+00 : f32
    %165 = vector.broadcast %cst_55 : f32 to vector<64x1xf32>
    %166 = arith.cmpf ogt, %12, %165 : vector<64x1xf32>
    %cst_56 = arith.constant -1.000000e+30 : f32
    %167 = vector.broadcast %cst_56 : f32 to vector<64x1xf32>
    %168 = arith.select %166, %164, %167 : vector<64x1xi1>, vector<64x1xf32>
    %169 = vector.shape_cast %168 : vector<64x1xf32> to vector<8x8x1xf32>
    %170 = vector.shape_cast %12 : vector<64x1xf32> to vector<8x8x1xf32>
    %cst_57 = arith.constant dense<0xFF800000> : vector<8x1xf32>
    %171 = vector.multi_reduction <maximumf>, %169, %cst_57 [1] : vector<8x8x1xf32> to vector<8x1xf32>
    %172 = vector.shape_cast %171 : vector<8x1xf32> to vector<8x1x1xf32>
    %173 = vector.broadcast %172 : vector<8x1x1xf32> to vector<8x8x1xf32>
    %174 = arith.subf %169, %173 : vector<8x8x1xf32>
    %175 = math.exp %174 : vector<8x8x1xf32>
    %176 = arith.mulf %175, %170 : vector<8x8x1xf32>
    %cst_58 = arith.constant dense<0.000000e+00> : vector<8x1xf32>
    %177 = vector.multi_reduction <add>, %176, %cst_58 [1] : vector<8x8x1xf32> to vector<8x1xf32>
    %178 = vector.shape_cast %177 : vector<8x1xf32> to vector<8x1x1xf32>
    %179 = vector.broadcast %178 : vector<8x1x1xf32> to vector<8x8x1xf32>
    %180 = arith.divf %176, %179 : vector<8x8x1xf32>
    %181 = vector.shape_cast %180 : vector<8x8x1xf32> to vector<8x8x1xf32>
    %182 = vector.broadcast %181 : vector<8x8x1xf32> to vector<8x8x32xf32>
    %183 = vector.shape_cast %151 : vector<8x32xf32> to vector<1x8x32xf32>
    %184 = vector.broadcast %183 : vector<1x8x32xf32> to vector<8x8x32xf32>
    %185 = arith.mulf %182, %184 : vector<8x8x32xf32>
    %cst_59 = arith.constant dense<0.000000e+00> : vector<8x32xf32>
    %186 = vector.multi_reduction <add>, %185, %cst_59 [1] : vector<8x8x32xf32> to vector<8x32xf32>
    %187 = vector.broadcast %147 : vector<1x32xf32> to vector<8x32xf32>
    %188 = arith.addf %186, %187 : vector<8x32xf32>
    %c8 = arith.constant 8 : index
    %c0_60 = arith.constant 0 : index
    %189 = vector.load %arg0[%c8, %c0_60] : memref<24x128xf32, #tpu.memory_space<vmem>>, vector<8x8xf32>
    %cst_61 = arith.constant dense<0.000000e+00> : vector<8x32xf32>
    %190 = tpu.matmul %189, %188, %cst_61 {dimension_numbers = #tpu.dot_dimension_numbers<[1], [0], [0], [1], [0, 0, 1, 1], [], []>} : vector<8x8xf32>, vector<8x32xf32>, vector<8x32xf32> -> vector<8x32xf32>
    %c16 = arith.constant 16 : index
    %c0_62 = arith.constant 0 : index
    %191 = vector.load %arg0[%c16, %c0_62] : memref<24x128xf32, #tpu.memory_space<vmem>>, vector<8x3xf32>
    %192 = vector.extract_strided_slice %191 {offsets = [0, 0], sizes = [8, 2], strides = [1, 1]} : vector<8x3xf32> to vector<8x2xf32>
    %c656 = arith.constant 656 : index
    %c0_63 = arith.constant 0 : index
    %193 = vector.load %arg2[%c656, %c0_63] : memref<752x256xf32, #tpu.memory_space<vmem>>, vector<2x32xf32>
    %cst_64 = arith.constant dense<0.000000e+00> : vector<8x32xf32>
    %194 = tpu.matmul %192, %193, %cst_64 {dimension_numbers = #tpu.dot_dimension_numbers<[1], [0], [0], [1], [0, 0, 1, 1], [], []>} : vector<8x2xf32>, vector<2x32xf32>, vector<8x32xf32> -> vector<8x32xf32>
    %c664 = arith.constant 664 : index
    %c0_65 = arith.constant 0 : index
    %195 = vector.load %arg2[%c664, %c0_65] : memref<752x256xf32, #tpu.memory_space<vmem>>, vector<1x32xf32>
    %196 = vector.broadcast %195 : vector<1x32xf32> to vector<8x32xf32>
    %197 = arith.addf %194, %196 : vector<8x32xf32>
    %198 = vector.extract_strided_slice %191 {offsets = [0, 2], sizes = [8, 1], strides = [1, 1]} : vector<8x3xf32> to vector<8x1xf32>
    %199 = vector.broadcast %198 : vector<8x1xf32> to vector<8x32xf32>
    %200 = arith.mulf %197, %199 : vector<8x32xf32>
    %c672 = arith.constant 672 : index
    %c0_66 = arith.constant 0 : index
    %201 = vector.load %arg2[%c672, %c0_66] : memref<752x256xf32, #tpu.memory_space<vmem>>, vector<64x128xf32>
    %202 = vector.extract_strided_slice %201 {offsets = [0, 0], sizes = [32, 128], strides = [1, 1]} : vector<64x128xf32> to vector<32x128xf32>
    %cst_67 = arith.constant dense<0.000000e+00> : vector<8x128xf32>
    %203 = tpu.matmul %190, %202, %cst_67 {dimension_numbers = #tpu.dot_dimension_numbers<[1], [0], [0], [1], [0, 0, 1, 1], [], []>} : vector<8x32xf32>, vector<32x128xf32>, vector<8x128xf32> -> vector<8x128xf32>
    %204 = vector.extract_strided_slice %201 {offsets = [32, 0], sizes = [32, 128], strides = [1, 1]} : vector<64x128xf32> to vector<32x128xf32>
    %cst_68 = arith.constant dense<0.000000e+00> : vector<8x128xf32>
    %205 = tpu.matmul %200, %204, %cst_68 {dimension_numbers = #tpu.dot_dimension_numbers<[1], [0], [0], [1], [0, 0, 1, 1], [], []>} : vector<8x32xf32>, vector<32x128xf32>, vector<8x128xf32> -> vector<8x128xf32>
    %206 = arith.addf %203, %205 : vector<8x128xf32>
    %c736 = arith.constant 736 : index
    %c0_69 = arith.constant 0 : index
    %207 = vector.load %arg2[%c736, %c0_69] : memref<752x256xf32, #tpu.memory_space<vmem>>, vector<1x128xf32>
    %208 = vector.broadcast %207 : vector<1x128xf32> to vector<8x128xf32>
    %209 = arith.addf %206, %208 : vector<8x128xf32>
    %c0_70 = arith.constant 0 : index
    %c0_71 = arith.constant 0 : index
    %210 = vector.load %arg3[%c0_70, %c0_71] : memref<8x128xf32, #tpu.memory_space<vmem>>, vector<8x128xf32>
    tpu.vector_store %arg3[%c0_70, %c0_71], %209 {strides = array<i32>} : memref<8x128xf32, #tpu.memory_space<vmem>>, vector<8x128xf32>,
    return
  }
}

</mosaic_0001>

<bundles_post_ra>
// kernel: tpu_custom_call.1
= control target key start
LH: loop header
LB: loop body
LE: loop exit
PB: predicated region body
PF: predicated region fallthrough
CT: control target
= control target key end

     0   :  { %8 = vsyncpa [#allocation3], 0  ;;  %s3382_s0 = inlined_call_operand.hbm [shape: f32[24,128], index: 0, kind: input, shape index: {}]   ;;  %s3383_s1 = inlined_call_operand.hbm [shape: s32[2,128], index: 1, kind: input, shape index: {}]   ;;  %s3384_s2 = inlined_call_operand.hbm [shape: f32[752,256], index: 2, kind: input, shape index: {}]   ;;  %s3385_s3 = inlined_call_operand.hbm [shape: f32[8,128], index: 3, kind: output, shape index: {}]  }
   0x1   :  { %9 = vsyncpa [#allocation6], 0  ;;  %s29_s14 = sshll.u32 %s3383_s1, 4  ;;  %s30_s14 = int_to_ptr.hbm [resolvable:$true] %s29_s14 }
   0x2   :  { %10 = vsyncpa [#allocation4], 0  ;;  %s2692_s15 = smov [#allocation5]   ;;  %s15_s19 = sshll.u32 %s3382_s0, 4  ;;  %s16_s19 = int_to_ptr.hbm [resolvable:$true] %s15_s19 }
   0x3   :  { %s31_s16 = sshll.u32 %s2692_s15, 4  ;;  %s2693_s20 = smov [#allocation2]   ;;  %s32_s16 = int_to_ptr.vmem [resolvable:$true] %s31_s16 }
   0x4   :  { %34 = dma.hbm_to_vmem [thread:$0]  %s30_s14, 32, %s32_s16, [#allocation6]  }
   0x5   :  { %s17_s21 = sshll.u32 %s2693_s20, 4  ;;  %s2694_s22 = smov 128   ;;  %s18_s21 = int_to_ptr.vmem [resolvable:$true] %s17_s21 }
   0x6   :  { %s2695_s23 = smov 8   ;;  %s39_s1 = sshll.u32 %s3384_s2, 4  ;;  %s40_s1 = int_to_ptr.hbm [resolvable:$true] %s39_s1 }
   0x7   :  { %23 = dma.hbm_to_vmem [thread:$0]  %s16_s19, 384, %s18_s21, [#allocation3], %s2694_s22, %s2694_s22, %s2695_s23  }
   0x8   :  { %s2696_s26 = smov [#allocation7]   ;;  %s2697_s28 = smov 256  }
   0x9   :  { %s41_s27 = sshll.u32 %s2696_s26, 4  ;;  %s2698_s29 = smov 16   ;;  %s42_s27 = int_to_ptr.vmem [resolvable:$true] %s41_s27 }
   0xa   :  { %47 = dma.hbm_to_vmem [thread:$0]  %s40_s1, 24064, %s42_s27, [#allocation6], %s2697_s28, %s2697_s28, %s2698_s29  }
   0xb   :  { %2686 = dma.done.wait [#allocation3], 384  }
   0xc   :  { %2687 = vsyncadd [#allocation3], 4294966912 }
   0xd   :  { %2688 = dma.done.wait [#allocation6], 24096  }
   0xe   :  { %2689 = vsyncadd [#allocation6], 4294943200  ;;  %v2699_v0 = vmov 1.0   ;;  %vm148_vm0 = vcmask 1043456   ;;  %v142_v1 = vld [vmem:[#allocation7 + $0x20] sm:$0xf]  ;;  %v64_v9 = vlaneseq }
   0xf   :  { %98 = vmatpush.msra.mxu0 %v2699_v0  ;;  %v141_v2 = vld [vmem:[#allocation7 + $0x10] sm:$0xff]  ;;  %2373 = vmatpush.msk.msra.mxu1 %vm148_vm0, %v142_v1  ;;  %v140_v3 = vld [vmem:[#allocation7] sm:$0xff]  ;;  %vm144_vm1 = vcmask 162816   ;;  %v61_v5 = vld [vmem:[#allocation5 + $0x1] sm:$0x1]  ;;  %vm3394_vm10 = vcmask 261120  }
  0x10   :  { %v139_v4 = vld [vmem:[#allocation2] sm:$0xff]  ;;  %v62_v6 = vmul.u32 8, %v61_v5  ;;  %v60_v7 = vld [vmem:[#allocation5] sm:$0x1]  ;;  %v65_v10 = vshrl.u32 %v64_v9, 7  ;;  %v180_v12 = vld [vmem:[#allocation7 + $0x70] sm:$0xff] }
  0x11   :  { %99 = vmatpush.msra.mxu0 %v2699_v0  ;;  %166 = vmatpush.msra.mxu1 %v141_v2  ;;  %v181_v13 = vld [vmem:[#allocation7 + $0x78] sm:$0xff]  ;;  %v178_v18 = vld [vmem:[#allocation7 + $0x60] sm:$0xff]  ;;  %v179_v19 = vld [vmem:[#allocation7 + $0x68] sm:$0xff]  ;;  %v2700_v33 = vmov 0   ;;  %s2701_s0 = smov 32   ;;  %s2702_s2 = smov 96  }
  0x12   :  { %v63_v8 = vadd.s32 %v62_v6, %v60_v7  ;;  %v66_v14 = vadd.s32 8, %v65_v10  ;;  %222 = vmatpush.msra.mxu2 %v180_v12  ;;  %242 = vmatpush.msra.mxu3 %v181_v13  ;;  %v67_v15 = vadd.s32 16, %v65_v10  ;;  %v68_v16 = vadd.s32 24, %v65_v10  ;;  %v176_v20 = vld [vmem:[#allocation7 + $0x50] sm:$0xff]  ;;  %v177_v21 = vld [vmem:[#allocation7 + $0x58] sm:$0xff]  ;;  %v174_v23 = vld [vmem:[#allocation7 + $0x40] sm:$0xff] }
  0x13   :  { %100 = vmatpush.msra.mxu0 %v2699_v0  ;;  %167 = vmatpush.msra.mxu1 %v140_v3  ;;  %v69_v17 = vadd.s32 32, %v65_v10  ;;  %v70_v22 = vadd.s32 40, %v65_v10  ;;  %v175_v24 = vld [vmem:[#allocation7 + $0x48] sm:$0xff]  ;;  %v71_v25 = vadd.s32 48, %v65_v10  ;;  %v72_v26 = vadd.s32 56, %v65_v10  ;;  %v199_v31 = vld [vmem:[#allocation7 + $0x180] sm:$0xff] }
  0x14   :  { %2374 = vmatmul.msk.f32.vlgmr.msra.gmra.mxu1 %vm144_vm1, %v139_v4  ;;  %v73_v11 = vperm.slane %v63_v8, 0  ;;  %223 = vmatpush.msra.mxu2 %v178_v18  ;;  %v143_v27 = vld [vmem:[#allocation7 + $0x30] ss:$0 sm:$0xff]  ;;  %v197_v34 = vld [vmem:[#allocation7 + $0x160] sm:$0xff]  ;;  %s2704_s30 = smov [#allocation8]   ;;  %s2346_s7 = sshll.u32 %s3385_s3, 4  ;;  %s2347_s7 = int_to_ptr.hbm [resolvable:$true] %s2346_s7 }
  0x15   :  { %101 = vmatpush.msra.mxu0 %v2699_v0  ;;  %243 = vmatpush.msra.mxu3 %v179_v19  ;;  %v198_v32 = vld [vmem:[#allocation7 + $0x170] sm:$0xff]  ;;  %v195_v37 = vld [vmem:[#allocation7 + $0x140] sm:$0xff]  ;;  %s2344_s4 = sshll.u32 %s2704_s30, 4  ;;  %s2345_s4 = int_to_ptr.vmem [resolvable:$true] %s2344_s4 }
  0x16   :  { %vm74_vm2 = vcmp.eq.s32.totalorder %v65_v10, %v73_v11  ;;  %vm75_vm3 = vcmp.eq.s32.totalorder %v66_v14, %v73_v11  ;;  %vm76_vm4 = vcmp.eq.s32.totalorder %v67_v15, %v73_v11  ;;  %vm77_vm5 = vcmp.eq.s32.totalorder %v68_v16, %v73_v11  ;;  %224 = vmatpush.msra.mxu2 %v176_v20  ;;  %v196_v36 = vld [vmem:[#allocation7 + $0x150] sm:$0xff]  ;;  %v193_v40 = vld [vmem:[#allocation7 + $0x120] sm:$0xff] }
  0x17   :  { %102 = vmatpush.msra.mxu0 %v2699_v0  ;;  %vm78_vm6 = vcmp.eq.s32.totalorder %v69_v17, %v73_v11  ;;  %244 = vmatpush.msra.mxu3 %v177_v21  ;;  %vm79_vm7 = vcmp.eq.s32.totalorder %v70_v22, %v73_v11  ;;  %vm80_vm8 = vcmp.eq.s32.totalorder %v71_v25, %v73_v11  ;;  %v194_v39 = vld [vmem:[#allocation7 + $0x130] sm:$0xff]  ;;  %v191_v44 = vld [vmem:[#allocation7 + $0x100] sm:$0xff] }
  0x18   :  { %225 = vmatpush.msra.mxu2 %v174_v23  ;;  %vm81_vm9 = vcmp.eq.s32.totalorder %v72_v26, %v73_v11  ;;  %2425 = vset.pattern.permute.xlu0 %v2700_v33  ;;  %v192_v43 = vld [vmem:[#allocation7 + $0x110] sm:$0xff]  ;;  %v189_v47 = vld [vmem:[#allocation7 + $0xe0] sm:$0xff] }
  0x19   :  { %103 = vmatpush.msra.mxu0 %v2699_v0  ;;  %245 = vmatpush.msra.mxu3 %v175_v24  ;;  %v190_v46 = vld [vmem:[#allocation7 + $0xf0] sm:$0xff]  ;;  %v187_v53 = vld [vmem:[#allocation7 + $0xc0] sm:$0xff] }
  0x1a   :  { %306 = vmatpush.msrb.mxu1 %v199_v31  ;;  %2426 = vset.pattern.permute.xlu1 %v2700_v33  ;;  %v188_v51 = vld [vmem:[#allocation7 + $0xd0] sm:$0xff]  ;;  %v185_v57 = vld [vmem:[#allocation7 + $0xa0] sm:$0xff] }
  0x1b   :  { %104 = vmatpush.msra.mxu0 %v2699_v0  ;;  %2427 = vset.pattern.permute.xlu2 %v2700_v33  ;;  %v186_v55 = vld [vmem:[#allocation7 + $0xb0] sm:$0xff]  ;;  %v183_v62 = vld [vmem:[#allocation7 + $0x80] ss:$8 sm:$0x3] }
  0x1c   :  { %307 = vmatpush.msrb.mxu1 %v198_v32  ;;  %v184_v58 = vld [vmem:[#allocation7 + $0x90] sm:$0xff]  ;;  %v202_v1 = vperm.slane %v183_v62, 0 }
  0x1d   :  { %105 = vmatpush.msra.mxu0 %v2699_v0 }
  0x1e   :  { %308 = vmatpush.msrb.mxu1 %v197_v34 }
  0x1f   :  { %106 = vmatpush.msra.mxu0 %v2699_v0 }
  0x20   :  { %309 = vmatpush.msrb.mxu1 %v196_v36 }
  0x21   :  { %107 = vmatpush.msra.mxu0 %v2699_v0 }
  0x22   :  { %310 = vmatpush.msrb.mxu1 %v195_v37 }
  0x23   :  { %108 = vmatpush.msra.mxu0 %v2699_v0 }
  0x24   :  { %311 = vmatpush.msrb.mxu1 %v194_v39 }
  0x25   :  { %109 = vmatpush.msra.mxu0 %v2699_v0 }
  0x26   :  { %312 = vmatpush.msrb.mxu1 %v193_v40 }
  0x27   :  { %110 = vmatpush.msra.mxu0 %v2699_v0 }
  0x28   :  { %313 = vmatpush.msrb.mxu1 %v192_v43 }
  0x29   :  { %111 = vmatpush.msra.mxu0 %v2699_v0 }
  0x2a   :  { %314 = vmatpush.msrb.mxu1 %v191_v44 }
  0x2b   :  { %112 = vmatpush.msra.mxu0 %v2699_v0 }
  0x2c   :  { %315 = vmatpush.msrb.mxu1 %v190_v46 }
  0x2d   :  { %113 = vmatpush.msra.mxu0 %v2699_v0 }
  0x2e   :  { %2365 = vmatmul.msk.f32.vlgmr.msra.gmra.mxu0 %vm74_vm2, %v2699_v0  ;;  %316 = vmatpush.msrb.mxu1 %v189_v47 }
  0x30   :  { %317 = vmatpush.msrb.mxu1 %v188_v51 }
  0x32   :  { %318 = vmatpush.msrb.mxu1 %v187_v53 }
  0x34   :  { %319 = vmatpush.msrb.mxu1 %v186_v55 }
  0x36   :  { %2366 = vmatmul.msk.f32.gmra.mxu0 %vm75_vm3, %v2699_v0  ;;  %320 = vmatpush.msrb.mxu1 %v185_v57 }
  0x38   :  { %321 = vmatpush.msrb.mxu1 %v184_v58 }
  0x3e   :  { %2367 = vmatmul.msk.f32.gmra.mxu0 %vm76_vm4, %v2699_v0 }
  0x46   :  { %2368 = vmatmul.msk.f32.gmra.mxu0 %vm77_vm5, %v2699_v0 }
  0x4e   :  { %2369 = vmatmul.msk.f32.gmra.mxu0 %vm78_vm6, %v2699_v0 }
  0x56   :  { %2370 = vmatmul.msk.f32.gmra.mxu0 %vm79_vm7, %v2699_v0 }
  0x5e   :  { %2371 = vmatmul.msk.f32.gmra.mxu0 %vm80_vm8, %v2699_v0 }
  0x66   :  { %2372 = vmatmul.msk.f32.gmra.mxu0 %vm81_vm9, %v2699_v0  ;;  %v203_v0 = vperm.slane %v183_v62, 1 }
  0x91   :  { %v169_v28 = vpop.f32.mrf.mxu1 }
  0x92   :  { %v170_v29 = vadd.f32 %v169_v28, %v143_v27 }
  0x94   :  { %v172_v30 = vmax.f32 %v170_v29, 0.0 }
  0x96   :  { %2375 = vmatmul.msk.f32.vlgmr.msra.gmra.mxu2 %vm3394_vm10, %v172_v30  ;;  %2376 = vmatmul.msk.f32.vlgmr.msra.gmra.mxu3 %vm3394_vm10, %v172_v30 }
  0xab   :  { %v2764_v35 = vpop.f32.mrf.mxu0 }
  0xac   :  { %vm3391_vm11 = vcmp.gt.f32.partialorder %v2764_v35, 0.0  ;;  %486 = vperm.xlu2 %2427, %v2764_v35  }
  0xad   :  { %v355_v38 = vsel %vm3391_vm11, 1, %v2700_v33 }
  0xae   :  { %364 = vperm.xlu0 %2425, %v355_v38  }
  0xb3   :  { %v2771_v41 = vpop.f32.mrf.mxu0 }
  0xb4   :  { %vm3389_vm12 = vcmp.gt.f32.partialorder %v2771_v41, 0.0 }
  0xb5   :  { %v356_v42 = vsel %vm3389_vm12, 1, %v2700_v33 }
  0xb6   :  { %367 = vperm.xlu0 %2425, %v356_v42  }
  0xbb   :  { %v2778_v45 = vpop.f32.mrf.mxu0 }
  0xbc   :  { %vm3393_vm13 = vcmp.gt.f32.partialorder %v2778_v45, 0.0 }
  0xbd   :  { %v357_v54 = vsel %vm3393_vm13, 1, %v2700_v33 }
  0xbe   :  { %491 = vperm.xlu0 %2425, %v2771_v41   ;;  %370 = vperm.xlu1 %2426, %v357_v54  }
  0xc3   :  { %v2780_v48 = vpop.f32.mrf.mxu0 }
  0xc4   :  { %vm3392_vm15 = vcmp.gt.f32.partialorder %v2780_v48, 0.0 }
  0xc5   :  { %v358_v59 = vsel %vm3392_vm15, 1, %v2700_v33 }
  0xc6   :  { %373 = vperm.xlu1 %2426, %v358_v59  }
  0xcb   :  { %v2782_v49 = vpop.f32.mrf.mxu0 }
  0xcc   :  { %vm3390_vm2 = vcmp.gt.f32.partialorder %v2782_v49, 0.0 }
  0xcd   :  { %v359_v63 = vsel %vm3390_vm2, 1, %v2700_v33 }
  0xce   :  { %376 = vperm.xlu2 %2427, %v359_v63  }
  0xd3   :  { %v2784_v50 = vpop.f32.mrf.mxu0 }
  0xd4   :  { %vm3388_vm1 = vcmp.gt.f32.partialorder %v2784_v50, 0.0 }
  0xd5   :  { %v360_v61 = vsel %vm3388_vm1, 1, %v2700_v33 }
  0xd6   :  { %379 = vperm.xlu1 %2426, %v360_v61   ;;  %496 = vperm.xlu2 %2427, %v2778_v45  }
  0xdb   :  { %v2786_v52 = vpop.f32.mrf.mxu0 }
  0xdc   :  { %vm3387_vm14 = vcmp.gt.f32.partialorder %v2786_v52, 0.0 }
  0xdd   :  { %v361_v56 = vsel %vm3387_vm14, 1, %v2700_v33 }
  0xde   :  { %382 = vperm.xlu0 %2425, %v361_v56   ;;  %501 = vperm.xlu1 %2426, %v2780_v48  }
  0xe3   :  { %v2801_v60 = vpop.f32.mrf.mxu0 }
  0xe4   :  { %vm3386_vm6 = vcmp.gt.f32.partialorder %v2801_v60, 0.0 }
  0xe5   :  { %v362_v24 = vsel %vm3386_vm6, 1, %v2700_v33 }
  0xe6   :  { %506 = vperm.xlu0 %2425, %v2782_v49   ;;  %511 = vperm.xlu1 %2426, %v2784_v50  }
  0xe7   :  { %385 = vperm.xlu2 %2427, %v362_v24  }
  0xee   :  { %521 = vperm.xlu0 %2425, %v2801_v60  }
  0xef   :  { %516 = vperm.xlu2 %2427, %v2786_v52  }
 0x119   :  { %v227_v2 = vpop.f32.mrf.mxu2  ;;  %v247_v3 = vpop.f32.mrf.mxu3 }
 0x11a   :  { %v248_v4 = vadd.f32 %v247_v3, %v203_v0  ;;  %v2813_v5 = vadd.f32 %v227_v2, %v202_v1 }
 0x11c   :  { %v258_v6 = vperm.slane %v248_v4, 0  ;;  %v251_v7 = vrot.slane %v248_v4, 1  ;;  %v252_v13 = vrot.slane %v248_v4, 2  ;;  %v253_v18 = vrot.slane %v248_v4, 3 }
 0x11d   :  { %v254_v23 = vrot.slane %v248_v4, 4  ;;  %v255_v29 = vrot.slane %v248_v4, 5  ;;  %v256_v36 = vrot.slane %v248_v4, 6  ;;  %v257_v40 = vrot.slane %v248_v4, 7 }
 0x11e   :  { %v274_v8 = vadd.f32 %v258_v6, %v2813_v5  ;;  %v259_v9 = vperm.slane %v251_v7, 0  ;;  %v260_v15 = vperm.slane %v252_v13, 0  ;;  %v261_v20 = vperm.slane %v253_v18, 0 }
 0x11f   :  { %v262_v26 = vperm.slane %v254_v23, 0  ;;  %v263_v31 = vperm.slane %v255_v29, 0  ;;  %v264_v37 = vperm.slane %v256_v36, 0  ;;  %v265_v43 = vperm.slane %v257_v40, 0 }
 0x120   :  { %vm282_vm3 = vcmp.gt.f32.partialorder %v274_v8, 0.0  ;;  %v290_v10 = vmul.f32 0.2, %v274_v8  ;;  %v275_v12 = vadd.f32 %v259_v9, %v2813_v5  ;;  %v276_v17 = vadd.f32 %v260_v15, %v2813_v5  ;;  %v2830_v53 = vpop.permute.xlu0 %364 }
 0x121   :  { %v277_v22 = vadd.f32 %v261_v20, %v2813_v5  ;;  %v278_v28 = vadd.f32 %v262_v26, %v2813_v5  ;;  %v279_v34 = vadd.f32 %v263_v31, %v2813_v5  ;;  %v280_v39 = vadd.f32 %v264_v37, %v2813_v5 }
 0x122   :  { %v298_v11 = vsel %vm282_vm3, %v274_v8, %v290_v10  ;;  %v291_v14 = vmul.f32 0.2, %v275_v12  ;;  %vm283_vm4 = vcmp.gt.f32.partialorder %v275_v12, 0.0  ;;  %v292_v19 = vmul.f32 0.2, %v276_v17 }
 0x123   :  { %322 = vmatmul.f32.vlgmr.msrb.gmra.mxu1 %v298_v11  ;;  %vm284_vm5 = vcmp.gt.f32.partialorder %v276_v17, 0.0  ;;  %v293_v25 = vmul.f32 0.2, %v277_v22  ;;  %vm285_vm7 = vcmp.gt.f32.partialorder %v277_v22, 0.0  ;;  %v294_v30 = vmul.f32 0.2, %v278_v28 }
 0x124   :  { %v299_v16 = vsel %vm283_vm4, %v275_v12, %v291_v14  ;;  %v300_v21 = vsel %vm284_vm5, %v276_v17, %v292_v19  ;;  %vm286_vm8 = vcmp.gt.f32.partialorder %v278_v28, 0.0  ;;  %v295_v33 = vmul.f32 0.2, %v279_v34  ;;  %v2848_v17 = vpop.permute.xlu2 %486 }
 0x125   :  { %v301_v27 = vsel %vm285_vm7, %v277_v22, %v293_v25  ;;  %v302_v32 = vsel %vm286_vm8, %v278_v28, %v294_v30  ;;  %vm287_vm9 = vcmp.gt.f32.partialorder %v279_v34, 0.0  ;;  %v296_v42 = vmul.f32 0.2, %v280_v39 }
 0x126   :  { %v303_v38 = vsel %vm287_vm9, %v279_v34, %v295_v33  ;;  %vm288_vm3 = vcmp.gt.f32.partialorder %v280_v39, 0.0  ;;  %v281_v46 = vadd.f32 %v265_v43, %v2813_v5  ;;  %vm387_vm5 = vcmp.eq.s32.totalorder %v2830_v53, 1  ;;  %v173_v43 = vld [vmem:[#allocation7 + $0x5d0] sm:$0xf] }
 0x127   :  { %v304_v44 = vsel %vm288_vm3, %v280_v39, %v296_v42  ;;  %vm403_vm7 = vcmask 31744   ;;  %2377 = vmatpush.msk.msrb.mxu2 %vm148_vm0, %v173_v43 }
 0x128   :  { %v297_v47 = vmul.f32 0.2, %v281_v46  ;;  %vm289_vm4 = vcmp.gt.f32.partialorder %v281_v46, 0.0  ;;  %v2836_v59 = vpop.permute.xlu0 %367 }
 0x129   :  { %vm388_vm8 = vcmp.eq.s32.totalorder %v2836_v59, 1 }
 0x12a   :  { %v305_v51 = vsel %vm289_vm4, %v281_v46, %v297_v47 }
 0x12b   :  { %325 = vmatmul.f32.gmra.mxu1 %v299_v16 }
 0x12c   :  { %v2861_v37 = vpop.permute.xlu2 %376 }
 0x12d   :  { %vm391_vm4 = vcmp.eq.s32.totalorder %v2861_v37, 1 }
 0x130   :  { %v2842_v4 = vpop.permute.xlu1 %370  ;;  %v2864_v46 = vpop.permute.xlu0 %491 }
 0x131   :  { %vm389_vm9 = vcmp.eq.s32.totalorder %v2842_v4, 1 }
 0x133   :  { %328 = vmatmul.f32.gmra.mxu1 %v300_v21 }
 0x138   :  { %v2850_v20 = vpop.permute.xlu1 %373 }
 0x139   :  { %vm390_vm3 = vcmp.eq.s32.totalorder %v2850_v20, 1 }
 0x13b   :  { %331 = vmatmul.f32.gmra.mxu1 %v301_v27 }
 0x143   :  { %334 = vmatmul.f32.gmra.mxu1 %v302_v32 }
 0x14b   :  { %337 = vmatmul.f32.gmra.mxu1 %v303_v38 }
 0x153   :  { %340 = vmatmul.f32.gmra.mxu1 %v304_v44 }
 0x15b   :  { %343 = vmatmul.f32.gmra.mxu1 %v305_v51 }
 0x1a0   :  { %v323_v54 = vpop.f32.mrf.mxu1 }
 0x1a1   :  { %v395_v55 = vsel %vm387_vm5, %v323_v54, -1e+30 }
 0x1a2   :  { %v404_v56 = vsel %vm403_vm7, %v395_v55, -inf }
 0x1a3   :  { %v405_v57 = vrot.slane %v404_v56, 4 }
 0x1a5   :  { %v406_v58 = vmax.f32 %v404_v56, %v405_v57 }
 0x1a7   :  { %v407_v61 = vrot.slane %v406_v58, 2 }
 0x1a8   :  { %v326_v62 = vpop.f32.mrf.mxu1 }
 0x1a9   :  { %v408_v63 = vmax.f32 %v406_v58, %v407_v61  ;;  %v396_v0 = vsel %vm388_vm8, %v326_v62, -1e+30 }
 0x1aa   :  { %v411_v1 = vsel %vm403_vm7, %v396_v0, -inf }
 0x1ab   :  { %v409_v2 = vrot.slane %v408_v63, 1  ;;  %v412_v3 = vrot.slane %v411_v1, 4 }
 0x1ad   :  { %v410_v6 = vmax.f32 %v408_v63, %v409_v2  ;;  %v413_v7 = vmax.f32 %v411_v1, %v412_v3 }
 0x1af   :  { %v460_v8 = vsub.f32 %v395_v55, %v410_v6  ;;  %v414_v9 = vrot.slane %v413_v7, 2  ;;  %v2875_v6 = vpop.permute.xlu1 %379 }
 0x1b0   :  { %v329_v10 = vpop.f32.mrf.mxu1  ;;  %vm392_vm6 = vcmp.eq.s32.totalorder %v2875_v6, 1 }
 0x1b1   :  { %v468_v11 = vmul.f32 1.442695, %v460_v8  ;;  %v415_v12 = vmax.f32 %v413_v7, %v414_v9  ;;  %v397_v13 = vsel %vm389_vm9, %v329_v10, -1e+30 }
 0x1b2   :  { %v418_v14 = vsel %vm403_vm7, %v397_v13, -inf }
 0x1b3   :  { %2429 = vpow2.f32 %v468_v11  ;;  %v416_v15 = vrot.slane %v415_v12, 1  ;;  %v419_v16 = vrot.slane %v418_v14, 4 }
 0x1b5   :  { %v417_v18 = vmax.f32 %v415_v12, %v416_v15  ;;  %v420_v19 = vmax.f32 %v418_v14, %v419_v16 }
 0x1b7   :  { %v461_v21 = vsub.f32 %v396_v0, %v417_v18  ;;  %v421_v22 = vrot.slane %v420_v19, 2  ;;  %v2884_v18 = vpop.permute.xlu2 %496 }
 0x1b8   :  { %v332_v23 = vpop.f32.mrf.mxu1 }
 0x1b9   :  { %v2430_v24 = vpop.eup %2429  ;;  %v470_v25 = vmul.f32 1.442695, %v461_v21  ;;  %v422_v26 = vmax.f32 %v420_v19, %v421_v22  ;;  %v398_v27 = vsel %vm390_vm3, %v332_v23, -1e+30 }
 0x1ba   :  { %v425_v28 = vsel %vm403_vm7, %v398_v27, -inf  ;;  %v2857_v29 = vmul.f32 %v2430_v24, %v2848_v17 }
 0x1bb   :  { %2431 = vpow2.f32 %v470_v25  ;;  %v423_v30 = vrot.slane %v422_v26, 1  ;;  %v426_v31 = vrot.slane %v425_v28, 4 }
 0x1bc   :  { %v532_v32 = vsel %vm403_vm7, %v2857_v29, 0.0 }
 0x1bd   :  { %v424_v34 = vmax.f32 %v422_v26, %v423_v30  ;;  %v427_v36 = vmax.f32 %v425_v28, %v426_v31  ;;  %v533_v33 = vrot.slane %v532_v32, 4  ;;  %v2891_v30 = vpop.permute.xlu0 %382 }
 0x1be   :  { %vm3396_vm14 = vcmp.eq.s32.totalorder %v2891_v30, 1 }
 0x1bf   :  { %v462_v38 = vsub.f32 %v397_v13, %v424_v34  ;;  %v428_v39 = vrot.slane %v427_v36, 2  ;;  %v534_v40 = vadd.f32 %v533_v33, %v532_v32 }
 0x1c0   :  { %v335_v42 = vpop.f32.mrf.mxu1 }
 0x1c1   :  { %v2432_v44 = vpop.eup %2431  ;;  %v472_v47 = vmul.f32 1.442695, %v462_v38  ;;  %v429_v51 = vmax.f32 %v427_v36, %v428_v39  ;;  %v399_v54 = vsel %vm391_vm4, %v335_v42, -1e+30  ;;  %v535_v55 = vrot.slane %v534_v40, 2 }
 0x1c2   :  { %v432_v56 = vsel %vm403_vm7, %v399_v54, -inf  ;;  %v2871_v57 = vmul.f32 %v2432_v44, %v2864_v46 }
 0x1c3   :  { %2433 = vpow2.f32 %v472_v47  ;;  %v430_v58 = vrot.slane %v429_v51, 1  ;;  %v433_v61 = vrot.slane %v432_v56, 4  ;;  %v536_v62 = vadd.f32 %v535_v55, %v534_v40  ;;  %v2895_v40 = vpop.permute.xlu1 %501 }
 0x1c4   :  { %v539_v63 = vsel %vm403_vm7, %v2871_v57, 0.0 }
 0x1c5   :  { %v431_v0 = vmax.f32 %v429_v51, %v430_v58  ;;  %v434_v1 = vmax.f32 %v432_v56, %v433_v61  ;;  %v537_v2 = vrot.slane %v536_v62, 1  ;;  %v540_v3 = vrot.slane %v539_v63, 4 }
 0x1c7   :  { %v463_v7 = vsub.f32 %v398_v27, %v431_v0  ;;  %v435_v8 = vrot.slane %v434_v1, 2  ;;  %v2877_v9 = vadd.f32 %v537_v2, %v536_v62  ;;  %v541_v10 = vadd.f32 %v540_v3, %v539_v63 }
 0x1c8   :  { %v338_v11 = vpop.f32.mrf.mxu1 }
 0x1c9   :  { %v2434_v12 = vpop.eup %2433  ;;  %v474_v13 = vmul.f32 1.442695, %v463_v7  ;;  %v436_v14 = vmax.f32 %v434_v1, %v435_v8  ;;  %v400_v15 = vsel %vm392_vm6, %v338_v11, -1e+30  ;;  %2435 = vrcp.f32 %v2877_v9  ;;  %v2914_v11 = vpop.permute.xlu2 %385 }
 0x1ca   :  { %v439_v16 = vsel %vm403_vm7, %v400_v15, -inf  ;;  %v542_v22 = vrot.slane %v541_v10, 2  ;;  %v2887_v23 = vmul.f32 %v2434_v12, %v2884_v18  ;;  %v599_v62 = vand.u32 2147483648, %v2877_v9 }
 0x1cb   :  { %2437 = vpow2.f32 %v474_v13  ;;  %v437_v19 = vrot.slane %v436_v14, 1  ;;  %v440_v21 = vrot.slane %v439_v16, 4  ;;  %v597_v0 = vand.u32 2147483647, %v2877_v9 }
 0x1cc   :  { %v543_v26 = vadd.f32 %v542_v22, %v541_v10  ;;  %v546_v27 = vsel %vm403_vm7, %v2887_v23, 0.0  ;;  %vm593_vm12 = vweird.f32 %v2877_v9  ;;  %vm3395_vm11 = vcmp.eq.s32.totalorder %v2914_v11, 1 }
 0x1cd   :  { %v438_v24 = vmax.f32 %v436_v14, %v437_v19  ;;  %v441_v25 = vmax.f32 %v439_v16, %v440_v21  ;;  %v547_v36 = vrot.slane %v546_v27, 4  ;;  %v600_v14 = vor.u32 1.1754944e-38, %v599_v62 }
 0x1ce   :  { %v544_v34 = vrot.slane %v543_v26, 1  ;;  %vm598_vm15 = vcmp.eq.f32.partialorder %v597_v0, 8.507059e+37 }
 0x1cf   :  { %v2436_v28 = vpop.eup %2435  ;;  %v464_v31 = vsub.f32 %v399_v54, %v438_v24  ;;  %v442_v32 = vrot.slane %v441_v25, 2  ;;  %v548_v55 = vadd.f32 %v547_v36, %v546_v27 }
 0x1d0   :  { %v341_v33 = vpop.f32.mrf.mxu1  ;;  %v589_v38 = vmul.f32 %v2436_v28, %v2877_v9  ;;  %v2901_v47 = vadd.f32 %v544_v34, %v543_v26  ;;  %vm594_vm1 = vweird.f32 %v2436_v28 }
 0x1d1   :  { %v2438_v39 = vpop.eup %2437  ;;  %v476_v42 = vmul.f32 1.442695, %v464_v31  ;;  %v443_v43 = vmax.f32 %v441_v25, %v442_v32  ;;  %v2899_v44 = vsel %vm3396_vm14, %v341_v33, -1e+30  ;;  %v549_v3 = vrot.slane %v548_v55, 2  ;;  %vm595_vm2 = vmor %vm593_vm12, %vm594_vm1  ;;  %v2921_v33 = vpop.permute.xlu0 %506 }
 0x1d2   :  { %v446_v51 = vsel %vm403_vm7, %v2899_v44, -inf  ;;  %v590_v54 = vsub.f32 1.0, %v589_v38  ;;  %v2906_v56 = vmul.f32 %v2438_v39, %v2895_v40 }
 0x1d3   :  { %2439 = vpow2.f32 %v476_v42  ;;  %v444_v58 = vrot.slane %v443_v43, 1  ;;  %v447_v61 = vrot.slane %v446_v51, 4  ;;  %v550_v16 = vadd.f32 %v549_v3, %v548_v55 }
 0x1d4   :  { %v591_v63 = vmul.f32 %v2436_v28, %v590_v54  ;;  %2441 = vrcp.f32 %v2901_v47  ;;  %v553_v7 = vsel %vm403_vm7, %v2906_v56, 0.0 }
 0x1d5   :  { %v445_v1 = vmax.f32 %v443_v43, %v444_v58  ;;  %v448_v2 = vmax.f32 %v446_v51, %v447_v61  ;;  %v554_v10 = vrot.slane %v553_v7, 4  ;;  %v551_v34 = vrot.slane %v550_v16, 1 }
 0x1d6   :  { %v592_v8 = vadd.f32 %v2436_v28, %v591_v63  ;;  %v614_v61 = vand.u32 2147483648, %v2901_v47 }
 0x1d7   :  { %v465_v12 = vsub.f32 %v400_v15, %v445_v1  ;;  %v449_v13 = vrot.slane %v448_v2, 2  ;;  %v555_v22 = vadd.f32 %v554_v10, %v553_v7  ;;  %v552_v42 = vadd.f32 %v551_v34, %v550_v16  ;;  %v2934_v7 = vpop.permute.xlu1 %511 }
 0x1d8   :  { %v344_v19 = vpop.f32.mrf.mxu1  ;;  %v596_v21 = vsel %vm595_vm2, %v2436_v28, %v592_v8 }
 0x1d9   :  { %v2440_v24 = vpop.eup %2439  ;;  %v478_v25 = vmul.f32 1.442695, %v465_v12  ;;  %v450_v26 = vmax.f32 %v448_v2, %v449_v13  ;;  %v402_v9 = vsel %vm3395_vm11, %v344_v19, -1e+30  ;;  %v601_v27 = vsel %vm598_vm15, %v600_v14, %v596_v21 }
 0x1da   :  { %v2442_v31 = vpop.eup %2441  ;;  %v453_v15 = vsel %vm403_vm7, %v402_v9, -inf  ;;  %v602_v32 = vmul.f32 %v601_v27, %v2857_v29  ;;  %v556_v36 = vrot.slane %v555_v22, 2  ;;  %v2926_v51 = vmul.f32 %v2440_v24, %v2921_v33 }
 0x1db   :  { %2443 = vpow2.f32 %v478_v25  ;;  %v451_v28 = vrot.slane %v450_v26, 1  ;;  %v454_v38 = vrot.slane %v453_v15, 4  ;;  %v604_v39 = vmul.f32 %v2442_v31, %v2901_v47 }
 0x1dc   :  { %2378 = vmatmul.msk.f32.vlgmr.msrb.gmra.mxu2 %vm403_vm7, %v602_v32  ;;  %v557_v43 = vadd.f32 %v556_v36, %v555_v22  ;;  %vm609_vm12 = vweird.f32 %v2442_v31  ;;  %v612_v29 = vand.u32 2147483647, %v2901_v47  ;;  %2445 = vrcp.f32 %v552_v42 }
 0x1dd   :  { %v452_v54 = vmax.f32 %v450_v26, %v451_v28  ;;  %v455_v55 = vmax.f32 %v453_v15, %v454_v38  ;;  %v605_v58 = vsub.f32 1.0, %v604_v39  ;;  %vm608_vm15 = vweird.f32 %v2901_v47 }
 0x1de   :  { %v558_v1 = vrot.slane %v557_v43, 1  ;;  %v560_v2 = vsel %vm403_vm7, %v2926_v51, 0.0  ;;  %vm610_vm1 = vmor %vm608_vm15, %vm609_vm12  ;;  %v615_v14 = vor.u32 1.1754944e-38, %v614_v61  ;;  %vm613_vm2 = vcmp.eq.f32.partialorder %v612_v29, 8.507059e+37 }
 0x1df   :  { %v466_v62 = vsub.f32 %v2899_v44, %v452_v54  ;;  %v456_v63 = vrot.slane %v455_v55, 2  ;;  %v606_v0 = vmul.f32 %v2442_v31, %v605_v58  ;;  %v561_v44 = vrot.slane %v560_v2, 4 }
 0x1e0   :  { %v2936_v13 = vadd.f32 %v558_v1, %v557_v43  ;;  %v627_v36 = vand.u32 2147483647, %v552_v42  ;;  %v2947_v43 = vpop.permute.xlu2 %516  ;;  %vm623_vm15 = vweird.f32 %v552_v42 }
 0x1e1   :  { %v2444_v3 = vpop.eup %2443  ;;  %v480_v8 = vmul.f32 1.442695, %v466_v62  ;;  %v457_v10 = vmax.f32 %v455_v55, %v456_v63  ;;  %v607_v12 = vadd.f32 %v2442_v31, %v606_v0  ;;  %v562_v27 = vadd.f32 %v561_v44, %v560_v2 }
 0x1e2   :  { %v2940_v16 = vmul.f32 %v2444_v3, %v2934_v7  ;;  %v2446_v21 = vpop.eup %2445 }
 0x1e3   :  { %2447 = vpow2.f32 %v480_v8  ;;  %v458_v47 = vrot.slane %v457_v10, 1  ;;  %v611_v19 = vsel %vm610_vm1, %v2442_v31, %v607_v12  ;;  %v619_v26 = vmul.f32 %v2446_v21, %v552_v42 }
 0x1e4   :  { %v616_v22 = vsel %vm613_vm2, %v615_v14, %v611_v19  ;;  %2449 = vrcp.f32 %v2936_v13  ;;  %v567_v15 = vsel %vm403_vm7, %v2940_v16, 0.0  ;;  %v629_v31 = vand.u32 2147483648, %v552_v42 }
 0x1e5   :  { %v459_v24 = vmax.f32 %v457_v10, %v458_v47  ;;  %v617_v25 = vmul.f32 %v616_v22, %v2871_v57  ;;  %v620_v34 = vsub.f32 1.0, %v619_v26  ;;  %v568_v28 = vrot.slane %v567_v15, 4  ;;  %v2958_v26 = vpop.permute.xlu0 %521 }
 0x1e6   :  { %v563_v38 = vrot.slane %v562_v27, 2  ;;  %vm624_vm12 = vweird.f32 %v2446_v21  ;;  %vm628_vm1 = vcmp.eq.f32.partialorder %v627_v36, 8.507059e+37  ;;  %v630_v63 = vor.u32 1.1754944e-38, %v629_v31 }
 0x1e7   :  { %v467_v32 = vsub.f32 %v402_v9, %v459_v24  ;;  %2379 = vmatmul.msk.f32.gmra.mxu2 %vm403_vm7, %v617_v25  ;;  %v621_v55 = vmul.f32 %v2446_v21, %v620_v34  ;;  %v569_v57 = vadd.f32 %v568_v28, %v567_v15  ;;  %vm625_vm2 = vmor %vm623_vm15, %vm624_vm12  ;;  %v642_v42 = vand.u32 2147483647, %v2936_v13 }
 0x1e8   :  { %v564_v29 = vadd.f32 %v563_v38, %v562_v27  ;;  %v644_v14 = vand.u32 2147483648, %v2936_v13  ;;  %vm638_vm15 = vweird.f32 %v2936_v13 }
 0x1e9   :  { %v2448_v39 = vpop.eup %2447  ;;  %v482_v54 = vmul.f32 1.442695, %v467_v32  ;;  %v622_v9 = vadd.f32 %v2446_v21, %v621_v55  ;;  %v570_v1 = vrot.slane %v569_v57, 2 }
 0x1ea   :  { %v2450_v58 = vpop.eup %2449  ;;  %v2950_v61 = vmul.f32 %v2448_v39, %v2947_v43  ;;  %v565_v0 = vrot.slane %v564_v29, 1  ;;  %v645_v32 = vor.u32 1.1754944e-38, %v644_v14 }
 0x1eb   :  { %2451 = vpow2.f32 %v482_v54  ;;  %v634_v62 = vmul.f32 %v2450_v58, %v2936_v13  ;;  %v626_v3 = vsel %vm625_vm2, %v2446_v21, %v622_v9  ;;  %v571_v47 = vadd.f32 %v570_v1, %v569_v57 }
 0x1ec   :  { %v574_v2 = vsel %vm403_vm7, %v2950_v61, 0.0  ;;  %v631_v12 = vsel %vm628_vm1, %v630_v63, %v626_v3  ;;  %v566_v44 = vadd.f32 %v565_v0, %v564_v29  ;;  %vm639_vm12 = vweird.f32 %v2450_v58 }
 0x1ed   :  { %v635_v8 = vsub.f32 1.0, %v634_v62  ;;  %v575_v10 = vrot.slane %v574_v2, 4  ;;  %v632_v19 = vmul.f32 %v631_v12, %v2887_v23  ;;  %v572_v27 = vrot.slane %v571_v47, 1  ;;  %vm640_vm1 = vmor %vm638_vm15, %vm639_vm12 }
 0x1ee   :  { %2453 = vrcp.f32 %v566_v44  ;;  %vm643_vm2 = vcmp.eq.f32.partialorder %v642_v42, 8.507059e+37  ;;  %v657_v1 = vand.u32 2147483647, %v566_v44  ;;  %vm653_vm15 = vweird.f32 %v566_v44 }
 0x1ef   :  { %v636_v22 = vmul.f32 %v2450_v58, %v635_v8  ;;  %v576_v24 = vadd.f32 %v575_v10, %v574_v2  ;;  %2380 = vmatmul.msk.f32.gmra.mxu2 %vm403_vm7, %v632_v19  ;;  %v573_v36 = vadd.f32 %v572_v27, %v571_v47 }
 0x1f1   :  { %v2452_v25 = vpop.eup %2451  ;;  %v637_v21 = vadd.f32 %v2450_v58, %v636_v22  ;;  %v577_v15 = vrot.slane %v576_v24, 2  ;;  %2455 = vrcp.f32 %v573_v36  ;;  %v674_v14 = vand.u32 2147483648, %v573_v36 }
 0x1f2   :  { %v2963_v34 = vmul.f32 %v2452_v25, %v2958_v26  ;;  %v672_v25 = vand.u32 2147483647, %v573_v36  ;;  %vm668_vm10 = vweird.f32 %v573_v36 }
 0x1f3   :  { %v641_v23 = vsel %vm640_vm1, %v2450_v58, %v637_v21  ;;  %v578_v28 = vadd.f32 %v577_v15, %v576_v24  ;;  %v659_v58 = vand.u32 2147483648, %v566_v44 }
 0x1f4   :  { %v646_v31 = vsel %vm643_vm2, %v645_v32, %v641_v23  ;;  %v581_v38 = vsel %vm403_vm7, %v2963_v34, 0.0  ;;  %v2454_v54 = vpop.eup %2453  ;;  %vm658_vm2 = vcmp.eq.f32.partialorder %v657_v1, 8.507059e+37 }
 0x1f5   :  { %v647_v39 = vmul.f32 %v646_v31, %v2906_v56  ;;  %v579_v13 = vrot.slane %v578_v28, 1  ;;  %v582_v55 = vrot.slane %v581_v38, 4  ;;  %v649_v57 = vmul.f32 %v2454_v54, %v566_v44 }
 0x1f6   :  { %vm654_vm12 = vweird.f32 %v2454_v54  ;;  %v660_v42 = vor.u32 1.1754944e-38, %v659_v58  ;;  %v675_v44 = vor.u32 1.1754944e-38, %v674_v14  ;;  %v940_v14 = vld [vmem:[#allocation7 + $0x280] sm:$0xff] }
 0x1f7   :  { %v580_v29 = vadd.f32 %v579_v13, %v578_v28  ;;  %v583_v9 = vadd.f32 %v582_v55, %v581_v38  ;;  %2381 = vmatmul.msk.f32.gmra.mxu2 %vm403_vm7, %v647_v39  ;;  %v650_v62 = vsub.f32 1.0, %v649_v57  ;;  %v2456_v63 = vpop.eup %2455  ;;  %vm655_vm1 = vmor %vm653_vm15, %vm654_vm12  ;;  %vm673_vm15 = vcmp.eq.f32.partialorder %v672_v25, 8.507059e+37  ;;  %v930_v25 = vld [vmem:[#allocation7 + $0x230] sm:$0xff] }
 0x1f8   :  { %v664_v3 = vmul.f32 %v2456_v63, %v573_v36  ;;  %vm669_vm13 = vweird.f32 %v2456_v63 }
 0x1f9   :  { %2457 = vrcp.f32 %v580_v29  ;;  %v651_v0 = vmul.f32 %v2454_v54, %v650_v62  ;;  %v584_v2 = vrot.slane %v583_v9, 2  ;;  %vm670_vm12 = vmor %vm668_vm10, %vm669_vm13  ;;  %v689_v39 = vand.u32 2147483648, %v580_v29 }
 0x1fa   :  { %v665_v10 = vsub.f32 1.0, %v664_v3 }
 0x1fb   :  { %v652_v8 = vadd.f32 %v2454_v54, %v651_v0  ;;  %v585_v56 = vadd.f32 %v584_v2, %v583_v9  ;;  %v690_v57 = vor.u32 1.1754944e-38, %v689_v39 }
 0x1fc   :  { %v666_v24 = vmul.f32 %v2456_v63, %v665_v10 }
 0x1fd   :  { %v656_v12 = vsel %vm655_vm1, %v2454_v54, %v652_v8  ;;  %v586_v47 = vrot.slane %v585_v56, 1 }
 0x1fe   :  { %v661_v22 = vsel %vm658_vm2, %v660_v42, %v656_v12  ;;  %v667_v32 = vadd.f32 %v2456_v63, %v666_v24  ;;  %vm683_vm2 = vweird.f32 %v580_v29  ;;  %v942_v12 = vld [vmem:[#allocation7 + $0x290] sm:$0xff]  ;;  %v932_v24 = vld [vmem:[#allocation7 + $0x240] sm:$0xff] }
 0x1ff   :  { %v2458_v19 = vpop.eup %2457  ;;  %v662_v21 = vmul.f32 %v661_v22, %v2926_v51  ;;  %v587_v15 = vadd.f32 %v586_v47, %v585_v56  ;;  %v687_v51 = vand.u32 2147483647, %v580_v29  ;;  %998 = vmatpush.msrb.mxu3 %v942_v12  ;;  %v936_v47 = vld [vmem:[#allocation7 + $0x260] sm:$0xff]  ;;  %v934_v22 = vld [vmem:[#allocation7 + $0x250] sm:$0xff] }
 0x200   :  { %v679_v27 = vmul.f32 %v2458_v19, %v580_v29  ;;  %v671_v28 = vsel %vm670_vm12, %v2456_v63, %v667_v32  ;;  %vm684_vm1 = vweird.f32 %v2458_v19 }
 0x201   :  { %2382 = vmatmul.msk.f32.gmra.mxu2 %vm403_vm7, %v662_v21  ;;  %2459 = vrcp.f32 %v587_v15  ;;  %v676_v31 = vsel %vm673_vm15, %v675_v44, %v671_v28  ;;  %vm685_vm11 = vmor %vm683_vm2, %vm684_vm1  ;;  %vm688_vm10 = vcmp.eq.f32.partialorder %v687_v51, 8.507059e+37  ;;  %v704_v0 = vand.u32 2147483648, %v587_v15  ;;  %999 = vmatpush.msrb.mxu3 %v940_v14  ;;  %v928_v21 = vld [vmem:[#allocation7 + $0x220] sm:$0xff]  ;;  %v926_v44 = vld [vmem:[#allocation7 + $0x210] sm:$0xff] }
 0x202   :  { %v680_v23 = vsub.f32 1.0, %v679_v27  ;;  %v677_v54 = vmul.f32 %v676_v31, %v2940_v16  ;;  %v702_v2 = vand.u32 2147483647, %v587_v15  ;;  %vm698_vm12 = vweird.f32 %v587_v15  ;;  %v924_v31 = vld [vmem:[#allocation7 + $0x200] sm:$0xff]  ;;  %v943_v14 = vld [vmem:[#allocation7 + $0x298] sm:$0xff] }
 0x203   :  { %v705_v3 = vor.u32 1.1754944e-38, %v704_v0  ;;  %v916_v0 = vld [vmem:[#allocation7 + $0x1c0] sm:$0xff] }
 0x204   :  { %v681_v38 = vmul.f32 %v2458_v19, %v680_v23 }
 0x206   :  { %v682_v13 = vadd.f32 %v2458_v19, %v681_v38 }
 0x207   :  { %v2460_v55 = vpop.eup %2459 }
 0x208   :  { %v686_v36 = vsel %vm685_vm11, %v2458_v19, %v682_v13  ;;  %v694_v9 = vmul.f32 %v2460_v55, %v587_v15  ;;  %vm699_vm13 = vweird.f32 %v2460_v55  ;;  %vm703_vm11 = vcmp.eq.f32.partialorder %v702_v2, 8.507059e+37 }
 0x209   :  { %2383 = vmatmul.msk.f32.gmra.mxu2 %vm403_vm7, %v677_v54  ;;  %v691_v62 = vsel %vm688_vm10, %v690_v57, %v686_v36  ;;  %vm700_vm15 = vmor %vm698_vm12, %vm699_vm13  ;;  %v922_v54 = vld [vmem:[#allocation7 + $0x1f0] sm:$0xff] }
 0x20a   :  { %v695_v58 = vsub.f32 1.0, %v694_v9  ;;  %v692_v1 = vmul.f32 %v691_v62, %v2950_v61  ;;  %v938_v61 = vld [vmem:[#allocation7 + $0x270] sm:$0xff] }
 0x20b   :  { %1000 = vmatpush.msrb.mxu3 %v938_v61  ;;  %v918_v9 = vld [vmem:[#allocation7 + $0x1d0] sm:$0xff] }
 0x20c   :  { %v696_v63 = vmul.f32 %v2460_v55, %v695_v58 }
 0x20d   :  { %1001 = vmatpush.msrb.mxu3 %v936_v47 }
 0x20e   :  { %v697_v16 = vadd.f32 %v2460_v55, %v696_v63 }
 0x20f   :  { %1002 = vmatpush.msrb.mxu3 %v934_v22 }
 0x210   :  { %v701_v29 = vsel %vm700_vm15, %v2460_v55, %v697_v16  ;;  %v920_v55 = vld [vmem:[#allocation7 + $0x1e0] sm:$0xff] }
 0x211   :  { %2384 = vmatmul.msk.f32.gmra.mxu2 %vm403_vm7, %v692_v1  ;;  %v706_v8 = vsel %vm703_vm11, %v705_v3, %v701_v29  ;;  %1003 = vmatpush.msrb.mxu3 %v932_v24  ;;  %v914_v29 = vld [vmem:[#allocation7 + $0x1b0] sm:$0xff]  ;;  %v941_v24 = vld [vmem:[#allocation7 + $0x288] sm:$0xff]  ;;  %vm977_vm11 = vcmask 1041409  }
 0x212   :  { %v707_v56 = vmul.f32 %v706_v8, %v2963_v34 }
 0x213   :  { %1004 = vmatpush.msrb.mxu3 %v930_v25 }
 0x215   :  { %1005 = vmatpush.msrb.mxu3 %v928_v21 }
 0x217   :  { %1006 = vmatpush.msrb.mxu3 %v926_v44 }
 0x219   :  { %2385 = vmatmul.msk.f32.gmra.mxu2 %vm403_vm7, %v707_v56  ;;  %1007 = vmatpush.msrb.mxu3 %v924_v31 }
 0x21b   :  { %1008 = vmatpush.msrb.mxu3 %v922_v54  ;;  %v935_v54 = vld [vmem:[#allocation7 + $0x258] sm:$0xff] }
 0x21d   :  { %1009 = vmatpush.msrb.mxu3 %v920_v55  ;;  %v933_v55 = vld [vmem:[#allocation7 + $0x248] sm:$0xff] }
 0x21f   :  { %1010 = vmatpush.msrb.mxu3 %v918_v9 }
 0x221   :  { %1011 = vmatpush.msrb.mxu3 %v916_v0 }
 0x223   :  { %1012 = vmatpush.msrb.mxu3 %v914_v29  ;;  %v929_v29 = vld [vmem:[#allocation7 + $0x228] sm:$0xff] }
 0x25f   :  { %v752_v42 = vpop.f32.mrf.mxu2 }
 0x260   :  { %v776_v34 = vmul.f32 %v752_v42, %v2813_v5  ;;  %v912_v42 = vld [vmem:[#allocation7 + $0x1a0] sm:$0xff] }
 0x261   :  { %1013 = vmatpush.msrb.mxu3 %v912_v42 }
 0x262   :  { %v784_v28 = vrot.slane %v776_v34, 4 }
 0x263   :  { %1018 = vmatpush.msra.mxu3 %v943_v14 }
 0x264   :  { %v785_v51 = vadd.f32 %v784_v28, %v776_v34  ;;  %v937_v28 = vld [vmem:[#allocation7 + $0x268] sm:$0xff] }
 0x265   :  { %1019 = vmatpush.msra.mxu3 %v941_v24 }
 0x266   :  { %v786_v63 = vrot.slane %v785_v51, 2 }
 0x268   :  { %v787_v56 = vadd.f32 %v786_v63, %v785_v51 }
 0x26a   :  { %v755_v10 = vpop.f32.mrf.mxu2  ;;  %v788_v25 = vrot.slane %v787_v56, 1 }
 0x26b   :  { %v777_v27 = vmul.f32 %v755_v10, %v2813_v5 }
 0x26c   :  { %v789_v31 = vadd.f32 %v788_v25, %v787_v56 }
 0x26d   :  { %v790_v38 = vrot.slane %v777_v27, 4 }
 0x26f   :  { %v791_v36 = vadd.f32 %v790_v38, %v777_v27 }
 0x271   :  { %v792_v1 = vrot.slane %v791_v36, 2 }
 0x272   :  { %v758_v19 = vpop.f32.mrf.mxu2 }
 0x273   :  { %v778_v32 = vmul.f32 %v758_v19, %v2813_v5  ;;  %v793_v10 = vadd.f32 %v792_v1, %v791_v36 }
 0x275   :  { %v796_v39 = vrot.slane %v778_v32, 4  ;;  %v794_v21 = vrot.slane %v793_v10, 1 }
 0x277   :  { %v797_v57 = vadd.f32 %v796_v39, %v778_v32  ;;  %v795_v51 = vadd.f32 %v794_v21, %v793_v10  ;;  %v927_v10 = vld [vmem:[#allocation7 + $0x218] sm:$0xff] }
 0x279   :  { %v798_v16 = vrot.slane %v797_v57, 2 }
 0x27a   :  { %v761_v15 = vpop.f32.mrf.mxu2 }
 0x27b   :  { %v779_v23 = vmul.f32 %v761_v15, %v2813_v5  ;;  %v799_v61 = vadd.f32 %v798_v16, %v797_v57  ;;  %v939_v15 = vld [vmem:[#allocation7 + $0x278] sm:$0xff] }
 0x27c   :  { %1020 = vmatpush.msra.mxu3 %v939_v15  ;;  %v923_v15 = vld [vmem:[#allocation7 + $0x1f8] sm:$0xff] }
 0x27d   :  { %v802_v13 = vrot.slane %v779_v23, 4  ;;  %v800_v32 = vrot.slane %v799_v61, 1 }
 0x27e   :  { %1021 = vmatpush.msra.mxu3 %v937_v28 }
 0x27f   :  { %v803_v62 = vadd.f32 %v802_v13, %v779_v23  ;;  %v2983_v13 = vld [vmem:[#allocation7 + $0x190] ss:$0 sm:$0xff]  ;;  %v801_v36 = vadd.f32 %v800_v32, %v799_v61 }
 0x280   :  { %1022 = vmatpush.msra.mxu3 %v935_v54  ;;  %v2986_v63 = vadd.f32 %v789_v31, %v2983_v13  ;;  %v2990_v16 = vadd.f32 %v795_v51, %v2983_v13 }
 0x281   :  { %v804_v3 = vrot.slane %v803_v62, 2 }
 0x282   :  { %1023 = vmatpush.msra.mxu3 %v933_v55  ;;  %vm897_vm1 = vcmp.gt.f32.partialorder %v2990_v16, 0.0 }
 0x283   :  { %v805_v47 = vadd.f32 %v804_v3, %v803_v62  ;;  %v2993_v3 = vadd.f32 %v801_v36, %v2983_v13 }
 0x284   :  { %v764_v58 = vpop.f32.mrf.mxu2 }
 0x285   :  { %v780_v2 = vmul.f32 %v764_v58, %v2813_v5  ;;  %v806_v23 = vrot.slane %v805_v47, 1  ;;  %v931_v58 = vld [vmem:[#allocation7 + $0x238] sm:$0xff]  ;;  %v842_v24 = vmin.f32 %v2993_v3, 0.0  ;;  %vm898_vm2 = vcmp.gt.f32.partialorder %v2993_v3, 0.0 }
 0x286   :  { %1024 = vmatpush.msra.mxu3 %v931_v58  ;;  %v919_v58 = vld [vmem:[#allocation7 + $0x1d8] sm:$0xff] }
 0x287   :  { %v808_v8 = vrot.slane %v780_v2, 4  ;;  %v807_v9 = vadd.f32 %v806_v23, %v805_v47  ;;  %v868_v54 = vmul.f32 1.442695, %v842_v24 }
 0x288   :  { %1025 = vmatpush.msra.mxu3 %v929_v29 }
 0x289   :  { %v809_v12 = vadd.f32 %v808_v8, %v780_v2  ;;  %v2996_v42 = vadd.f32 %v807_v9, %v2983_v13 }
 0x28a   :  { %1026 = vmatpush.msra.mxu3 %v927_v10 }
 0x28b   :  { %v810_v19 = vrot.slane %v809_v12, 2  ;;  %v843_v21 = vmin.f32 %v2996_v42, 0.0  ;;  %vm899_vm10 = vcmp.gt.f32.partialorder %v2996_v42, 0.0 }
 0x28c   :  { %v767_v22 = vpop.f32.mrf.mxu2 }
 0x28d   :  { %v781_v34 = vmul.f32 %v767_v22, %v2813_v5  ;;  %v811_v27 = vadd.f32 %v810_v19, %v809_v12  ;;  %v840_v12 = vmin.f32 %v2986_v63, 0.0  ;;  %v841_v19 = vmin.f32 %v2990_v16, 0.0  ;;  %v925_v22 = vld [vmem:[#allocation7 + $0x208] sm:$0xff] }
 0x28e   :  { %1027 = vmatpush.msra.mxu3 %v925_v22  ;;  %v870_v36 = vmul.f32 1.442695, %v843_v21  ;;  %v851_v10 = vmul.f32 0.5, %v843_v21  ;;  %v913_v22 = vld [vmem:[#allocation7 + $0x1a8] sm:$0xff] }
 0x28f   :  { %v814_v44 = vrot.slane %v781_v34, 4  ;;  %v812_v38 = vrot.slane %v811_v27, 1  ;;  %v864_v32 = vmul.f32 1.442695, %v840_v12  ;;  %v866_v31 = vmul.f32 1.442695, %v841_v19 }
 0x290   :  { %1028 = vmatpush.msra.mxu3 %v923_v15 }
 0x291   :  { %v815_v39 = vadd.f32 %v814_v44, %v781_v34  ;;  %v813_v0 = vadd.f32 %v812_v38, %v811_v27  ;;  %2461 = vpow2.f32 %v864_v32 }
 0x292   :  { %2463 = vpow2.f32 %v866_v31  ;;  %v961_v31 = vld [vmem:[#allocation7 + $0x3a0] sm:$0xff] }
 0x293   :  { %v816_v57 = vrot.slane %v815_v39, 2  ;;  %v3000_v14 = vadd.f32 %v813_v0, %v2983_v13  ;;  %2465 = vpow2.f32 %v868_v54  ;;  %1094 = vmatpush.msra.mxu2 %v961_v31 }
 0x294   :  { %v770_v62 = vpop.f32.mrf.mxu2  ;;  %2467 = vpow2.f32 %v870_v36 }
 0x295   :  { %v817_v1 = vadd.f32 %v816_v57, %v815_v39  ;;  %v782_v2 = vmul.f32 %v770_v62, %v2813_v5  ;;  %v844_v44 = vmin.f32 %v3000_v14, 0.0  ;;  %v921_v39 = vld [vmem:[#allocation7 + $0x1e8] sm:$0xff]  ;;  %vm900_vm13 = vcmp.gt.f32.partialorder %v3000_v14, 0.0 }
 0x296   :  { %1029 = vmatpush.msra.mxu3 %v921_v39  ;;  %v960_v39 = vld [vmem:[#allocation7 + $0x390] sm:$0xff] }
 0x297   :  { %v818_v8 = vrot.slane %v817_v1, 1  ;;  %v820_v56 = vrot.slane %v782_v2, 4  ;;  %v872_v57 = vmul.f32 1.442695, %v844_v44  ;;  %1095 = vmatpush.msra.mxu2 %v960_v39 }
 0x298   :  { %1030 = vmatpush.msra.mxu3 %v919_v58 }
 0x299   :  { %v819_v61 = vadd.f32 %v818_v8, %v817_v1  ;;  %v821_v47 = vadd.f32 %v820_v56, %v782_v2  ;;  %v917_v1 = vld [vmem:[#allocation7 + $0x1c8] sm:$0xff]  ;;  %v850_v8 = vmul.f32 0.5, %v842_v24  ;;  %v915_v56 = vld [vmem:[#allocation7 + $0x1b8] sm:$0xff]  ;;  %2469 = vpow2.f32 %v872_v57 }
 0x29a   :  { %1031 = vmatpush.msra.mxu3 %v917_v1  ;;  %v958_v1 = vld [vmem:[#allocation7 + $0x370] sm:$0xff] }
 0x29b   :  { %v3005_v25 = vadd.f32 %v819_v61, %v2983_v13  ;;  %v822_v34 = vrot.slane %v821_v47, 2 }
 0x29c   :  { %v773_v27 = vpop.f32.mrf.mxu2  ;;  %1032 = vmatpush.msra.mxu3 %v915_v56 }
 0x29d   :  { %v823_v23 = vadd.f32 %v822_v34, %v821_v47  ;;  %v783_v28 = vmul.f32 %v773_v27, %v2813_v5  ;;  %v845_v38 = vmin.f32 %v3005_v25, 0.0  ;;  %v849_v5 = vmul.f32 0.5, %v841_v19  ;;  %v2462_v34 = vpop.eup %2461 }
 0x29e   :  { %v852_v19 = vmul.f32 0.5, %v844_v44  ;;  %v2464_v32 = vpop.eup %2463  ;;  %1033 = vmatpush.msra.mxu3 %v913_v22  ;;  %vm901_vm12 = vcmp.gt.f32.partialorder %v3005_v25, 0.0 }
 0x29f   :  { %v824_v51 = vrot.slane %v823_v23, 1  ;;  %v826_v55 = vrot.slane %v783_v28, 4  ;;  %v874_v0 = vmul.f32 1.442695, %v845_v38  ;;  %v2466_v24 = vpop.eup %2465 }
 0x2a0   :  { %v2468_v54 = vpop.eup %2467 }
 0x2a1   :  { %v825_v9 = vadd.f32 %v824_v51, %v823_v23  ;;  %v827_v62 = vadd.f32 %v826_v55, %v783_v28  ;;  %2471 = vpow2.f32 %v874_v0  ;;  %v853_v23 = vmul.f32 0.5, %v845_v38  ;;  %v2470_v44 = vpop.eup %2469  ;;  %v959_v38 = vld [vmem:[#allocation7 + $0x380] sm:$0xff] }
 0x2a2   :  { %2473 = vtanh.f32 %v849_v5  ;;  %v848_v51 = vmul.f32 0.5, %v840_v12  ;;  %v881_v55 = vadd.f32 1.0, %v2464_v32  ;;  %v883_v58 = vadd.f32 1.0, %v2468_v54  ;;  %1096 = vmatpush.msra.mxu2 %v959_v38  ;;  %v955_v54 = vld [vmem:[#allocation7 + $0x340] sm:$0xff] }
 0x2a3   :  { %v3014_v2 = vadd.f32 %v825_v9, %v2983_v13  ;;  %v828_v29 = vrot.slane %v827_v62, 2  ;;  %2475 = vtanh.f32 %v850_v8  ;;  %v882_v9 = vadd.f32 1.0, %v2466_v24 }
 0x2a4   :  { %2477 = vtanh.f32 %v851_v10  ;;  %v884_v5 = vadd.f32 1.0, %v2470_v44  ;;  %v957_v10 = vld [vmem:[#allocation7 + $0x360] sm:$0xff]  ;;  %1097 = vmatpush.msra.mxu2 %v958_v1 }
 0x2a5   :  { %v846_v61 = vmin.f32 %v3014_v2, 0.0  ;;  %v829_v47 = vadd.f32 %v828_v29, %v827_v62  ;;  %vm902_vm15 = vcmp.gt.f32.partialorder %v3014_v2, 0.0 }
 0x2a6   :  { %1098 = vmatpush.msra.mxu2 %v957_v10 }
 0x2a7   :  { %v876_v27 = vmul.f32 1.442695, %v846_v61  ;;  %v830_v15 = vrot.slane %v829_v47, 1  ;;  %v854_v28 = vmul.f32 0.5, %v846_v61  ;;  %v2472_v57 = vpop.eup %2471 }
 0x2a8   :  { %v2474_v62 = vpop.eup %2473  ;;  %v885_v56 = vadd.f32 1.0, %v2472_v57  ;;  %v954_v57 = vld [vmem:[#allocation7 + $0x330] sm:$0xff] }
 0x2a9   :  { %v831_v21 = vadd.f32 %v830_v15, %v829_v47  ;;  %2479 = vpow2.f32 %v876_v27  ;;  %v2476_v12 = vpop.eup %2475  ;;  %v889_v8 = vmul.f32 %v2474_v62, %v881_v55  ;;  %v880_v27 = vadd.f32 1.0, %v2462_v34 }
 0x2aa   :  { %2481 = vtanh.f32 %v852_v19  ;;  %v2478_v29 = vpop.eup %2477  ;;  %v890_v47 = vmul.f32 %v2476_v12, %v882_v9 }
 0x2ab   :  { %v3020_v36 = vadd.f32 %v831_v21, %v2983_v13  ;;  %2483 = vtanh.f32 %v853_v23  ;;  %v891_v15 = vmul.f32 %v2478_v29, %v883_v58  ;;  %v956_v23 = vld [vmem:[#allocation7 + $0x350] sm:$0xff]  ;;  %v905_v31 = vsel %vm897_vm1, %v2990_v16, %v889_v8 }
 0x2ac   :  { %2485 = vtanh.f32 %v854_v28  ;;  %v906_v44 = vsel %vm898_vm2, %v2993_v3, %v890_v47  ;;  %1099 = vmatpush.msra.mxu2 %v956_v23  ;;  %v976_v9 = vrot.slane %v905_v31, 7  ;;  %vm896_vm1 = vcmp.gt.f32.partialorder %v2986_v63, 0.0  ;;  %v951_v23 = vld [vmem:[#allocation7 + $0x300] sm:$0xff]  ;;  %v946_v31 = vld [vmem:[#allocation7 + $0x2b0] sm:$0xff] }
 0x2ad   :  { %v847_v0 = vmin.f32 %v3020_v36, 0.0  ;;  %2487 = vtanh.f32 %v848_v51  ;;  %v907_v38 = vsel %vm899_vm10, %v2996_v42, %v891_v15  ;;  %v979_v62 = vrot.slane %v906_v44, 6  ;;  %v953_v15 = vld [vmem:[#allocation7 + $0x320] sm:$0xff] }
 0x2ae   :  { %1100 = vmatpush.msra.mxu2 %v955_v54  ;;  %vm980_vm2 = vcmask 1042434   ;;  %vm983_vm10 = vcmask 1043459   ;;  %vm903_vm14 = vcmp.gt.f32.partialorder %v3020_v36, 0.0  ;;  %v945_v54 = vld [vmem:[#allocation7 + $0x2a0] ss:$8 sm:$0x3] }
 0x2af   :  { %v878_v13 = vmul.f32 1.442695, %v847_v0  ;;  %v2480_v61 = vpop.eup %2479  ;;  %v855_v22 = vmul.f32 0.5, %v847_v0  ;;  %v982_v0 = vrot.slane %v907_v38, 5  ;;  %v964_v44 = vperm.slane %v945_v54, 0 }
 0x2b0   :  { %v2482_v19 = vpop.eup %2481  ;;  %v886_v32 = vadd.f32 1.0, %v2480_v61  ;;  %1101 = vmatpush.msra.mxu2 %v954_v57 }
 0x2b1   :  { %v2484_v24 = vpop.eup %2483  ;;  %v892_v28 = vmul.f32 %v2482_v19, %v884_v5  ;;  %2489 = vpow2.f32 %v878_v13 }
 0x2b2   :  { %v2486_v21 = vpop.eup %2485  ;;  %v893_v39 = vmul.f32 %v2484_v24, %v885_v56  ;;  %2491 = vtanh.f32 %v855_v22  ;;  %1102 = vmatpush.msra.mxu2 %v953_v15  ;;  %v949_v24 = vld [vmem:[#allocation7 + $0x2e0] sm:$0xff] }
 0x2b3   :  { %v2488_v51 = vpop.eup %2487  ;;  %v894_v34 = vmul.f32 %v2486_v21, %v886_v32  ;;  %v908_v16 = vsel %vm900_vm13, %v3000_v14, %v892_v28  ;;  %vm986_vm13 = vcmask 1044484   ;;  %v952_v32 = vld [vmem:[#allocation7 + $0x310] sm:$0xff]  ;;  %v947_v21 = vld [vmem:[#allocation7 + $0x2c0] sm:$0xff] }
 0x2b4   :  { %v888_v55 = vmul.f32 %v2488_v51, %v880_v27  ;;  %v909_v3 = vsel %vm901_vm12, %v3005_v25, %v893_v39  ;;  %v985_v12 = vrot.slane %v908_v16, 4  ;;  %vm989_vm12 = vcmask 1045509   ;;  %v2589_v27 = vld [vmem:[#allocation7 + $0x5d0] sm:$0xf]  ;;  %1103 = vmatpush.msra.mxu2 %v952_v32 }
 0x2b5   :  { %v910_v42 = vsel %vm902_vm15, %v3014_v2, %v894_v34  ;;  %v988_v8 = vrot.slane %v909_v3, 3  ;;  %vm992_vm15 = vcmask 1046534   ;;  %v948_v28 = vld [vmem:[#allocation7 + $0x2d0] sm:$0xff]  ;;  %v965_v51 = vperm.slane %v945_v54, 1 }
 0x2b6   :  { %v904_v1 = vsel %vm896_vm1, %v2986_v63, %v888_v55  ;;  %v991_v13 = vrot.slane %v910_v42, 2  ;;  %vm3397_vm1 = vcmask 1047559   ;;  %1104 = vmatpush.msra.mxu2 %v951_v23 }
 0x2b7   :  { %v2490_v58 = vpop.eup %2489  ;;  %v978_v29 = vsel %vm977_vm11, %v976_v9, %v904_v1 }
 0x2b8   :  { %v887_v14 = vadd.f32 1.0, %v2490_v58  ;;  %v2492_v5 = vpop.eup %2491  ;;  %v981_v56 = vsel %vm980_vm2, %v979_v62, %v978_v29 }
 0x2b9   :  { %v984_v2 = vsel %vm983_vm10, %v982_v0, %v981_v56 }
 0x2ba   :  { %v895_v25 = vmul.f32 %v2492_v5, %v887_v14  ;;  %v987_v10 = vsel %vm986_vm13, %v985_v12, %v984_v2 }
 0x2bb   :  { %v990_v61 = vsel %vm989_vm12, %v988_v8, %v987_v10 }
 0x2bc   :  { %v911_v63 = vsel %vm903_vm14, %v3020_v36, %v895_v25  ;;  %v993_v22 = vsel %vm992_vm15, %v991_v13, %v990_v61  ;;  %v950_v36 = vld [vmem:[#allocation7 + $0x2f0] sm:$0xff] }
 0x2bd   :  { %v994_v47 = vrot.slane %v911_v63, 1  ;;  %1105 = vmatpush.msra.mxu2 %v950_v36 }
 0x2bf   :  { %v996_v19 = vsel %vm3397_vm1, %v994_v47, %v993_v22  ;;  %1106 = vmatpush.msra.mxu2 %v949_v24 }
 0x2c0   :  { %1014 = vmatmul.f32.vlgmr.msrb.gmra.mxu3 %v996_v19 }
 0x2c1   :  { %2386 = vmatpush.msk.msrb.mxu3 %vm148_vm0, %v2589_v27  ;;  %1107 = vmatpush.msra.mxu2 %v948_v28 }
 0x2c3   :  { %1108 = vmatpush.msra.mxu2 %v947_v21 }
 0x2c5   :  { %1109 = vmatpush.msra.mxu2 %v946_v31 }
 0x2c8   :  { %1034 = vmatmul.f32.vlgmr.msra.gmra.mxu3 %v996_v19 }
 0x343   :  { %v1015_v39 = vpop.f32.mrf.mxu3 }
 0x344   :  { %v3047_v38 = vadd.f32 %v1015_v39, %v964_v44 }
 0x34b   :  { %v1035_v34 = vpop.f32.mrf.mxu3 }
 0x34c   :  { %v1036_v55 = vadd.f32 %v1035_v34, %v965_v51 }
 0x34e   :  { %v1046_v57 = vperm.slane %v1036_v55, 0  ;;  %v1039_v9 = vrot.slane %v1036_v55, 1  ;;  %v1040_v42 = vrot.slane %v1036_v55, 2  ;;  %v1041_v29 = vrot.slane %v1036_v55, 3 }
 0x34f   :  { %v1042_v2 = vrot.slane %v1036_v55, 4  ;;  %v1043_v22 = vrot.slane %v1036_v55, 5  ;;  %v1044_v23 = vrot.slane %v1036_v55, 6  ;;  %v1045_v31 = vrot.slane %v1036_v55, 7 }
 0x350   :  { %v1062_v16 = vadd.f32 %v1046_v57, %v3047_v38  ;;  %v1047_v62 = vperm.slane %v1039_v9, 0  ;;  %v1048_v14 = vperm.slane %v1040_v42, 0  ;;  %v1049_v25 = vperm.slane %v1041_v29, 0 }
 0x351   :  { %v1050_v10 = vperm.slane %v1042_v2, 0  ;;  %v1051_v27 = vperm.slane %v1043_v22, 0  ;;  %v1052_v24 = vperm.slane %v1044_v23, 0  ;;  %v1053_v54 = vperm.slane %v1045_v31, 0 }
 0x352   :  { %vm1070_vm0 = vcmp.gt.f32.partialorder %v1062_v16, 0.0  ;;  %v1078_v3 = vmul.f32 0.2, %v1062_v16  ;;  %v1063_v0 = vadd.f32 %v1047_v62, %v3047_v38  ;;  %v1064_v5 = vadd.f32 %v1048_v14, %v3047_v38 }
 0x353   :  { %v1065_v13 = vadd.f32 %v1049_v25, %v3047_v38  ;;  %v1066_v47 = vadd.f32 %v1050_v10, %v3047_v38  ;;  %v1067_v32 = vadd.f32 %v1051_v27, %v3047_v38  ;;  %v1068_v21 = vadd.f32 %v1052_v24, %v3047_v38 }
 0x354   :  { %v1086_v58 = vsel %vm1070_vm0, %v1062_v16, %v1078_v3  ;;  %v1079_v1 = vmul.f32 0.2, %v1063_v0  ;;  %vm1071_vm14 = vcmp.gt.f32.partialorder %v1063_v0, 0.0  ;;  %v1080_v8 = vmul.f32 0.2, %v1064_v5 }
 0x355   :  { %1110 = vmatmul.f32.vlgmr.msra.gmra.mxu2 %v1086_v58  ;;  %vm1072_vm1 = vcmp.gt.f32.partialorder %v1064_v5, 0.0  ;;  %v1081_v63 = vmul.f32 0.2, %v1065_v13  ;;  %vm1073_vm0 = vcmp.gt.f32.partialorder %v1065_v13, 0.0  ;;  %v1082_v19 = vmul.f32 0.2, %v1066_v47 }
 0x356   :  { %v1087_v12 = vsel %vm1071_vm14, %v1063_v0, %v1079_v1  ;;  %v1088_v56 = vsel %vm1072_vm1, %v1064_v5, %v1080_v8  ;;  %vm1074_vm14 = vcmp.gt.f32.partialorder %v1066_v47, 0.0  ;;  %v1083_v36 = vmul.f32 0.2, %v1067_v32 }
 0x357   :  { %v1089_v61 = vsel %vm1073_vm0, %v1065_v13, %v1081_v63  ;;  %v1090_v15 = vsel %vm1074_vm14, %v1066_v47, %v1082_v19  ;;  %vm1075_vm1 = vcmp.gt.f32.partialorder %v1067_v32, 0.0  ;;  %v1084_v39 = vmul.f32 0.2, %v1068_v21 }
 0x358   :  { %v1091_v28 = vsel %vm1075_vm1, %v1067_v32, %v1083_v36  ;;  %vm1076_vm0 = vcmp.gt.f32.partialorder %v1068_v21, 0.0  ;;  %v1069_v44 = vadd.f32 %v1053_v54, %v3047_v38 }
 0x359   :  { %v1092_v51 = vsel %vm1076_vm0, %v1068_v21, %v1084_v39 }
 0x35a   :  { %v1085_v34 = vmul.f32 0.2, %v1069_v44  ;;  %vm1077_vm14 = vcmp.gt.f32.partialorder %v1069_v44, 0.0 }
 0x35c   :  { %v1093_v57 = vsel %vm1077_vm14, %v1069_v44, %v1085_v34 }
 0x35d   :  { %1113 = vmatmul.f32.gmra.mxu2 %v1087_v12 }
 0x365   :  { %1116 = vmatmul.f32.gmra.mxu2 %v1088_v56 }
 0x36d   :  { %1119 = vmatmul.f32.gmra.mxu2 %v1089_v61 }
 0x375   :  { %1122 = vmatmul.f32.gmra.mxu2 %v1090_v15 }
 0x37d   :  { %1125 = vmatmul.f32.gmra.mxu2 %v1091_v28 }
 0x385   :  { %1128 = vmatmul.f32.gmra.mxu2 %v1092_v51 }
 0x38d   :  { %1131 = vmatmul.f32.gmra.mxu2 %v1093_v57 }
 0x3d8   :  { %v1111_v9 = vpop.f32.mrf.mxu2 }
 0x3d9   :  { %v1135_v16 = vsel %vm387_vm5, %v1111_v9, -1e+30 }
 0x3da   :  { %v1143_v62 = vsel %vm403_vm7, %v1135_v16, -inf }
 0x3db   :  { %v1144_v3 = vrot.slane %v1143_v62, 4 }
 0x3dd   :  { %v1145_v55 = vmax.f32 %v1143_v62, %v1144_v3 }
 0x3df   :  { %v1146_v58 = vrot.slane %v1145_v55, 2 }
 0x3e0   :  { %v1114_v0 = vpop.f32.mrf.mxu2 }
 0x3e1   :  { %v1147_v42 = vmax.f32 %v1145_v55, %v1146_v58  ;;  %v1136_v1 = vsel %vm388_vm8, %v1114_v0, -1e+30 }
 0x3e2   :  { %v1150_v14 = vsel %vm403_vm7, %v1136_v1, -inf }
 0x3e3   :  { %v1148_v12 = vrot.slane %v1147_v42, 1  ;;  %v1151_v5 = vrot.slane %v1150_v14, 4 }
 0x3e5   :  { %v1149_v29 = vmax.f32 %v1147_v42, %v1148_v12  ;;  %v1152_v8 = vmax.f32 %v1150_v14, %v1151_v5 }
 0x3e7   :  { %v1199_v25 = vsub.f32 %v1135_v16, %v1149_v29  ;;  %v1153_v56 = vrot.slane %v1152_v8, 2 }
 0x3e8   :  { %v1117_v53 = vpop.f32.mrf.mxu2 }
 0x3e9   :  { %v1207_v13 = vmul.f32 1.442695, %v1199_v25  ;;  %v1154_v2 = vmax.f32 %v1152_v8, %v1153_v56  ;;  %v1137_v63 = vsel %vm389_vm9, %v1117_v53, -1e+30 }
 0x3ea   :  { %v1157_v10 = vsel %vm403_vm7, %v1137_v63, -inf }
 0x3eb   :  { %2493 = vpow2.f32 %v1207_v13  ;;  %v1155_v61 = vrot.slane %v1154_v2, 1  ;;  %v1158_v59 = vrot.slane %v1157_v10, 4 }
 0x3ed   :  { %v1156_v47 = vmax.f32 %v1154_v2, %v1155_v61  ;;  %v1159_v22 = vmax.f32 %v1157_v10, %v1158_v59 }
 0x3ef   :  { %v1200_v19 = vsub.f32 %v1136_v1, %v1156_v47  ;;  %v1160_v27 = vrot.slane %v1159_v22, 2 }
 0x3f0   :  { %v1120_v15 = vpop.f32.mrf.mxu2 }
 0x3f1   :  { %v2494_v32 = vpop.eup %2493  ;;  %v1209_v23 = vmul.f32 1.442695, %v1200_v19  ;;  %v1161_v36 = vmax.f32 %v1159_v22, %v1160_v27  ;;  %v1138_v24 = vsel %vm390_vm3, %v1120_v15, -1e+30 }
 0x3f2   :  { %v3069_v28 = vmul.f32 %v2494_v32, %v2848_v17  ;;  %v1164_v4 = vsel %vm403_vm7, %v1138_v24, -inf }
 0x3f3   :  { %2495 = vpow2.f32 %v1209_v23  ;;  %v1162_v21 = vrot.slane %v1161_v36, 1  ;;  %v1165_v31 = vrot.slane %v1164_v4, 4 }
 0x3f4   :  { %v1231_v39 = vsel %vm403_vm7, %v3069_v28, 0.0 }
 0x3f5   :  { %v1232_v54 = vrot.slane %v1231_v39, 4  ;;  %v1163_v51 = vmax.f32 %v1161_v36, %v1162_v21  ;;  %v1166_v44 = vmax.f32 %v1164_v4, %v1165_v31 }
 0x3f7   :  { %v1233_v34 = vadd.f32 %v1232_v54, %v1231_v39  ;;  %v1201_v57 = vsub.f32 %v1137_v63, %v1163_v51  ;;  %v1167_v9 = vrot.slane %v1166_v44, 2 }
 0x3f8   :  { %v1123_v16 = vpop.f32.mrf.mxu2 }
 0x3f9   :  { %v2496_v20 = vpop.eup %2495  ;;  %v1234_v62 = vrot.slane %v1233_v34, 2  ;;  %v1211_v3 = vmul.f32 1.442695, %v1201_v57  ;;  %v1168_v17 = vmax.f32 %v1166_v44, %v1167_v9  ;;  %v1139_v55 = vsel %vm391_vm4, %v1123_v16, -1e+30 }
 0x3fa   :  { %v1171_v58 = vsel %vm403_vm7, %v1139_v55, -inf  ;;  %v3078_v0 = vmul.f32 %v2496_v20, %v2864_v46  ;;  %vm3399_vm4 = vcmp.eq.s32.totalorder %v2914_v11, 1 }
 0x3fb   :  { %v1235_v42 = vadd.f32 %v1234_v62, %v1233_v34  ;;  %2497 = vpow2.f32 %v1211_v3  ;;  %v1169_v1 = vrot.slane %v1168_v17, 1  ;;  %v1172_v14 = vrot.slane %v1171_v58, 4 }
 0x3fc   :  { %v1238_v12 = vsel %vm403_vm7, %v3078_v0, 0.0 }
 0x3fd   :  { %v1236_v5 = vrot.slane %v1235_v42, 1  ;;  %v1170_v29 = vmax.f32 %v1168_v17, %v1169_v1  ;;  %v1173_v8 = vmax.f32 %v1171_v58, %v1172_v14  ;;  %v1239_v25 = vrot.slane %v1238_v12, 4 }
 0x3ff   :  { %v1237_v56 = vadd.f32 %v1236_v5, %v1235_v42  ;;  %v1202_v53 = vsub.f32 %v1138_v24, %v1170_v29  ;;  %v1174_v37 = vrot.slane %v1173_v8, 2  ;;  %v1240_v13 = vadd.f32 %v1239_v25, %v1238_v12 }
 0x400   :  { %v1126_v2 = vpop.f32.mrf.mxu2 }
 0x401   :  { %v2498_v63 = vpop.eup %2497  ;;  %2499 = vrcp.f32 %v1237_v56  ;;  %v1213_v46 = vmul.f32 1.442695, %v1202_v53  ;;  %v1175_v10 = vmax.f32 %v1173_v8, %v1174_v37  ;;  %v1140_v61 = vsel %vm392_vm6, %v1126_v2, -1e+30 }
 0x402   :  { %v1241_v59 = vrot.slane %v1240_v13, 2  ;;  %v1178_v47 = vsel %vm403_vm7, %v1140_v61, -inf  ;;  %v3086_v22 = vmul.f32 %v2498_v63, %v2884_v18  ;;  %vm3398_vm6 = vcmp.eq.s32.totalorder %v2891_v30, 1 }
 0x403   :  { %2501 = vpow2.f32 %v1213_v46  ;;  %v1176_v19 = vrot.slane %v1175_v10, 1  ;;  %v1179_v27 = vrot.slane %v1178_v47, 4  ;;  %v1296_v62 = vand.u32 2147483647, %v1237_v56 }
 0x404   :  { %v1242_v15 = vadd.f32 %v1241_v59, %v1240_v13  ;;  %v1245_v32 = vsel %vm403_vm7, %v3086_v22, 0.0  ;;  %v1298_v3 = vand.u32 2147483648, %v1237_v56  ;;  %vm1292_vm8 = vweird.f32 %v1237_v56 }
 0x405   :  { %v1177_v23 = vmax.f32 %v1175_v10, %v1176_v19  ;;  %v1180_v36 = vmax.f32 %v1178_v47, %v1179_v27  ;;  %v1246_v4 = vrot.slane %v1245_v32, 4  ;;  %vm1297_vm3 = vcmp.eq.f32.partialorder %v1296_v62, 8.507059e+37 }
 0x406   :  { %v1243_v24 = vrot.slane %v1242_v15, 1  ;;  %v1299_v5 = vor.u32 1.1754944e-38, %v1298_v3 }
 0x407   :  { %v2500_v21 = vpop.eup %2499  ;;  %v1203_v31 = vsub.f32 %v1139_v55, %v1177_v23  ;;  %v1181_v39 = vrot.slane %v1180_v36, 2  ;;  %v1247_v44 = vadd.f32 %v1246_v4, %v1245_v32 }
 0x408   :  { %v1288_v6 = vmul.f32 %v2500_v21, %v1237_v56  ;;  %v1129_v54 = vpop.f32.mrf.mxu2  ;;  %v3094_v51 = vadd.f32 %v1243_v24, %v1242_v15  ;;  %vm1293_vm5 = vweird.f32 %v2500_v21 }
 0x409   :  { %v3092_v18 = vsel %vm3398_vm6, %v1129_v54, -1e+30  ;;  %v2502_v34 = vpop.eup %2501  ;;  %v1215_v9 = vmul.f32 1.442695, %v1203_v31  ;;  %v1182_v16 = vmax.f32 %v1180_v36, %v1181_v39  ;;  %v1248_v42 = vrot.slane %v1247_v44, 2  ;;  %vm1294_vm9 = vmor %vm1292_vm8, %vm1293_vm5 }
 0x40a   :  { %v1289_v57 = vsub.f32 1.0, %v1288_v6  ;;  %v1185_v20 = vsel %vm403_vm7, %v3092_v18, -inf  ;;  %2503 = vrcp.f32 %v3094_v51  ;;  %v3100_v1 = vmul.f32 %v2502_v34, %v2895_v40 }
 0x40b   :  { %v1186_v17 = vrot.slane %v1185_v20, 4  ;;  %2505 = vpow2.f32 %v1215_v9  ;;  %v1183_v30 = vrot.slane %v1182_v16, 1  ;;  %v1249_v8 = vadd.f32 %v1248_v42, %v1247_v44 }
 0x40c   :  { %v1290_v55 = vmul.f32 %v2500_v21, %v1289_v57  ;;  %v1252_v25 = vsel %vm403_vm7, %v3100_v1, 0.0  ;;  %v1311_v31 = vand.u32 2147483647, %v3094_v51  ;;  %vm1307_vm0 = vweird.f32 %v3094_v51 }
 0x40d   :  { %v1187_v58 = vmax.f32 %v1185_v20, %v1186_v17  ;;  %v1184_v12 = vmax.f32 %v1182_v16, %v1183_v30  ;;  %v1253_v2 = vrot.slane %v1252_v25, 4  ;;  %v1250_v56 = vrot.slane %v1249_v8, 1 }
 0x40e   :  { %v1291_v14 = vadd.f32 %v2500_v21, %v1290_v55  ;;  %vm1312_vm6 = vcmp.eq.f32.partialorder %v1311_v31, 8.507059e+37 }
 0x40f   :  { %v1188_v29 = vrot.slane %v1187_v58, 2  ;;  %v1204_v37 = vsub.f32 %v1140_v61, %v1184_v12  ;;  %v3109_v61 = vadd.f32 %v1250_v56, %v1249_v8  ;;  %v1254_v24 = vadd.f32 %v1253_v2, %v1252_v25 }
 0x410   :  { %v1295_v53 = vsel %vm1294_vm9, %v2500_v21, %v1291_v14  ;;  %v1132_v13 = vpop.f32.mrf.mxu2  ;;  %v2504_v63 = vpop.eup %2503 }
 0x411   :  { %v1300_v46 = vsel %vm1297_vm3, %v1299_v5, %v1295_v53  ;;  %v1189_v10 = vmax.f32 %v1187_v58, %v1188_v29  ;;  %v1142_v40 = vsel %vm3399_vm4, %v1132_v13, -1e+30  ;;  %v2506_v59 = vpop.eup %2505  ;;  %v1217_v19 = vmul.f32 1.442695, %v1204_v37 }
 0x412   :  { %v1301_v47 = vmul.f32 %v1300_v46, %v3069_v28  ;;  %v1192_v27 = vsel %vm403_vm7, %v1142_v40, -inf  ;;  %v1303_v15 = vmul.f32 %v2504_v63, %v3094_v51  ;;  %v3113_v11 = vmul.f32 %v2506_v59, %v2921_v33 }
 0x413   :  { %v1190_v32 = vrot.slane %v1189_v10, 1  ;;  %v1193_v23 = vrot.slane %v1192_v27, 4  ;;  %2507 = vpow2.f32 %v1217_v19  ;;  %v1313_v28 = vand.u32 2147483648, %v3094_v51 }
 0x414   :  { %2387 = vmatmul.msk.f32.vlgmr.msrb.gmra.mxu3 %vm403_vm7, %v1301_v47  ;;  %v1304_v36 = vsub.f32 1.0, %v1303_v15  ;;  %2509 = vrcp.f32 %v3109_v61  ;;  %vm1308_vm1 = vweird.f32 %v2504_v63  ;;  %v1255_v39 = vrot.slane %v1254_v24, 2 }
 0x415   :  { %v1191_v4 = vmax.f32 %v1189_v10, %v1190_v32  ;;  %v1194_v21 = vmax.f32 %v1192_v27, %v1193_v23  ;;  %v1259_v34 = vsel %vm403_vm7, %v3113_v11, 0.0  ;;  %vm1309_vm14 = vmor %vm1307_vm0, %vm1308_vm1  ;;  %v1314_v20 = vor.u32 1.1754944e-38, %v1313_v28 }
 0x416   :  { %v1305_v6 = vmul.f32 %v2504_v63, %v1304_v36  ;;  %v1256_v33 = vadd.f32 %v1255_v39, %v1254_v24  ;;  %v1260_v62 = vrot.slane %v1259_v34, 4  ;;  %v1328_v37 = vand.u32 2147483648, %v3109_v61 }
 0x417   :  { %v1205_v54 = vsub.f32 %v3092_v18, %v1191_v4  ;;  %v1195_v44 = vrot.slane %v1194_v21, 2  ;;  %vm1322_vm8 = vweird.f32 %v3109_v61 }
 0x418   :  { %v1306_v57 = vadd.f32 %v2504_v63, %v1305_v6  ;;  %v1257_v55 = vrot.slane %v1256_v33, 1  ;;  %v1261_v42 = vadd.f32 %v1260_v62, %v1259_v34  ;;  %v1329_v19 = vor.u32 1.1754944e-38, %v1328_v37 }
 0x419   :  { %v1219_v9 = vmul.f32 1.442695, %v1205_v54  ;;  %v1196_v16 = vmax.f32 %v1194_v21, %v1195_v44  ;;  %v2508_v3 = vpop.eup %2507 }
 0x41a   :  { %v1310_v17 = vsel %vm1309_vm14, %v2504_v63, %v1306_v57  ;;  %v2510_v30 = vpop.eup %2509  ;;  %v1258_v51 = vadd.f32 %v1257_v55, %v1256_v33  ;;  %v1262_v29 = vrot.slane %v1261_v42, 2  ;;  %v3125_v8 = vmul.f32 %v2508_v3, %v2934_v7 }
 0x41b   :  { %2511 = vpow2.f32 %v1219_v9  ;;  %v1197_v18 = vrot.slane %v1196_v16, 1  ;;  %v1315_v58 = vsel %vm1312_vm6, %v1314_v20, %v1310_v17  ;;  %v1318_v12 = vmul.f32 %v2510_v30, %v3109_v61 }
 0x41c   :  { %v1316_v14 = vmul.f32 %v1315_v58, %v3078_v0  ;;  %2513 = vrcp.f32 %v1258_v51  ;;  %v1263_v13 = vadd.f32 %v1262_v29, %v1261_v42  ;;  %v1266_v2 = vsel %vm403_vm7, %v3125_v8, 0.0 }
 0x41d   :  { %v1198_v5 = vmax.f32 %v1196_v16, %v1197_v18  ;;  %v1319_v25 = vsub.f32 1.0, %v1318_v12  ;;  %vm1323_vm5 = vweird.f32 %v2510_v30  ;;  %v1326_v63 = vand.u32 2147483647, %v3109_v61 }
 0x41e   :  { %2388 = vmatmul.msk.f32.gmra.mxu3 %vm403_vm7, %v1316_v14  ;;  %v1267_v46 = vrot.slane %v1266_v2, 4  ;;  %v1264_v7 = vrot.slane %v1263_v13, 1  ;;  %vm1324_vm9 = vmor %vm1322_vm8, %vm1323_vm5  ;;  %v1341_v6 = vand.u32 2147483647, %v1258_v51  ;;  %v1343_v31 = vand.u32 2147483648, %v1258_v51 }
 0x41f   :  { %v1206_v53 = vsub.f32 %v1142_v40, %v1198_v5  ;;  %v1320_v0 = vmul.f32 %v2510_v30, %v1319_v25  ;;  %vm1327_vm3 = vcmp.eq.f32.partialorder %v1326_v63, 8.507059e+37  ;;  %vm1337_vm1 = vweird.f32 %v1258_v51 }
 0x420   :  { %v1268_v47 = vadd.f32 %v1267_v46, %v1266_v2  ;;  %v1265_v27 = vadd.f32 %v1264_v7, %v1263_v13  ;;  %v1344_v20 = vor.u32 1.1754944e-38, %v1343_v31  ;;  %vm1342_vm14 = vcmp.eq.f32.partialorder %v1341_v6, 8.507059e+37 }
 0x421   :  { %v2512_v10 = vpop.eup %2511  ;;  %v1221_v56 = vmul.f32 1.442695, %v1206_v53  ;;  %v1321_v59 = vadd.f32 %v2510_v30, %v1320_v0 }
 0x422   :  { %v3134_v40 = vmul.f32 %v2512_v10, %v2947_v43  ;;  %v2514_v15 = vpop.eup %2513  ;;  %v1269_v23 = vrot.slane %v1268_v47, 2  ;;  %v1358_v58 = vand.u32 2147483648, %v1265_v27  ;;  %v1356_v12 = vand.u32 2147483647, %v1265_v27 }
 0x423   :  { %2515 = vpow2.f32 %v1221_v56  ;;  %v1325_v32 = vsel %vm1324_vm9, %v2510_v30, %v1321_v59  ;;  %v1333_v4 = vmul.f32 %v2514_v15, %v1258_v51  ;;  %vm1338_vm4 = vweird.f32 %v2514_v15 }
 0x424   :  { %v1273_v36 = vsel %vm403_vm7, %v3134_v40, 0.0  ;;  %v1330_v24 = vsel %vm1327_vm3, %v1329_v19, %v1325_v32  ;;  %2517 = vrcp.f32 %v1265_v27  ;;  %v1270_v28 = vadd.f32 %v1269_v23, %v1268_v47  ;;  %vm1339_vm0 = vmor %vm1337_vm1, %vm1338_vm4 }
 0x425   :  { %v1331_v61 = vmul.f32 %v1330_v24, %v3086_v22  ;;  %v1334_v21 = vsub.f32 1.0, %v1333_v4  ;;  %v1274_v43 = vrot.slane %v1273_v36, 4  ;;  %vm1352_vm5 = vweird.f32 %v1265_v27 }
 0x426   :  { %v1271_v44 = vrot.slane %v1270_v28, 1  ;;  %v1359_v37 = vor.u32 1.1754944e-38, %v1358_v58  ;;  %vm1357_vm9 = vcmp.eq.f32.partialorder %v1356_v12, 8.507059e+37 }
 0x427   :  { %2389 = vmatmul.msk.f32.gmra.mxu3 %vm403_vm7, %v1331_v61  ;;  %v1335_v54 = vmul.f32 %v2514_v15, %v1334_v21  ;;  %v1275_v34 = vadd.f32 %v1274_v43, %v1273_v36 }
 0x428   :  { %v1272_v16 = vadd.f32 %v1271_v44, %v1270_v28 }
 0x429   :  { %v2516_v39 = vpop.eup %2515  ;;  %v1336_v9 = vadd.f32 %v2514_v15, %v1335_v54  ;;  %v1276_v22 = vrot.slane %v1275_v34, 2 }
 0x42a   :  { %v3141_v57 = vmul.f32 %v2516_v39, %v2958_v26  ;;  %v2518_v33 = vpop.eup %2517  ;;  %2519 = vrcp.f32 %v1272_v16  ;;  %v1373_v56 = vand.u32 2147483648, %v1272_v16  ;;  %v1371_v59 = vand.u32 2147483647, %v1272_v16 }
 0x42b   :  { %v1348_v62 = vmul.f32 %v2518_v33, %v1265_v27  ;;  %v1340_v17 = vsel %vm1339_vm0, %v2514_v15, %v1336_v9  ;;  %v1277_v18 = vadd.f32 %v1276_v22, %v1275_v34  ;;  %vm1353_vm6 = vweird.f32 %v2518_v33 }
 0x42c   :  { %v1280_v3 = vsel %vm403_vm7, %v3141_v57, 0.0  ;;  %v1345_v55 = vsel %vm1342_vm14, %v1344_v20, %v1340_v17  ;;  %vm1354_vm8 = vmor %vm1352_vm5, %vm1353_vm6  ;;  %vm1367_vm4 = vweird.f32 %v1272_v16  ;;  %v1374_v32 = vor.u32 1.1754944e-38, %v1373_v56 }
 0x42d   :  { %v1349_v30 = vsub.f32 1.0, %v1348_v62  ;;  %v1346_v26 = vmul.f32 %v1345_v55, %v3100_v1  ;;  %v1281_v42 = vrot.slane %v1280_v3, 4  ;;  %v1278_v51 = vrot.slane %v1277_v18, 1 }
 0x42e   :  { %vm1372_vm0 = vcmp.eq.f32.partialorder %v1371_v59, 8.507059e+37 }
 0x42f   :  { %v1350_v14 = vmul.f32 %v2518_v33, %v1349_v30  ;;  %2390 = vmatmul.msk.f32.gmra.mxu3 %vm403_vm7, %v1346_v26  ;;  %v1282_v5 = vadd.f32 %v1281_v42, %v1280_v3  ;;  %v1279_v25 = vadd.f32 %v1278_v51, %v1277_v18 }
 0x430   :  { %v2520_v53 = vpop.eup %2519 }
 0x431   :  { %v1351_v29 = vadd.f32 %v2518_v33, %v1350_v14  ;;  %v1283_v13 = vrot.slane %v1282_v5, 2  ;;  %v1363_v0 = vmul.f32 %v2520_v53, %v1272_v16  ;;  %2521 = vrcp.f32 %v1279_v25 }
 0x432   :  { %vm1368_vm3 = vweird.f32 %v2520_v53  ;;  %v1388_v61 = vand.u32 2147483648, %v1279_v25  ;;  %v1386_v28 = vand.u32 2147483647, %v1279_v25  ;;  %vm1382_vm6 = vweird.f32 %v1279_v25 }
 0x433   :  { %v1355_v2 = vsel %vm1354_vm8, %v2518_v33, %v1351_v29  ;;  %v1364_v46 = vsub.f32 1.0, %v1363_v0  ;;  %v1284_v10 = vadd.f32 %v1283_v13, %v1282_v5  ;;  %vm1369_vm1 = vmor %vm1367_vm4, %vm1368_vm3  ;;  %v1622_v13 = vld [vmem:[#allocation7 + $0x4a0] sm:$0xff] }
 0x434   :  { %v1360_v1 = vsel %vm1357_vm9, %v1359_v37, %v1355_v2  ;;  %v1389_v31 = vor.u32 1.1754944e-38, %v1388_v61  ;;  %vm1387_vm8 = vcmp.eq.f32.partialorder %v1386_v28, 8.507059e+37 }
 0x435   :  { %v1361_v63 = vmul.f32 %v1360_v1, %v3113_v11  ;;  %v1365_v7 = vmul.f32 %v2520_v53, %v1364_v46  ;;  %v1285_v47 = vrot.slane %v1284_v10, 1 }
 0x437   :  { %2391 = vmatmul.msk.f32.gmra.mxu3 %vm403_vm7, %v1361_v63  ;;  %v2522_v19 = vpop.eup %2521  ;;  %v1366_v27 = vadd.f32 %v2520_v53, %v1365_v7  ;;  %v1286_v15 = vadd.f32 %v1285_v47, %v1284_v10  ;;  %v1621_v10 = vld [vmem:[#allocation7 + $0x490] sm:$0xff]  ;;  %v1620_v47 = vld [vmem:[#allocation7 + $0x480] sm:$0xff] }
 0x438   :  { %v1378_v23 = vmul.f32 %v2522_v19, %v1279_v25  ;;  %vm1383_vm14 = vweird.f32 %v2522_v19 }
 0x439   :  { %v1370_v36 = vsel %vm1369_vm1, %v2520_v53, %v1366_v27  ;;  %2523 = vrcp.f32 %v1286_v15  ;;  %vm1384_vm5 = vmor %vm1382_vm6, %vm1383_vm14  ;;  %v1403_v9 = vand.u32 2147483648, %v1286_v15  ;;  %v1401_v16 = vand.u32 2147483647, %v1286_v15 }
 0x43a   :  { %v1375_v11 = vsel %vm1372_vm0, %v1374_v32, %v1370_v36  ;;  %v1379_v24 = vsub.f32 1.0, %v1378_v23  ;;  %vm1397_vm3 = vweird.f32 %v1286_v15  ;;  %v1619_v32 = vld [vmem:[#allocation7 + $0x470] sm:$0xff] }
 0x43b   :  { %v1376_v4 = vmul.f32 %v1375_v11, %v3125_v8  ;;  %v1404_v20 = vor.u32 1.1754944e-38, %v1403_v9  ;;  %vm1402_vm1 = vcmp.eq.f32.partialorder %v1401_v16, 8.507059e+37  ;;  %v3161_v16 = vld [vmem:[#allocation7 + $0x3b0] ss:$0 sm:$0xff] }
 0x43c   :  { %v1380_v21 = vmul.f32 %v2522_v19, %v1379_v24 }
 0x43e   :  { %v1381_v43 = vadd.f32 %v2522_v19, %v1380_v21 }
 0x43f   :  { %2392 = vmatmul.msk.f32.gmra.mxu3 %vm403_vm7, %v1376_v4  ;;  %v2524_v6 = vpop.eup %2523  ;;  %v1618_v4 = vld [vmem:[#allocation7 + $0x460] sm:$0xff] }
 0x440   :  { %v1385_v39 = vsel %vm1384_vm5, %v2522_v19, %v1381_v43  ;;  %v1393_v54 = vmul.f32 %v2524_v6, %v1286_v15  ;;  %vm1398_vm9 = vweird.f32 %v2524_v6 }
 0x441   :  { %v1390_v44 = vsel %vm1387_vm8, %v1389_v31, %v1385_v39  ;;  %vm1399_vm4 = vmor %vm1397_vm3, %vm1398_vm9 }
 0x442   :  { %v1391_v34 = vmul.f32 %v1390_v44, %v3134_v40  ;;  %v1394_v33 = vsub.f32 1.0, %v1393_v54  ;;  %v1616_v44 = vld [vmem:[#allocation7 + $0x440] sm:$0xff] }
 0x444   :  { %v1395_v8 = vmul.f32 %v2524_v6, %v1394_v33 }
 0x446   :  { %v1396_v22 = vadd.f32 %v2524_v6, %v1395_v8  ;;  %v1615_v8 = vld [vmem:[#allocation7 + $0x430] sm:$0xff] }
 0x447   :  { %2393 = vmatmul.msk.f32.gmra.mxu3 %vm403_vm7, %v1391_v34 }
 0x448   :  { %v1400_v62 = vsel %vm1399_vm4, %v2524_v6, %v1396_v22  ;;  %v1617_v6 = vld [vmem:[#allocation7 + $0x450] sm:$0xff]  ;;  %vm3400_vm4 = vcmask 1047559  }
 0x449   :  { %v1405_v3 = vsel %vm1402_vm1, %v1404_v20, %v1400_v62  ;;  %v1614_v20 = vld [vmem:[#allocation7 + $0x420] sm:$0xff] }
 0x44a   :  { %v1406_v17 = vmul.f32 %v1405_v3, %v3141_v57  ;;  %v1623_v57 = vld [vmem:[#allocation7 + $0x4b0] sm:$0xff] }
 0x44b   :  { %1653 = vmatpush.msrb.mxu0 %v1623_v57 }
 0x44d   :  { %1654 = vmatpush.msrb.mxu0 %v1622_v13 }
 0x44f   :  { %2394 = vmatmul.msk.f32.gmra.mxu3 %vm403_vm7, %v1406_v17  ;;  %1655 = vmatpush.msrb.mxu0 %v1621_v10 }
 0x451   :  { %1656 = vmatpush.msrb.mxu0 %v1620_v47 }
 0x453   :  { %1657 = vmatpush.msrb.mxu0 %v1619_v32 }
 0x455   :  { %1658 = vmatpush.msrb.mxu0 %v1618_v4 }
 0x457   :  { %1659 = vmatpush.msrb.mxu0 %v1617_v6 }
 0x459   :  { %1660 = vmatpush.msrb.mxu0 %v1616_v44 }
 0x45b   :  { %1661 = vmatpush.msrb.mxu0 %v1615_v8 }
 0x45d   :  { %1662 = vmatpush.msrb.mxu0 %v1614_v20 }
 0x497   :  { %v1448_v55 = vpop.f32.mrf.mxu3 }
 0x498   :  { %v1472_v18 = vmul.f32 %v1448_v55, %v3047_v38 }
 0x49a   :  { %v1480_v14 = vrot.slane %v1472_v18, 4 }
 0x49c   :  { %v1481_v25 = vadd.f32 %v1480_v14, %v1472_v18  ;;  %v1612_v14 = vld [vmem:[#allocation7 + $0x400] sm:$0xff] }
 0x49e   :  { %v1482_v1 = vrot.slane %v1481_v25, 2 }
 0x4a0   :  { %v1483_v19 = vadd.f32 %v1482_v1, %v1481_v25  ;;  %v1611_v25 = vld [vmem:[#allocation7 + $0x3f0] sm:$0xff] }
 0x4a1   :  { %v1451_v40 = vpop.f32.mrf.mxu3 }
 0x4a2   :  { %v1473_v26 = vmul.f32 %v1451_v40, %v3047_v38  ;;  %v1484_v61 = vrot.slane %v1483_v19, 1  ;;  %v1613_v40 = vld [vmem:[#allocation7 + $0x410] sm:$0xff] }
 0x4a3   :  { %1663 = vmatpush.msrb.mxu0 %v1613_v40 }
 0x4a4   :  { %v1486_v51 = vrot.slane %v1473_v26, 4  ;;  %v1485_v34 = vadd.f32 %v1484_v61, %v1483_v19 }
 0x4a5   :  { %1664 = vmatpush.msrb.mxu0 %v1612_v14 }
 0x4a6   :  { %v1487_v53 = vadd.f32 %v1486_v51, %v1473_v26 }
 0x4a7   :  { %1665 = vmatpush.msrb.mxu0 %v1611_v25 }
 0x4a8   :  { %v1488_v46 = vrot.slane %v1487_v53, 2 }
 0x4aa   :  { %v1454_v30 = vpop.f32.mrf.mxu3  ;;  %v1489_v15 = vadd.f32 %v1488_v46, %v1487_v53 }
 0x4ab   :  { %v1474_v58 = vmul.f32 %v1454_v30, %v3047_v38  ;;  %v3164_v30 = vadd.f32 %v1485_v34, %v3161_v16 }
 0x4ac   :  { %v1490_v43 = vrot.slane %v1489_v15, 1 }
 0x4ad   :  { %v1492_v5 = vrot.slane %v1474_v58, 4  ;;  %v1536_v57 = vmin.f32 %v3164_v30, 0.0  ;;  %vm1592_vm9 = vcmp.gt.f32.partialorder %v3164_v30, 0.0 }
 0x4ae   :  { %v1491_v22 = vadd.f32 %v1490_v43, %v1489_v15 }
 0x4af   :  { %v1493_v37 = vadd.f32 %v1492_v5, %v1474_v58 }
 0x4b0   :  { %v3167_v58 = vadd.f32 %v1491_v22, %v3161_v16 }
 0x4b1   :  { %v1494_v56 = vrot.slane %v1493_v37, 2 }
 0x4b2   :  { %v1457_v42 = vpop.f32.mrf.mxu3  ;;  %v1537_v13 = vmin.f32 %v3167_v58, 0.0  ;;  %vm1593_vm7 = vcmp.gt.f32.partialorder %v3167_v58, 0.0 }
 0x4b3   :  { %v1475_v12 = vmul.f32 %v1457_v42, %v3047_v38  ;;  %v1495_v23 = vadd.f32 %v1494_v56, %v1493_v37 }
 0x4b4   :  { %v1545_v6 = vmul.f32 0.5, %v1537_v13 }
 0x4b5   :  { %v1498_v29 = vrot.slane %v1475_v12, 4  ;;  %v1496_v31 = vrot.slane %v1495_v23, 1 }
 0x4b7   :  { %v1499_v2 = vadd.f32 %v1498_v29, %v1475_v12  ;;  %v1497_v62 = vadd.f32 %v1496_v31, %v1495_v23  ;;  %v1608_v23 = vld [vmem:[#allocation7 + $0x3c0] sm:$0xff] }
 0x4b9   :  { %v1500_v59 = vrot.slane %v1499_v2, 2  ;;  %v3171_v12 = vadd.f32 %v1497_v62, %v3161_v16 }
 0x4ba   :  { %v1460_v0 = vpop.f32.mrf.mxu3 }
 0x4bb   :  { %v1476_v63 = vmul.f32 %v1460_v0, %v3047_v38  ;;  %v1501_v11 = vadd.f32 %v1500_v59, %v1499_v2  ;;  %v1610_v0 = vld [vmem:[#allocation7 + $0x3e0] sm:$0xff]  ;;  %v1538_v1 = vmin.f32 %v3171_v12, 0.0  ;;  %v1560_v59 = vmul.f32 1.442695, %v1536_v57 }
 0x4bc   :  { %1666 = vmatpush.msrb.mxu0 %v1610_v0  ;;  %vm1594_vm0 = vcmp.gt.f32.partialorder %v3171_v12, 0.0 }
 0x4bd   :  { %v1504_v7 = vrot.slane %v1476_v63, 4  ;;  %v1502_v54 = vrot.slane %v1501_v11, 1  ;;  %2525 = vpow2.f32 %v1560_v59  ;;  %v1546_v31 = vmul.f32 0.5, %v1538_v1 }
 0x4bf   :  { %v1505_v27 = vadd.f32 %v1504_v7, %v1476_v63  ;;  %v1503_v17 = vadd.f32 %v1502_v54, %v1501_v11  ;;  %v1609_v7 = vld [vmem:[#allocation7 + $0x3d0] sm:$0xff] }
 0x4c0   :  { %1667 = vmatpush.msrb.mxu0 %v1609_v7 }
 0x4c1   :  { %v1506_v36 = vrot.slane %v1505_v27, 2  ;;  %v3174_v5 = vadd.f32 %v1503_v17, %v3161_v16 }
 0x4c2   :  { %v1463_v24 = vpop.f32.mrf.mxu3  ;;  %1668 = vmatpush.msrb.mxu0 %v1608_v23 }
 0x4c3   :  { %v1507_v21 = vadd.f32 %v1506_v36, %v1505_v27  ;;  %v1477_v28 = vmul.f32 %v1463_v24, %v3047_v38  ;;  %v1539_v46 = vmin.f32 %v3174_v5, 0.0  ;;  %v1562_v27 = vmul.f32 1.442695, %v1537_v13 }
 0x4c4   :  { %v1564_v36 = vmul.f32 1.442695, %v1538_v1  ;;  %vm1595_vm14 = vcmp.gt.f32.partialorder %v3174_v5, 0.0 }
 0x4c5   :  { %v1510_v39 = vrot.slane %v1477_v28, 4  ;;  %v1508_v33 = vrot.slane %v1507_v21, 1  ;;  %v1566_v24 = vmul.f32 1.442695, %v1539_v46  ;;  %2527 = vpow2.f32 %v1562_v27 }
 0x4c6   :  { %2529 = vpow2.f32 %v1564_v36  ;;  %v1547_v54 = vmul.f32 0.5, %v1539_v46 }
 0x4c7   :  { %v1511_v9 = vadd.f32 %v1510_v39, %v1477_v28  ;;  %v1509_v18 = vadd.f32 %v1508_v33, %v1507_v21  ;;  %2531 = vpow2.f32 %v1566_v24 }
 0x4c9   :  { %v1512_v3 = vrot.slane %v1511_v9, 2  ;;  %v3178_v53 = vadd.f32 %v1509_v18, %v3161_v16  ;;  %v1544_v18 = vmul.f32 0.5, %v1536_v57 }
 0x4ca   :  { %v1466_v55 = vpop.f32.mrf.mxu3 }
 0x4cb   :  { %v1513_v26 = vadd.f32 %v1512_v3, %v1511_v9  ;;  %v1478_v42 = vmul.f32 %v1466_v55, %v3047_v38  ;;  %v1540_v47 = vmin.f32 %v3178_v53, 0.0  ;;  %v2526_v9 = vpop.eup %2525  ;;  %vm1596_vm6 = vcmp.gt.f32.partialorder %v3178_v53, 0.0 }
 0x4cc   :  { %v2528_v22 = vpop.eup %2527 }
 0x4cd   :  { %v1514_v51 = vrot.slane %v1513_v26, 1  ;;  %v1516_v29 = vrot.slane %v1478_v42, 4  ;;  %v1568_v61 = vmul.f32 1.442695, %v1540_v47  ;;  %v1548_v34 = vmul.f32 0.5, %v1540_v47  ;;  %v2530_v3 = vpop.eup %2529 }
 0x4ce   :  { %v2532_v40 = vpop.eup %2531 }
 0x4cf   :  { %v1515_v37 = vadd.f32 %v1514_v51, %v1513_v26  ;;  %v1517_v2 = vadd.f32 %v1516_v29, %v1478_v42  ;;  %2533 = vpow2.f32 %v1568_v61  ;;  %v1577_v42 = vadd.f32 1.0, %v2528_v22 }
 0x4d0   :  { %v1578_v29 = vadd.f32 1.0, %v2530_v3 }
 0x4d1   :  { %v3183_v63 = vadd.f32 %v1515_v37, %v3161_v16  ;;  %v1518_v10 = vrot.slane %v1517_v2, 2  ;;  %v1579_v37 = vadd.f32 1.0, %v2532_v40  ;;  %v1624_v40 = vld [vmem:[#allocation7 + $0x4c0] ss:$0 sm:$0xff] }
 0x4d2   :  { %v1469_v56 = vpop.f32.mrf.mxu3 }
 0x4d3   :  { %v1479_v19 = vmul.f32 %v1469_v56, %v3047_v38  ;;  %v1541_v15 = vmin.f32 %v3183_v63, 0.0  ;;  %v1519_v32 = vadd.f32 %v1518_v10, %v1517_v2  ;;  %vm1597_vm5 = vcmp.gt.f32.partialorder %v3183_v63, 0.0 }
 0x4d5   :  { %v1522_v11 = vrot.slane %v1479_v19, 4  ;;  %v1520_v4 = vrot.slane %v1519_v32, 1  ;;  %v1570_v28 = vmul.f32 1.442695, %v1541_v15  ;;  %v1549_v20 = vmul.f32 0.5, %v1541_v15  ;;  %v2534_v26 = vpop.eup %2533 }
 0x4d6   :  { %v1580_v0 = vadd.f32 1.0, %v2534_v26 }
 0x4d7   :  { %v1523_v21 = vadd.f32 %v1522_v11, %v1479_v19  ;;  %v1521_v43 = vadd.f32 %v1520_v4, %v1519_v32  ;;  %2535 = vpow2.f32 %v1570_v28  ;;  %v1576_v19 = vadd.f32 1.0, %v2526_v9 }
 0x4d8   :  { %2537 = vtanh.f32 %v1545_v6 }
 0x4d9   :  { %v1524_v38 = vrot.slane %v1523_v21, 2  ;;  %v3190_v39 = vadd.f32 %v1521_v43, %v3161_v16  ;;  %2539 = vtanh.f32 %v1546_v31 }
 0x4da   :  { %2541 = vtanh.f32 %v1547_v54 }
 0x4db   :  { %v1525_v44 = vadd.f32 %v1524_v38, %v1523_v21  ;;  %v1542_v33 = vmin.f32 %v3190_v39, 0.0  ;;  %2543 = vtanh.f32 %v1548_v34  ;;  %vm1598_vm8 = vcmp.gt.f32.partialorder %v3190_v39, 0.0 }
 0x4dd   :  { %v1526_v8 = vrot.slane %v1525_v44, 1  ;;  %v1572_v62 = vmul.f32 1.442695, %v1542_v33  ;;  %v1550_v17 = vmul.f32 0.5, %v1542_v33  ;;  %v2536_v51 = vpop.eup %2535 }
 0x4de   :  { %v2538_v25 = vpop.eup %2537  ;;  %v1581_v10 = vadd.f32 1.0, %v2536_v51  ;;  %v1627_v51 = vld [vmem:[#allocation7 + $0x4f0] sm:$0xff] }
 0x4df   :  { %v1527_v55 = vadd.f32 %v1526_v8, %v1525_v44  ;;  %2545 = vpow2.f32 %v1572_v62  ;;  %v2540_v2 = vpop.eup %2539  ;;  %v1585_v46 = vmul.f32 %v2538_v25, %v1577_v42  ;;  %v1628_v42 = vld [vmem:[#allocation7 + $0x500] sm:$0xff] }
 0x4e0   :  { %2547 = vtanh.f32 %v1549_v20  ;;  %v2542_v1 = vpop.eup %2541  ;;  %v1586_v7 = vmul.f32 %v2540_v2, %v1578_v29  ;;  %2408 = vmatpush.msra.mxu1 %v1628_v42  ;;  %1784 = vmatpush.msra.mxu0 %v1628_v42 }
 0x4e1   :  { %v1535_v14 = vadd.f32 %v1527_v55, %v3161_v16  ;;  %2549 = vtanh.f32 %v1550_v17  ;;  %v2544_v56 = vpop.eup %2543  ;;  %v1587_v16 = vmul.f32 %v2542_v1, %v1579_v37  ;;  %v1601_v36 = vsel %vm1593_vm7, %v3167_v58, %v1585_v46 }
 0x4e2   :  { %2551 = vtanh.f32 %v1544_v18  ;;  %v1588_v15 = vmul.f32 %v2544_v56, %v1580_v0  ;;  %v1602_v4 = vsel %vm1594_vm0, %v3171_v12, %v1586_v7  ;;  %v1638_v43 = vrot.slane %v1601_v36, 7  ;;  %2409 = vmatpush.msra.mxu1 %v1627_v51  ;;  %1785 = vmatpush.msra.mxu0 %v1627_v51 }
 0x4e3   :  { %v1543_v13 = vmin.f32 %v1535_v14, 0.0  ;;  %v1603_v28 = vsel %vm1595_vm14, %v3174_v5, %v1587_v16  ;;  %v1640_v58 = vrot.slane %v1602_v4, 6  ;;  %vm1599_vm3 = vcmp.gt.f32.partialorder %v1535_v14, 0.0 }
 0x4e4   :  { %v1604_v6 = vsel %vm1596_vm6, %v3178_v53, %v1588_v15  ;;  %v1642_v31 = vrot.slane %v1603_v28, 5 }
 0x4e5   :  { %v1574_v57 = vmul.f32 1.442695, %v1543_v13  ;;  %v1551_v59 = vmul.f32 0.5, %v1543_v13  ;;  %v2546_v47 = vpop.eup %2545  ;;  %v1644_v34 = vrot.slane %v1604_v6, 4  ;;  %v1625_v13 = vld [vmem:[#allocation7 + $0x4d0] sm:$0xff] }
 0x4e6   :  { %v2548_v27 = vpop.eup %2547  ;;  %v1582_v32 = vadd.f32 1.0, %v2546_v47 }
 0x4e7   :  { %2553 = vpow2.f32 %v1574_v57  ;;  %v2550_v23 = vpop.eup %2549  ;;  %v1589_v11 = vmul.f32 %v2548_v27, %v1581_v10 }
 0x4e8   :  { %v2552_v24 = vpop.eup %2551  ;;  %2555 = vtanh.f32 %v1551_v59  ;;  %v1590_v61 = vmul.f32 %v2550_v23, %v1582_v32 }
 0x4e9   :  { %v1584_v21 = vmul.f32 %v2552_v24, %v1576_v19  ;;  %v1605_v38 = vsel %vm1597_vm5, %v3183_v63, %v1589_v11 }
 0x4ea   :  { %v1606_v54 = vsel %vm1598_vm8, %v3190_v39, %v1590_v61  ;;  %v1646_v9 = vrot.slane %v1605_v38, 3 }
 0x4eb   :  { %v1600_v5 = vsel %vm1592_vm9, %v3164_v30, %v1584_v21  ;;  %v1648_v20 = vrot.slane %v1606_v54, 2 }
 0x4ec   :  { %v1639_v53 = vsel %vm977_vm11, %v1638_v43, %v1600_v5 }
 0x4ed   :  { %v2554_v12 = vpop.eup %2553  ;;  %v1641_v22 = vsel %vm980_vm2, %v1640_v58, %v1639_v53 }
 0x4ee   :  { %v1583_v44 = vadd.f32 1.0, %v2554_v12  ;;  %v2556_v33 = vpop.eup %2555  ;;  %v1643_v63 = vsel %vm983_vm10, %v1642_v31, %v1641_v22 }
 0x4ef   :  { %v1645_v3 = vsel %vm986_vm13, %v1644_v34, %v1643_v63 }
 0x4f0   :  { %v1591_v8 = vmul.f32 %v2556_v33, %v1583_v44  ;;  %v1647_v39 = vsel %vm989_vm12, %v1646_v9, %v1645_v3 }
 0x4f1   :  { %v1649_v30 = vsel %vm992_vm15, %v1648_v20, %v1647_v39 }
 0x4f2   :  { %v1607_v62 = vsel %vm1599_vm3, %v1535_v14, %v1591_v8  ;;  %v1626_v14 = vld [vmem:[#allocation7 + $0x4e0] sm:$0xff]  ;;  %vm3401_vm3 = vcmask 261120  }
 0x4f3   :  { %v1650_v17 = vrot.slane %v1607_v62, 1  ;;  %2410 = vmatpush.msra.mxu1 %v1626_v14  ;;  %1786 = vmatpush.msra.mxu0 %v1626_v14 }
 0x4f5   :  { %v1651_v55 = vsel %vm3400_vm4, %v1650_v17, %v1649_v30  ;;  %2411 = vmatpush.msra.mxu1 %v1625_v13  ;;  %1787 = vmatpush.msra.mxu0 %v1625_v13  ;;  %vm3402_vm4 = vmmov %vm3401_vm3 }
 0x4f6   :  { %1669 = vmatmul.f32.vlgmr.msrb.gmra.mxu0 %v1651_v55 }
 0x573   :  { %v1670_v18 = vpop.f32.mrf.mxu0 }
 0x574   :  { %v3215_v26 = vadd.f32 %v1670_v18, %v1624_v40 }
 0x576   :  { %1697 = vrot.lane.b32.xlu1 %v3215_v26, %s2701_s0  ;;  %v1677_v29 = vrot.slane %v3215_v26, 4  ;;  %v1676_v25 = vrot.slane %v3215_v26, 3  ;;  %v1675_v37 = vrot.slane %v3215_v26, 2  ;;  %v1679_v2 = vrot.slane %v3215_v26, 6 }
 0x577   :  { %v1678_v57 = vrot.slane %v3215_v26, 5  ;;  %v1681_v19 = vperm.slane %v3215_v26, 0  ;;  %v1680_v21 = vrot.slane %v3215_v26, 7  ;;  %v1674_v28 = vrot.slane %v3215_v26, 1 }
 0x578   :  { %v1685_v0 = vperm.slane %v1677_v29, 0  ;;  %v1684_v1 = vperm.slane %v1676_v25, 0  ;;  %v1683_v46 = vperm.slane %v1675_v37, 0  ;;  %v1687_v47 = vperm.slane %v1679_v2, 0 }
 0x579   :  { %v1686_v32 = vperm.slane %v1678_v57, 0  ;;  %v1688_v38 = vperm.slane %v1680_v21, 0  ;;  %v1682_v12 = vperm.slane %v1674_v28, 0 }
 0x5e8   :  { %v1698_v10 = vpop.permute.xlu1 %1697 }
 0x5e9   :  { %v1704_v56 = vadd.f32 %v1698_v10, %v1685_v0  ;;  %v1703_v7 = vadd.f32 %v1698_v10, %v1684_v1  ;;  %v1702_v59 = vadd.f32 %v1698_v10, %v1683_v46  ;;  %v1706_v11 = vadd.f32 %v1698_v10, %v1687_v47 }
 0x5ea   :  { %v1700_v24 = vadd.f32 %v1698_v10, %v1681_v19  ;;  %v1705_v61 = vadd.f32 %v1698_v10, %v1686_v32  ;;  %v1707_v5 = vadd.f32 %v1698_v10, %v1688_v38  ;;  %v1701_v34 = vadd.f32 %v1698_v10, %v1682_v12 }
 0x5eb   :  { %vm1712_vm1 = vcmp.gt.f32.partialorder %v1704_v56, 0.0  ;;  %v1720_v16 = vmul.f32 0.2, %v1704_v56  ;;  %vm1711_vm7 = vcmp.gt.f32.partialorder %v1703_v7, 0.0  ;;  %v1719_v27 = vmul.f32 0.2, %v1703_v7 }
 0x5ec   :  { %vm1710_vm0 = vcmp.gt.f32.partialorder %v1702_v59, 0.0  ;;  %v1718_v15 = vmul.f32 0.2, %v1702_v59  ;;  %v1722_v43 = vmul.f32 0.2, %v1706_v11  ;;  %vm1714_vm14 = vcmp.gt.f32.partialorder %v1706_v11, 0.0 }
 0x5ed   :  { %v1728_v23 = vsel %vm1712_vm1, %v1704_v56, %v1720_v16  ;;  %v1727_v36 = vsel %vm1711_vm7, %v1703_v7, %v1719_v27  ;;  %v1716_v6 = vmul.f32 0.2, %v1700_v24  ;;  %vm1708_vm6 = vcmp.gt.f32.partialorder %v1700_v24, 0.0  ;;  %vm3403_vm1 = vmmov %vm3401_vm3 }
 0x5ee   :  { %1748 = vrot.lane.b32.xlu1 %v1728_v23, %s2702_s2  ;;  %1746 = vrot.lane.b32.xlu0 %v1727_v36, %s2702_s2  ;;  %v1726_v4 = vsel %vm1710_vm0, %v1702_v59, %v1718_v15  ;;  %v1721_v58 = vmul.f32 0.2, %v1705_v61  ;;  %vm1713_vm5 = vcmp.gt.f32.partialorder %v1705_v61, 0.0  ;;  %v1730_v31 = vsel %vm1714_vm14, %v1706_v11, %v1722_v43  ;;  %vm3404_vm7 = vmmov %vm3403_vm1 }
 0x5ef   :  { %1744 = vrot.lane.b32.xlu2 %v1726_v4, %s2702_s2  ;;  %v1724_v54 = vsel %vm1708_vm6, %v1700_v24, %v1716_v6  ;;  %v1723_v33 = vmul.f32 0.2, %v1707_v5  ;;  %vm1715_vm8 = vcmp.gt.f32.partialorder %v1707_v5, 0.0  ;;  %v1717_v53 = vmul.f32 0.2, %v1701_v34  ;;  %vm3405_vm0 = vmmov %vm3403_vm1 }
 0x5f0   :  { %v1729_v44 = vsel %vm1713_vm5, %v1705_v61, %v1721_v58  ;;  %vm1709_vm9 = vcmp.gt.f32.partialorder %v1701_v34, 0.0  ;;  %vm3406_vm14 = vmmov %vm3405_vm0 }
 0x5f1   :  { %v1731_v9 = vsel %vm1715_vm8, %v1707_v5, %v1723_v33  ;;  %v1725_v8 = vsel %vm1709_vm9, %v1701_v34, %v1717_v53  ;;  %vm3407_vm6 = vmmov %vm3405_vm0  ;;  %vm1821_vm8 = vcmask 7168   ;;  %vm3409_vm9 = vcmp.gt.f32.partialorder %v2778_v45, 0.0 }
 0x5f2   :  { %vm3408_vm5 = vmmov %vm3405_vm0 }
 0x5f6   :  { %1752 = vrot.lane.b32.xlu1 %v1730_v31, %s2702_s2  ;;  %1740 = vrot.lane.b32.xlu0 %v1724_v54, %s2702_s2 }
 0x5f7   :  { %1750 = vrot.lane.b32.xlu2 %v1729_v44, %s2702_s2 }
 0x5fe   :  { %1754 = vrot.lane.b32.xlu0 %v1731_v9, %s2702_s2 }
 0x5ff   :  { %1742 = vrot.lane.b32.xlu2 %v1725_v8, %s2702_s2 }
 0x649   :  { %v1745_v22 = vpop.permute.xlu2 %1744 }
 0x64a   :  { %2397 = vmatmul.msk.f32.vlgmr.msra.gmra.mxu1 %vm3401_vm3, %v1745_v22  ;;  %vm3410_vm3 = vcmp.gt.f32.partialorder %v2780_v48, 0.0 }
 0x651   :  { %v1751_v63 = vpop.permute.xlu2 %1750 }
 0x659   :  { %v1743_v39 = vpop.permute.xlu2 %1742 }
 0x660   :  { %v1747_v20 = vpop.permute.xlu0 %1746  ;;  %v1749_v62 = vpop.permute.xlu1 %1748 }
 0x661   :  { %2398 = vmatmul.msk.f32.gmra.mxu1 %vm3402_vm4, %v1747_v20  ;;  %vm3411_vm4 = vcmp.gt.f32.partialorder %v2764_v35, 0.0 }
 0x668   :  { %v1741_v3 = vpop.permute.xlu0 %1740  ;;  %v1753_v17 = vpop.permute.xlu1 %1752 }
 0x669   :  { %2395 = vmatmul.msk.f32.vlgmr.msra.gmra.mxu0 %vm3403_vm1, %v1741_v3  ;;  %2399 = vmatmul.msk.f32.gmra.mxu1 %vm3404_vm7, %v1749_v62  ;;  %vm3412_vm1 = vcmp.gt.f32.partialorder %v2782_v49, 0.0  ;;  %vm3413_vm7 = vcmp.gt.f32.partialorder %v2771_v41, 0.0 }
 0x670   :  { %v1755_v30 = vpop.permute.xlu0 %1754 }
 0x671   :  { %2396 = vmatmul.msk.f32.gmra.mxu0 %vm3405_vm0, %v1743_v39  ;;  %2400 = vmatmul.msk.f32.gmra.mxu1 %vm3406_vm14, %v1751_v63  ;;  %vm3414_vm0 = vcmp.gt.f32.partialorder %v2784_v50, 0.0  ;;  %vm3415_vm14 = vcmp.gt.f32.partialorder %v2786_v52, 0.0 }
 0x679   :  { %2401 = vmatmul.msk.f32.gmra.mxu1 %vm3407_vm6, %v1753_v17 }
 0x681   :  { %2402 = vmatmul.msk.f32.gmra.mxu1 %vm3408_vm5, %v1755_v30 }
 0x6c7   :  { %v1795_v55 = vpop.f32.mrf.mxu1 }
 0x6c8   :  { %v1815_v40 = vsel %vm3409_vm9, %v1795_v55, -1e+30 }
 0x6c9   :  { %v1836_v18 = vsel %vm1821_vm8, %v1815_v40, -inf }
 0x6ca   :  { %v1837_v42 = vrot.slane %v1836_v18, 4 }
 0x6cc   :  { %v1838_v51 = vmax.f32 %v1836_v18, %v1837_v42 }
 0x6ce   :  { %v1839_v14 = vrot.slane %v1838_v51, 2 }
 0x6d0   :  { %v1840_v29 = vmax.f32 %v1838_v51, %v1839_v14 }
 0x6d2   :  { %v1841_v25 = vrot.slane %v1840_v29, 1 }
 0x6d4   :  { %v1842_v37 = vmax.f32 %v1840_v29, %v1841_v25 }
 0x6d6   :  { %v1880_v13 = vsub.f32 %v1815_v40, %v1842_v37 }
 0x6d8   :  { %v1890_v2 = vmul.f32 1.442695, %v1880_v13 }
 0x6da   :  { %2557 = vpow2.f32 %v1890_v2 }
 0x6de   :  { %v1798_v0 = vpop.f32.mrf.mxu1 }
 0x6df   :  { %v1816_v1 = vsel %vm3410_vm3, %v1798_v0, -1e+30  ;;  %vm3418_vm3 = vcmp.gt.f32.partialorder %v2801_v60, 0.0 }
 0x6e0   :  { %v2558_v46 = vpop.eup %2557  ;;  %v1843_v10 = vsel %vm1821_vm8, %v1816_v1, -inf }
 0x6e1   :  { %v1844_v57 = vrot.slane %v1843_v10, 4  ;;  %v3249_v56 = vmul.f32 %v2558_v46, %v2778_v45 }
 0x6e3   :  { %v1845_v7 = vmax.f32 %v1843_v10, %v1844_v57  ;;  %v1924_v59 = vsel %vm1821_vm8, %v3249_v56, 0.0 }
 0x6e4   :  { %v1925_v47 = vrot.slane %v1924_v59, 4 }
 0x6e5   :  { %v1846_v19 = vrot.slane %v1845_v7, 2 }
 0x6e6   :  { %v1789_v16 = vpop.f32.mrf.mxu0  ;;  %v1801_v27 = vpop.f32.mrf.mxu1  ;;  %v1926_v15 = vadd.f32 %v1925_v47, %v1924_v59 }
 0x6e7   :  { %v1847_v32 = vmax.f32 %v1845_v7, %v1846_v19  ;;  %v1813_v23 = vsel %vm3411_vm4, %v1789_v16, -1e+30  ;;  %v1817_v36 = vsel %vm3412_vm1, %v1801_v27, -1e+30 }
 0x6e8   :  { %v1822_v11 = vsel %vm1821_vm8, %v1813_v23, -inf  ;;  %v1850_v45 = vsel %vm1821_vm8, %v1817_v36, -inf  ;;  %v1927_v24 = vrot.slane %v1926_v15, 2 }
 0x6e9   :  { %v1848_v4 = vrot.slane %v1847_v32, 1  ;;  %v1823_v61 = vrot.slane %v1822_v11, 4  ;;  %v1851_v21 = vrot.slane %v1850_v45, 4 }
 0x6ea   :  { %v1928_v28 = vadd.f32 %v1927_v24, %v1926_v15 }
 0x6eb   :  { %v1849_v43 = vmax.f32 %v1847_v32, %v1848_v4  ;;  %v1824_v6 = vmax.f32 %v1822_v11, %v1823_v61  ;;  %v1852_v58 = vmax.f32 %v1850_v45, %v1851_v21 }
 0x6ec   :  { %v1929_v38 = vrot.slane %v1928_v28, 1 }
 0x6ed   :  { %v1881_v12 = vsub.f32 %v1816_v1, %v1849_v43  ;;  %v1825_v31 = vrot.slane %v1824_v6, 2  ;;  %v1853_v54 = vrot.slane %v1852_v58, 2 }
 0x6ee   :  { %v1792_v5 = vpop.f32.mrf.mxu0  ;;  %v1804_v44 = vpop.f32.mrf.mxu1  ;;  %v1930_v34 = vadd.f32 %v1929_v38, %v1928_v28 }
 0x6ef   :  { %v1892_v33 = vmul.f32 1.442695, %v1881_v12  ;;  %v1826_v53 = vmax.f32 %v1824_v6, %v1825_v31  ;;  %v1854_v9 = vmax.f32 %v1852_v58, %v1853_v54  ;;  %v1814_v8 = vsel %vm3413_vm7, %v1792_v5, -1e+30 }
 0x6f0   :  { %v1829_v22 = vsel %vm1821_vm8, %v1814_v8, -inf  ;;  %v1818_v20 = vsel %vm3414_vm0, %v1804_v44, -1e+30  ;;  %2559 = vrcp.f32 %v1930_v34  ;;  %v2005_v37 = vand.u32 2147483647, %v1930_v34 }
 0x6f1   :  { %2561 = vpow2.f32 %v1892_v33  ;;  %v1827_v63 = vrot.slane %v1826_v53, 1  ;;  %v1855_v62 = vrot.slane %v1854_v9, 1  ;;  %v1830_v3 = vrot.slane %v1829_v22, 4 }
 0x6f2   :  { %v1857_v39 = vsel %vm1821_vm8, %v1818_v20, -inf  ;;  %v2007_v7 = vand.u32 2147483648, %v1930_v34  ;;  %vm2001_vm5 = vweird.f32 %v1930_v34  ;;  %vm3273_vm9 = vcmp.eq.f32.partialorder %v2005_v37, 8.507059e+37 }
 0x6f3   :  { %v1828_v17 = vmax.f32 %v1826_v53, %v1827_v63  ;;  %v1856_v30 = vmax.f32 %v1854_v9, %v1855_v62  ;;  %v1831_v55 = vmax.f32 %v1829_v22, %v1830_v3  ;;  %v1858_v40 = vrot.slane %v1857_v39, 4 }
 0x6f4   :  { %v2008_v58 = vor.u32 1.1754944e-38, %v2007_v7 }
 0x6f5   :  { %v1878_v18 = vsub.f32 %v1813_v23, %v1828_v17  ;;  %v1882_v42 = vsub.f32 %v1817_v36, %v1856_v30  ;;  %v1832_v51 = vrot.slane %v1831_v55, 2  ;;  %v1859_v14 = vmax.f32 %v1857_v39, %v1858_v40 }
 0x6f6   :  { %v2560_v29 = vpop.eup %2559  ;;  %v1807_v25 = vpop.f32.mrf.mxu1 }
 0x6f7   :  { %v2562_v13 = vpop.eup %2561  ;;  %v1886_v2 = vmul.f32 1.442695, %v1878_v18  ;;  %v1894_v0 = vmul.f32 1.442695, %v1882_v42  ;;  %v1833_v1 = vmax.f32 %v1831_v55, %v1832_v51  ;;  %v1860_v46 = vrot.slane %v1859_v14, 2 }
 0x6f8   :  { %v1819_v10 = vsel %vm3415_vm14, %v1807_v25, -1e+30  ;;  %v1997_v57 = vmul.f32 %v2560_v29, %v1930_v34  ;;  %v3268_v59 = vmul.f32 %v2562_v13, %v2780_v48  ;;  %vm2002_vm6 = vweird.f32 %v2560_v29 }
 0x6f9   :  { %2563 = vpow2.f32 %v1886_v2  ;;  %v1834_v47 = vrot.slane %v1833_v1, 1  ;;  %v1861_v19 = vmax.f32 %v1859_v14, %v1860_v46  ;;  %v1864_v16 = vsel %vm1821_vm8, %v1819_v10, -inf  ;;  %vm2003_vm4 = vmor %vm2001_vm5, %vm2002_vm6 }
 0x6fa   :  { %2565 = vpow2.f32 %v1894_v0  ;;  %v1865_v27 = vrot.slane %v1864_v16, 4  ;;  %v1998_v15 = vsub.f32 1.0, %v1997_v57  ;;  %v1931_v32 = vsel %vm1821_vm8, %v3268_v59, 0.0 }
 0x6fb   :  { %v1835_v23 = vmax.f32 %v1833_v1, %v1834_v47  ;;  %v1862_v36 = vrot.slane %v1861_v19, 1  ;;  %v1932_v11 = vrot.slane %v1931_v32, 4 }
 0x6fc   :  { %v1866_v45 = vmax.f32 %v1864_v16, %v1865_v27  ;;  %v1999_v24 = vmul.f32 %v2560_v29, %v1998_v15 }
 0x6fd   :  { %v1879_v4 = vsub.f32 %v1814_v8, %v1835_v23  ;;  %v1863_v48 = vmax.f32 %v1861_v19, %v1862_v36  ;;  %v1933_v61 = vadd.f32 %v1932_v11, %v1931_v32 }
 0x6fe   :  { %v1867_v21 = vrot.slane %v1866_v45, 2  ;;  %v1810_v28 = vpop.f32.mrf.mxu1  ;;  %v2000_v43 = vadd.f32 %v2560_v29, %v1999_v24 }
 0x6ff   :  { %v2564_v38 = vpop.eup %2563  ;;  %v1888_v12 = vmul.f32 1.442695, %v1879_v4  ;;  %v1883_v31 = vsub.f32 %v1818_v20, %v1863_v48  ;;  %v1820_v54 = vsel %vm3418_vm3, %v1810_v28, -1e+30  ;;  %v1934_v5 = vrot.slane %v1933_v61, 2 }
 0x700   :  { %v2566_v44 = vpop.eup %2565  ;;  %v1868_v33 = vmax.f32 %v1866_v45, %v1867_v21  ;;  %v1871_v34 = vsel %vm1821_vm8, %v1820_v54, -inf  ;;  %v2004_v53 = vsel %vm2003_vm4, %v2560_v29, %v2000_v43  ;;  %v3281_v9 = vmul.f32 %v2564_v38, %v2764_v35 }
 0x701   :  { %2567 = vpow2.f32 %v1888_v12  ;;  %v1896_v8 = vmul.f32 1.442695, %v1883_v31  ;;  %v1872_v22 = vrot.slane %v1871_v34, 4  ;;  %v2009_v63 = vsel %vm3273_vm9, %v2008_v58, %v2004_v53 }
 0x702   :  { %v1869_v20 = vrot.slane %v1868_v33, 1  ;;  %v2010_v62 = vmul.f32 %v2009_v63, %v3249_v56  ;;  %v1910_v3 = vsel %vm1821_vm8, %v3281_v9, 0.0  ;;  %v3289_v39 = vmul.f32 %v2566_v44, %v2782_v49 }
 0x703   :  { %2569 = vpow2.f32 %v1896_v8  ;;  %v1873_v17 = vmax.f32 %v1871_v34, %v1872_v22  ;;  %v1911_v30 = vrot.slane %v1910_v3, 4  ;;  %v1935_v40 = vadd.f32 %v1934_v5, %v1933_v61 }
 0x704   :  { %v1870_v35 = vmax.f32 %v1868_v33, %v1869_v20  ;;  %2098 = vperm.xlu2 %2427, %v2010_v62   ;;  %v1938_v55 = vsel %vm1821_vm8, %v3289_v39, 0.0 }
 0x705   :  { %v1874_v18 = vrot.slane %v1873_v17, 2  ;;  %v1912_v42 = vadd.f32 %v1911_v30, %v1910_v3  ;;  %v1939_v51 = vrot.slane %v1938_v55, 4  ;;  %v1936_v2 = vrot.slane %v1935_v40, 1 }
 0x706   :  { %v1884_v14 = vsub.f32 %v1819_v10, %v1870_v35 }
 0x707   :  { %v2568_v56 = vpop.eup %2567  ;;  %v1875_v29 = vmax.f32 %v1873_v17, %v1874_v18  ;;  %v1913_v25 = vrot.slane %v1912_v42, 2  ;;  %v1940_v37 = vadd.f32 %v1939_v51, %v1938_v55  ;;  %v3303_v15 = vadd.f32 %v1936_v2, %v1935_v40 }
 0x708   :  { %v1898_v13 = vmul.f32 1.442695, %v1884_v14  ;;  %v3294_v49 = vmul.f32 %v2568_v56, %v2771_v41 }
 0x709   :  { %v2570_v0 = vpop.eup %2569  ;;  %v1876_v1 = vrot.slane %v1875_v29, 1  ;;  %v1914_v46 = vadd.f32 %v1913_v25, %v1912_v42  ;;  %v1941_v57 = vrot.slane %v1940_v37, 2  ;;  %v2022_v30 = vand.u32 2147483648, %v3303_v15 }
 0x70a   :  { %2571 = vpow2.f32 %v1898_v13  ;;  %v3297_v7 = vmul.f32 %v2570_v0, %v2784_v50  ;;  %v1917_v10 = vsel %vm1821_vm8, %v3294_v49, 0.0  ;;  %vm2016_vm4 = vweird.f32 %v3303_v15 }
 0x70b   :  { %v1877_v47 = vmax.f32 %v1875_v29, %v1876_v1  ;;  %v1915_v19 = vrot.slane %v1914_v46, 1  ;;  %v1942_v16 = vadd.f32 %v1941_v57, %v1940_v37  ;;  %v1918_v27 = vrot.slane %v1917_v10, 4 }
 0x70c   :  { %v1945_v41 = vsel %vm1821_vm8, %v3297_v7, 0.0 }
 0x70d   :  { %v1885_v32 = vsub.f32 %v1820_v54, %v1877_v47  ;;  %v1916_v23 = vadd.f32 %v1915_v19, %v1914_v46  ;;  %v1943_v36 = vrot.slane %v1942_v16, 1  ;;  %v1946_v11 = vrot.slane %v1945_v41, 4 }
 0x70e   :  { %v1919_v45 = vadd.f32 %v1918_v27, %v1917_v10 }
 0x70f   :  { %v1900_v24 = vmul.f32 1.442695, %v1885_v32  ;;  %2573 = vrcp.f32 %v1916_v23  ;;  %v1944_v4 = vadd.f32 %v1943_v36, %v1942_v16  ;;  %v1947_v48 = vadd.f32 %v1946_v11, %v1945_v41 }
 0x710   :  { %v2572_v50 = vpop.eup %2571  ;;  %v1920_v61 = vrot.slane %v1919_v45, 2  ;;  %2575 = vrcp.f32 %v3303_v15  ;;  %v1977_v53 = vand.u32 2147483648, %v1916_v23  ;;  %v1975_v62 = vand.u32 2147483647, %v1916_v23 }
 0x711   :  { %2577 = vpow2.f32 %v1900_v24  ;;  %v1948_v21 = vrot.slane %v1947_v48, 2  ;;  %v3307_v43 = vmul.f32 %v2572_v50, %v2786_v52  ;;  %vm1971_vm7 = vweird.f32 %v1916_v23 }
 0x712   :  { %2579 = vrcp.f32 %v1944_v4  ;;  %v1921_v28 = vadd.f32 %v1920_v61, %v1919_v45  ;;  %v1978_v40 = vor.u32 1.1754944e-38, %v1977_v53  ;;  %v2037_v18 = vand.u32 2147483648, %v1944_v4 }
 0x713   :  { %v1949_v58 = vadd.f32 %v1948_v21, %v1947_v48  ;;  %v1952_v8 = vsel %vm1821_vm8, %v3307_v43, 0.0  ;;  %vm1976_vm6 = vcmp.eq.f32.partialorder %v1975_v62, 8.507059e+37  ;;  %vm2031_vm5 = vweird.f32 %v1944_v4 }
 0x714   :  { %v1922_v38 = vrot.slane %v1921_v28, 1  ;;  %v1953_v35 = vrot.slane %v1952_v8, 4  ;;  %v2038_v1 = vor.u32 1.1754944e-38, %v2037_v18 }
 0x715   :  { %v2574_v6 = vpop.eup %2573  ;;  %v1950_v5 = vrot.slane %v1949_v58, 1 }
 0x716   :  { %v3309_v12 = vpop.eup %2575  ;;  %v1967_v31 = vmul.f32 %v2574_v6, %v1916_v23  ;;  %v3311_v44 = vadd.f32 %v1922_v38, %v1921_v28  ;;  %vm1972_vm1 = vweird.f32 %v2574_v6  ;;  %v1954_v2 = vadd.f32 %v1953_v35, %v1952_v8 }
 0x717   :  { %v2578_v54 = vpop.eup %2577  ;;  %v3315_v63 = vadd.f32 %v1950_v5, %v1949_v58  ;;  %v2012_v3 = vmul.f32 %v3309_v12, %v3303_v15  ;;  %vm1973_vm0 = vmor %vm1971_vm7, %vm1972_vm1 }
 0x718   :  { %v2580_v33 = vpop.eup %2579  ;;  %v1968_v34 = vsub.f32 1.0, %v1967_v31  ;;  %2581 = vrcp.f32 %v3311_v44  ;;  %v3319_v52 = vmul.f32 %v2578_v54, %v2801_v60  ;;  %v2035_v60 = vand.u32 2147483647, %v1944_v4 }
 0x719   :  { %v2027_v22 = vmul.f32 %v2580_v33, %v1944_v4  ;;  %2583 = vrcp.f32 %v3315_v63  ;;  %vm2032_vm14 = vweird.f32 %v2580_v33  ;;  %v2013_v56 = vsub.f32 1.0, %v2012_v3 }
 0x71a   :  { %v1969_v20 = vmul.f32 %v2574_v6, %v1968_v34  ;;  %v1959_v51 = vsel %vm1821_vm8, %v3319_v52, 0.0  ;;  %vm2033_vm9 = vmor %vm2031_vm5, %vm2032_vm14  ;;  %vm2036_vm3 = vcmp.eq.f32.partialorder %v2035_v60, 8.507059e+37  ;;  %vm2017_vm8 = vweird.f32 %v3309_v12 }
 0x71b   :  { %v2028_v17 = vsub.f32 1.0, %v2027_v22  ;;  %v1960_v29 = vrot.slane %v1959_v51, 4  ;;  %v1955_v19 = vrot.slane %v1954_v2, 2  ;;  %v2014_v32 = vmul.f32 %v3309_v12, %v2013_v56 }
 0x71c   :  { %v1970_v55 = vadd.f32 %v2574_v6, %v1969_v20  ;;  %v1992_v23 = vand.u32 2147483648, %v3311_v44  ;;  %v1990_v50 = vand.u32 2147483647, %v3311_v44  ;;  %v2052_v4 = vand.u32 2147483648, %v3315_v63 }
 0x71d   :  { %v2029_v42 = vmul.f32 %v2580_v33, %v2028_v17  ;;  %v1961_v57 = vadd.f32 %v1960_v29, %v1959_v51  ;;  %v1956_v11 = vadd.f32 %v1955_v19, %v1954_v2  ;;  %vm1986_vm7 = vweird.f32 %v3311_v44 }
 0x71e   :  { %v1974_v14 = vsel %vm1973_vm0, %v2574_v6, %v1970_v55  ;;  %v2582_v25 = vpop.eup %2581  ;;  %v1993_v6 = vor.u32 1.1754944e-38, %v1992_v23  ;;  %v2015_v58 = vadd.f32 %v3309_v12, %v2014_v32  ;;  %vm1991_vm5 = vcmp.eq.f32.partialorder %v1990_v50, 8.507059e+37 }
 0x71f   :  { %v1979_v37 = vsel %vm1976_vm6, %v1978_v40, %v1974_v14  ;;  %v2030_v13 = vadd.f32 %v2580_v33, %v2029_v42  ;;  %v1982_v46 = vmul.f32 %v2582_v25, %v3311_v44  ;;  %v2584_v10 = vpop.eup %2583  ;;  %v1962_v36 = vrot.slane %v1961_v57, 2 }
 0x720   :  { %v1980_v0 = vmul.f32 %v1979_v37, %v3281_v9  ;;  %v2042_v27 = vmul.f32 %v2584_v10, %v3315_v63  ;;  %vm1987_vm1 = vweird.f32 %v2582_v25  ;;  %v1957_v61 = vrot.slane %v1956_v11, 1 }
 0x721   :  { %v2034_v47 = vsel %vm2033_vm9, %v2580_v33, %v2030_v13  ;;  %v1983_v41 = vsub.f32 1.0, %v1982_v46  ;;  %v1963_v48 = vadd.f32 %v1962_v36, %v1961_v57  ;;  %vm2047_vm0 = vweird.f32 %v2584_v10  ;;  %vm1988_vm14 = vmor %vm1986_vm7, %vm1987_vm1 }
 0x722   :  { %2088 = vperm.xlu0 %2425, %v1980_v0   ;;  %v2039_v16 = vsel %vm2036_vm3, %v2038_v1, %v2034_v47  ;;  %v2043_v45 = vsub.f32 1.0, %v2042_v27  ;;  %v1958_v31 = vadd.f32 %v1957_v61, %v1956_v11  ;;  %vm2046_vm6 = vweird.f32 %v3315_v63  ;;  %vm2018_vm1 = vmor %vm2016_vm4, %vm2017_vm8 }
 0x723   :  { %v2040_v9 = vmul.f32 %v2039_v16, %v3289_v39  ;;  %v1984_v24 = vmul.f32 %v2582_v25, %v1983_v41  ;;  %v2050_v39 = vand.u32 2147483647, %v3315_v63  ;;  %v1964_v38 = vrot.slane %v1963_v48, 1  ;;  %vm2048_vm9 = vmor %vm2046_vm6, %vm2047_vm0 }
 0x724   :  { %v2044_v21 = vmul.f32 %v2584_v10, %v2043_v45  ;;  %v2053_v44 = vor.u32 1.1754944e-38, %v2052_v4  ;;  %2585 = vrcp.f32 %v1958_v31  ;;  %v2020_v22 = vand.u32 2147483647, %v3303_v15 }
 0x725   :  { %2108 = vperm.xlu2 %2427, %v2040_v9   ;;  %v1985_v28 = vadd.f32 %v2582_v25, %v1984_v24  ;;  %v1965_v34 = vadd.f32 %v1964_v38, %v1963_v48  ;;  %vm2051_vm3 = vcmp.eq.f32.partialorder %v2050_v39, 8.507059e+37  ;;  %v2019_v62 = vsel %vm2018_vm1, %v3309_v12, %v2015_v58 }
 0x726   :  { %v2045_v54 = vadd.f32 %v2584_v10, %v2044_v21  ;;  %v2023_v3 = vor.u32 1.1754944e-38, %v2022_v30  ;;  %vm2021_vm7 = vcmp.eq.f32.partialorder %v2020_v22, 8.507059e+37  ;;  %v2067_v60 = vand.u32 2147483648, %v1958_v31 }
 0x727   :  { %v1989_v5 = vsel %vm1988_vm14, %v2582_v25, %v1985_v28  ;;  %2587 = vrcp.f32 %v1965_v34  ;;  %v2065_v14 = vand.u32 2147483647, %v1958_v31  ;;  %v2082_v12 = vand.u32 2147483648, %v1965_v34 }
 0x728   :  { %v1994_v33 = vsel %vm1991_vm5, %v1993_v6, %v1989_v5  ;;  %v2049_v53 = vsel %vm2048_vm9, %v2584_v10, %v2045_v54  ;;  %v2024_v17 = vsel %vm2021_vm7, %v2023_v3, %v2019_v62  ;;  %vm2061_vm4 = vweird.f32 %v1958_v31 }
 0x729   :  { %v1995_v8 = vmul.f32 %v1994_v33, %v3294_v49  ;;  %v2054_v20 = vsel %vm2051_vm3, %v2053_v44, %v2049_v53  ;;  %v2025_v40 = vmul.f32 %v2024_v17, %v3268_v59  ;;  %v2080_v30 = vand.u32 2147483647, %v1965_v34 }
 0x72a   :  { %v2055_v63 = vmul.f32 %v2054_v20, %v3297_v7  ;;  %v2586_v49 = vpop.eup %2585  ;;  %v2068_v29 = vor.u32 1.1754944e-38, %v2067_v60  ;;  %vm2076_vm6 = vweird.f32 %v1965_v34  ;;  %vm2066_vm5 = vcmp.eq.f32.partialorder %v2065_v14, 8.507059e+37  ;;  %v1629_v14 = vld [vmem:[#allocation7 + $0x510] ss:$0 sm:$0xff] }
 0x72b   :  { %2093 = vperm.xlu1 %2426, %v1995_v8   ;;  %v2057_v35 = vmul.f32 %v2586_v49, %v1958_v31  ;;  %vm2062_vm8 = vweird.f32 %v2586_v49  ;;  %v2083_v59 = vor.u32 1.1754944e-38, %v2082_v12  ;;  %vm2081_vm3 = vcmp.eq.f32.partialorder %v2080_v30, 8.507059e+37  ;;  %v2246_v30 = vld [vmem:[#allocation2 + $0x10] sm:$0xff] }
 0x72c   :  { %2113 = vperm.xlu0 %2425, %v2055_v63   ;;  %vm2063_vm14 = vmor %vm2061_vm4, %vm2062_vm8  ;;  %vm3419_vm1 = vcmask 261120  }
 0x72d   :  { %v2588_v55 = vpop.eup %2587  ;;  %v2058_v42 = vsub.f32 1.0, %v2057_v35  ;;  %vm3420_vm7 = vmmov %vm3419_vm1 }
 0x72e   :  { %v2072_v18 = vmul.f32 %v2588_v55, %v1965_v34  ;;  %vm2077_vm0 = vweird.f32 %v2588_v55  ;;  %vm3421_vm8 = vmmov %vm3419_vm1 }
 0x72f   :  { %v2059_v7 = vmul.f32 %v2586_v49, %v2058_v42  ;;  %vm2078_vm9 = vmor %vm2076_vm6, %vm2077_vm0 }
 0x730   :  { %v2073_v51 = vsub.f32 1.0, %v2072_v18  ;;  %vm3422_vm4 = vmmov %vm3419_vm1 }
 0x731   :  { %v2060_v56 = vadd.f32 %v2586_v49, %v2059_v7  ;;  %vm3423_vm0 = vmmov %vm3419_vm1 }
 0x732   :  { %v2074_v15 = vmul.f32 %v2588_v55, %v2073_v51  ;;  %vm3425_vm6 = vmmov %vm3423_vm0 }
 0x733   :  { %2103 = vperm.xlu1 %2426, %v2025_v40   ;;  %v2064_v37 = vsel %vm2063_vm14, %v2586_v49, %v2060_v56  ;;  %vm3424_vm14 = vmmov %vm3423_vm0  ;;  %v2703_v56 = vmov 2  }
 0x734   :  { %v2075_v25 = vadd.f32 %v2588_v55, %v2074_v15  ;;  %v2069_v13 = vsel %vm2066_vm5, %v2068_v29, %v2064_v37  ;;  %2428 = vset.pattern.permute.xlu0 %v2703_v56  ;;  %vm3426_vm5 = vmmov %vm3423_vm0 }
 0x735   :  { %v2070_v0 = vmul.f32 %v2069_v13, %v3307_v43  ;;  %2278 = vperm.xlu0 %2428, %v2246_v30  }
 0x736   :  { %v2079_v2 = vsel %vm2078_vm9, %v2588_v55, %v2075_v25  ;;  %vm3427_vm9 = vcmask 1047559  }
 0x737   :  { %v2084_v1 = vsel %vm2081_vm3, %v2083_v59, %v2079_v2 }
 0x738   :  { %v2085_v46 = vmul.f32 %v2084_v1, %v3319_v52 }
 0x73a   :  { %2123 = vperm.xlu2 %2427, %v2085_v46  }
 0x73b   :  { %2118 = vperm.xlu1 %2426, %v2070_v0  }
 0x75e   :  { %v2099_v57 = vpop.permute.xlu2 %2098 }
 0x75f   :  { %v2128_v19 = vmul.f32 %v2099_v57, %v3215_v26 }
 0x761   :  { %v2148_v27 = vsel %vm3419_vm1, %v2128_v19, 0.0 }
 0x762   :  { %v2149_v43 = vrot.slane %v2148_v27, 4 }
 0x764   :  { %v2150_v24 = vadd.f32 %v2149_v43, %v2148_v27 }
 0x766   :  { %v2151_v58 = vrot.slane %v2150_v24, 2 }
 0x768   :  { %v2152_v22 = vadd.f32 %v2151_v58, %v2150_v24 }
 0x76a   :  { %v2153_v40 = vrot.slane %v2152_v22, 1 }
 0x76c   :  { %v2154_v59 = vadd.f32 %v2153_v40, %v2152_v22  ;;  %v2247_v22 = vld [vmem:[#allocation7 + $0x520] sm:$0x3] }
 0x77f   :  { %v2109_v10 = vpop.permute.xlu2 %2108 }
 0x780   :  { %v2130_v41 = vmul.f32 %v2109_v10, %v3215_v26 }
 0x782   :  { %v2162_v23 = vsel %vm3421_vm8, %v2130_v41, 0.0 }
 0x783   :  { %v2163_v50 = vrot.slane %v2162_v23, 4 }
 0x785   :  { %v2164_v38 = vadd.f32 %v2163_v50, %v2162_v23 }
 0x787   :  { %v2165_v20 = vrot.slane %v2164_v38, 2 }
 0x789   :  { %v2166_v18 = vadd.f32 %v2165_v20, %v2164_v38  ;;  %v2289_v20 = vld [vmem:[#allocation7 + $0x5b0] sm:$0xff] }
 0x78b   :  { %v2167_v13 = vrot.slane %v2166_v18, 1 }
 0x78d   :  { %v2168_v27 = vadd.f32 %v2167_v13, %v2166_v18  ;;  %v2248_v18 = vld [vmem:[#allocation7 + $0x530] ss:$0 sm:$0xff] }
 0x794   :  { %v2089_v47 = vpop.permute.xlu0 %2088  ;;  %v2124_v9 = vpop.permute.xlu2 %2123 }
 0x795   :  { %v2126_v16 = vmul.f32 %v2089_v47, %v3215_v26  ;;  %v2133_v36 = vmul.f32 %v2124_v9, %v3215_v26 }
 0x797   :  { %v2134_v32 = vsel %vm3420_vm7, %v2126_v16, 0.0  ;;  %v2183_v39 = vsel %vm3423_vm0, %v2133_v36, 0.0  ;;  %v2192_v16 = vadd.f32 %v2154_v59, %v1629_v14 }
 0x798   :  { %v2135_v52 = vrot.slane %v2134_v32, 4  ;;  %v2184_v44 = vrot.slane %v2183_v39, 4 }
 0x79a   :  { %v2136_v48 = vadd.f32 %v2135_v52, %v2134_v32  ;;  %v2185_v3 = vadd.f32 %v2184_v44, %v2183_v39 }
 0x79c   :  { %v2137_v5 = vrot.slane %v2136_v48, 2  ;;  %v2186_v7 = vrot.slane %v2185_v3, 2 }
 0x79d   :  { %v2094_v11 = vpop.permute.xlu1 %2093 }
 0x79e   :  { %v2127_v45 = vmul.f32 %v2094_v11, %v3215_v26  ;;  %v2114_v4 = vpop.permute.xlu0 %2113  ;;  %v2138_v62 = vadd.f32 %v2137_v5, %v2136_v48  ;;  %v2187_v1 = vadd.f32 %v2186_v7, %v2185_v3  ;;  %v2209_v11 = vrot.slane %v2192_v16, 6  ;;  %v2286_v3 = vld [vmem:[#allocation7 + $0x580] sm:$0xff] }
 0x79f   :  { %v2131_v61 = vmul.f32 %v2114_v4, %v3215_v26 }
 0x7a0   :  { %v2141_v21 = vsel %vm3422_vm4, %v2127_v45, 0.0  ;;  %v2139_v51 = vrot.slane %v2138_v62, 1  ;;  %v2188_v43 = vrot.slane %v2187_v1, 1  ;;  %v2194_v45 = vadd.f32 %v2168_v27, %v1629_v14 }
 0x7a1   :  { %v2142_v28 = vrot.slane %v2141_v21, 4  ;;  %v2169_v6 = vsel %vm3424_vm14, %v2131_v61, 0.0 }
 0x7a2   :  { %v2170_v31 = vrot.slane %v2169_v6, 4  ;;  %v2140_v0 = vadd.f32 %v2139_v51, %v2138_v62  ;;  %v2189_v4 = vadd.f32 %v2188_v43, %v2187_v1  ;;  %v2287_v62 = vld [vmem:[#allocation7 + $0x590] sm:$0xff] }
 0x7a3   :  { %v2143_v54 = vadd.f32 %v2142_v28, %v2141_v21  ;;  %v2213_v28 = vrot.slane %v2194_v45, 4 }
 0x7a4   :  { %v2171_v53 = vadd.f32 %v2170_v31, %v2169_v6  ;;  %v2190_v9 = vadd.f32 %v2140_v0, %v1629_v14  ;;  %v2197_v58 = vadd.f32 %v2189_v4, %v1629_v14 }
 0x7a5   :  { %v2144_v33 = vrot.slane %v2143_v54, 2  ;;  %v2104_v34 = vpop.permute.xlu1 %2103 }
 0x7a6   :  { %v2129_v8 = vmul.f32 %v2104_v34, %v3215_v26  ;;  %v2172_v55 = vrot.slane %v2171_v53, 2 }
 0x7a7   :  { %v2145_v63 = vadd.f32 %v2144_v33, %v2143_v54  ;;  %v2219_v33 = vrot.slane %v2197_v58, 1 }
 0x7a8   :  { %v2155_v49 = vsel %vm3425_vm6, %v2129_v8, 0.0  ;;  %v2173_v29 = vadd.f32 %v2172_v55, %v2171_v53  ;;  %v2198_v53 = vld [vmem:[#allocation2 + $0x8] sm:$0xff]  ;;  %v2282_v55 = vld [vmem:[#allocation7 + $0x540] sm:$0xff] }
 0x7a9   :  { %v2146_v17 = vrot.slane %v2145_v63, 1  ;;  %v2156_v35 = vrot.slane %v2155_v49, 4 }
 0x7aa   :  { %v2174_v47 = vrot.slane %v2173_v29, 1 }
 0x7ab   :  { %v2147_v42 = vadd.f32 %v2146_v17, %v2145_v63  ;;  %v2157_v60 = vadd.f32 %v2156_v35, %v2155_v49  ;;  %v2288_v63 = vld [vmem:[#allocation7 + $0x5a0] sm:$0xff]  ;;  %v2285_v49 = vld [vmem:[#allocation7 + $0x570] sm:$0xff] }
 0x7ac   :  { %v2175_v52 = vadd.f32 %v2174_v47, %v2173_v29  ;;  %v2284_v17 = vld [vmem:[#allocation7 + $0x560] sm:$0xff]  ;;  %v2283_v35 = vld [vmem:[#allocation7 + $0x550] sm:$0xff] }
 0x7ad   :  { %v2158_v12 = vrot.slane %v2157_v60, 2  ;;  %v2119_v15 = vpop.permute.xlu1 %2118  ;;  %v2191_v25 = vadd.f32 %v2147_v42, %v1629_v14 }
 0x7ae   :  { %v2132_v37 = vmul.f32 %v2119_v15, %v3215_v26  ;;  %v2195_v21 = vadd.f32 %v2175_v52, %v1629_v14  ;;  %v2336_v15 = vld [vmem:[#allocation7 + $0x5c0] ss:$0 sm:$0xff] }
 0x7af   :  { %v2159_v2 = vadd.f32 %v2158_v12, %v2157_v60  ;;  %v2207_v19 = vrot.slane %v2191_v25, 7  ;;  %v2279_v60 = vpop.permute.xlu0 %2278 }
 0x7b0   :  { %v2176_v46 = vsel %vm3426_vm5, %v2132_v37, 0.0  ;;  %v2215_v54 = vrot.slane %v2195_v21, 3 }
 0x7b1   :  { %v2160_v57 = vrot.slane %v2159_v2, 1  ;;  %v2177_v10 = vrot.slane %v2176_v46, 4  ;;  %v2208_v36 = vsel %vm977_vm11, %v2207_v19, %v2190_v9  ;;  %vm2222_vm11 = vcmask 64512  }
 0x7b2   :  { %v2210_v61 = vsel %vm980_vm2, %v2209_v11, %v2208_v36  ;;  %vm2253_vm2 = vcmask 1041408  }
 0x7b3   :  { %v2161_v41 = vadd.f32 %v2160_v57, %v2159_v2  ;;  %v2178_v32 = vadd.f32 %v2177_v10, %v2176_v46 }
 0x7b5   :  { %v2193_v23 = vadd.f32 %v2161_v41, %v1629_v14  ;;  %v2179_v26 = vrot.slane %v2178_v32, 2 }
 0x7b7   :  { %v2211_v24 = vrot.slane %v2193_v23, 5  ;;  %v2180_v50 = vadd.f32 %v2179_v26, %v2178_v32 }
 0x7b9   :  { %v2181_v48 = vrot.slane %v2180_v50, 1  ;;  %v2212_v39 = vsel %vm983_vm10, %v2211_v24, %v2210_v61  ;;  %vm2249_vm10 = vcmask 15360  }
 0x7ba   :  { %v2214_v31 = vsel %vm986_vm13, %v2213_v28, %v2212_v39  ;;  %vm3428_vm13 = vmmov %vm3423_vm0 }
 0x7bb   :  { %v2182_v6 = vadd.f32 %v2181_v48, %v2180_v50  ;;  %v2216_v44 = vsel %vm989_vm12, %v2215_v54, %v2214_v31  ;;  %vm3429_vm12 = vmmov %vm3423_vm0 }
 0x7bd   :  { %v2196_v38 = vadd.f32 %v2182_v6, %v1629_v14 }
 0x7bf   :  { %v2217_v5 = vrot.slane %v2196_v38, 2 }
 0x7c1   :  { %v2218_v34 = vsel %vm992_vm15, %v2217_v5, %v2216_v44 }
 0x7c2   :  { %v2220_v8 = vsel %vm3427_vm9, %v2219_v33, %v2218_v34 }
 0x7c3   :  { %2241 = vmatpush.msrb.mxu0 %v2220_v8 }
 0x7c4   :  { %2403 = vmatmul.msk.f32.vlgmr.msrb.gmra.mxu0 %vm2222_vm11, %v2198_v53 }
 0x7c5   :  { %2404 = vmatpush.msk.msra.mxu0 %vm2253_vm2, %v2247_v22 }
 0x7c7   :  { %2305 = vmatpush.msrb.mxu0 %v2289_v20 }
 0x7c9   :  { %2306 = vmatpush.msrb.mxu0 %v2288_v63 }
 0x7cb   :  { %2307 = vmatpush.msrb.mxu0 %v2287_v62 }
 0x7cc   :  { %2405 = vmatmul.msk.f32.vlgmr.msra.gmra.mxu0 %vm2249_vm10, %v2246_v30 }
 0x7cd   :  { %2308 = vmatpush.msrb.mxu0 %v2286_v3 }
 0x7cf   :  { %2328 = vmatpush.msra.mxu0 %v2285_v49 }
 0x7d1   :  { %2329 = vmatpush.msra.mxu0 %v2284_v17 }
 0x7d3   :  { %2330 = vmatpush.msra.mxu0 %v2283_v35 }
 0x7d5   :  { %2331 = vmatpush.msra.mxu0 %v2282_v55 }
 0x841   :  { %v2243_v40 = vpop.f32.mrf.mxu0 }
 0x849   :  { %v2274_v42 = vpop.f32.mrf.mxu0 }
 0x84a   :  { %v2275_v51 = vadd.f32 %v2274_v42, %v2248_v18 }
 0x84c   :  { %v2281_v7 = vmul.f32 %v2279_v60, %v2275_v51 }
 0x84e   :  { %2406 = vmatmul.msk.f32.vlgmr.msrb.gmra.mxu0 %vm3428_vm13, %v2281_v7 }
 0x856   :  { %2407 = vmatmul.msk.f32.vlgmr.msra.gmra.mxu0 %vm3429_vm12, %v2243_v40 }
 0x8cb   :  { %v2310_v14 = vpop.f32.mrf.mxu0 }
 0x8d3   :  { %v2333_v12 = vpop.f32.mrf.mxu0 }
 0x8d4   :  { %v2334_v30 = vadd.f32 %v2333_v12, %v2310_v14 }
 0x8d6   :  { %v2337_v56 = vadd.f32 %v2336_v15, %v2334_v30 }
 0x8d8   :  { %2338 = vst [vmem:[#allocation8] sm:$0xff] %v2337_v56 }
 0x8d9   :  { %2349 = dma.vmem_to_hbm [thread:$0]  %s2345_s4, 128, %s2347_s7, [#allocation4]  }
 0x8da   :  { %2690 = dma.done.wait [#allocation4], 128  }
 0x8db   :  { %2691 = vsyncadd [#allocation4], 4294967168 }
 0x8dc   :  { %2354 = vsyncpa [#allocation3], 1 }
 0x8dd   :  { %2355 = vsyncpa [#allocation6], 1 }
 0x8de   :  { %2356 = vsyncpa [#allocation4], 1 }

</bundles_post_ra>
